<compile_context>
chip_gen: v6e
topology: v6e:2x2x1
jax: 0.10.0
libtpu: 0.0.40
codegen_flags: <defaults>
</compile_context>

<pallas_src>
import functools
import math

import jax
import jax.numpy as jnp
from jax import lax
from jax.experimental import pallas as pl
from jax.experimental.pallas import tpu as pltpu

PAD = 128                                   # lane-padded channel width
SMALL = 16                                  # lane pad for tiny channel counts
BN_EPS = 1e-5
BN_SCALE = 1.0 / math.sqrt(1.0 + BN_EPS)    # BatchNorm eval: mean=0, var=1
NEG = -1e30                                 # additive mask for invalid slots
VMEM_LIMIT = 48 * 1024 * 1024               # fits v7x's 64 MiB physical VMEM


def _round_up(x, m):
    return ((x + m - 1) // m) * m


def _choose_tile(m, k):
    """Query-row tile: multiple of 16 (bf16 sublane tile), sized so the first
    matmul sees ~512 rows (K * TM) on v6e/v7x's 256x256 MXU."""
    m16 = _round_up(m, 16)
    target = _round_up(max(1, 512 // max(k, 1)), 16)
    return max(16, min(target, m16, 256))


# ----------------------------------------------------------------------------
# Pallas kernels
# ----------------------------------------------------------------------------
def _sa_conv_kernel(xj_ref, rel_ref, amask_ref, wx_ref, wr_ref, w_ref, b_ref,
                    out_ref, *, num_layers, num_slots, tile_m):
    """PointNetConv tile: per-edge MLP on cat([x_j, pos_j - pos_i]) (first
    layer expressed as x_j @ W0x + rel @ W0r) followed by a masked max over
    the leading neighbor-slot axis.  bf16 matmuls, f32 accumulation."""
    rows = num_slots * tile_m
    xj = xj_ref[...].reshape(rows, xj_ref.shape[-1])
    rel = rel_ref[...].reshape(rows, rel_ref.shape[-1])
    h = (jnp.dot(xj, wx_ref[...], preferred_element_type=jnp.float32)
         + jnp.dot(rel, wr_ref[...], preferred_element_type=jnp.float32)
         + b_ref[0])
    if num_layers > 1:
        h = jnp.maximum(h, 0.0)
    for l in range(1, num_layers):
        h = jnp.dot(h.astype(jnp.bfloat16), w_ref[l - 1],
                    preferred_element_type=jnp.float32) + b_ref[l]
        if l < num_layers - 1:                      # plain_last=True
            h = jnp.maximum(h, 0.0)
    h = h.reshape(num_slots, tile_m, PAD) + amask_ref[...]   # lane splat mask
    out_ref[...] = jnp.max(h, axis=0).astype(out_ref.dtype)  # leading-axis max


def _glob_final_kernel(x_ref, pos_ref, wgx_ref, wgp_ref, wg_ref, bg_ref,
                       wf_ref, bf_ref, out_ref, *, n_glob, n_final, pts, bp):
    """GlobalSAModule (per-point MLP on cat([x, pos]) + per-graph max pool)
    fused with the final MLP (norm=None).  Points are laid out (P, B_pad, C)
    so the pool is a leading-axis max."""
    rows = pts * bp
    xr = x_ref[...].reshape(rows, PAD)
    pr = pos_ref[...].reshape(rows, pos_ref.shape[-1])
    h = (jnp.dot(xr, wgx_ref[...], preferred_element_type=jnp.float32)
         + jnp.dot(pr, wgp_ref[...], preferred_element_type=jnp.float32)
         + bg_ref[0])
    if n_glob > 1:
        h = jnp.maximum(h, 0.0)
    for l in range(1, n_glob):
        h = jnp.dot(h.astype(jnp.bfloat16), wg_ref[l - 1],
                    preferred_element_type=jnp.float32) + bg_ref[l]
        if l < n_glob - 1:
            h = jnp.maximum(h, 0.0)
    g = jnp.max(h.reshape(pts, bp, PAD), axis=0)      # per-graph max pool
    for l in range(n_final):
        g = jnp.dot(g.astype(jnp.bfloat16), wf_ref[l],
                    preferred_element_type=jnp.float32) + bf_ref[l]
        if l < n_final - 1:
            g = jnp.maximum(g, 0.0)
        # TODO(synk): dropout (p=0.5) after the activation is identity in eval.
    out_ref[...] = g


def _run_sa(xj, rel, amask, wx, wr, wrest, bias, *, tm, num_layers, k_slots):
    _, m_pad, cx = xj.shape
    rows = k_slots * m_pad
    flops = 2 * rows * (cx * PAD + rel.shape[-1] * PAD) \
        + 2 * rows * PAD * PAD * max(num_layers - 1, 0)
    bytes_accessed = (xj.size * 2 + rel.size * 2 + amask.size * 4
                      + wx.size * 2 + wr.size * 2 + wrest.size * 2
                      + bias.size * 4 + m_pad * PAD * 2)
    kernel = functools.partial(_sa_conv_kernel, num_layers=num_layers,
                               num_slots=k_slots, tile_m=tm)
    # TODO(synk): sweep pipeline_mode=pl.Buffered(3) on the message specs if
    # the per-tile DMA is still exposed after the bf16 shrink.
    return pl.pallas_call(
        kernel,
        out_shape=jax.ShapeDtypeStruct((m_pad, PAD), jnp.bfloat16),
        grid_spec=pltpu.PrefetchScalarGridSpec(
            num_scalar_prefetch=0,
            grid=(m_pad // tm,),
            in_specs=[
                pl.BlockSpec((k_slots, tm, cx), lambda i: (0, i, 0)),
                pl.BlockSpec((k_slots, tm, rel.shape[-1]), lambda i: (0, i, 0)),
                pl.BlockSpec((k_slots, tm, 1), lambda i: (0, i, 0)),
                pl.BlockSpec(wx.shape, lambda i: (0, 0)),        # resident
                pl.BlockSpec(wr.shape, lambda i: (0, 0)),        # resident
                pl.BlockSpec(wrest.shape, lambda i: (0, 0, 0)),  # resident
                pl.BlockSpec(bias.shape, lambda i: (0, 0, 0)),   # resident
            ],
            out_specs=pl.BlockSpec((tm, PAD), lambda i: (i, 0)),
        ),
        compiler_params=pltpu.CompilerParams(
            dimension_semantics=("parallel",),
            vmem_limit_bytes=VMEM_LIMIT),
        cost_estimate=pl.CostEstimate(flops=flops, transcendentals=0,
                                      bytes_accessed=bytes_accessed),
    )(xj, rel, amask, wx, wr, wrest, bias)


# ----------------------------------------------------------------------------
# Plain-JAX glue: graph construction (FPS / radius), gathers, parameter setup
# ----------------------------------------------------------------------------
def _fps_single(pos_g, n_samples):
    # TODO(synk): torch_cluster.fps uses a random start point (random_start=
    # True); we deterministically start from index 0.
    def body(i, carry):
        sel, min_d = carry
        nxt = jnp.argmax(min_d).astype(jnp.int32)
        sel = sel.at[i].set(nxt)
        min_d = jnp.minimum(min_d, jnp.sum((pos_g - pos_g[nxt]) ** 2, axis=-1))
        return sel, min_d

    sel0 = jnp.zeros((n_samples,), jnp.int32)
    d0 = jnp.sum((pos_g - pos_g[0]) ** 2, axis=-1)
    sel, _ = lax.fori_loop(1, n_samples, body, (sel0, d0))
    return sel


def fps_batched(pos, num_graphs, ratio):
    # Assumes contiguous, equal-sized graphs (true for the synthetic input).
    n = pos.shape[0]
    per = n // num_graphs
    k = int(math.ceil(ratio * per))
    idx = jax.vmap(lambda p: _fps_single(p, k))(pos.reshape(num_graphs, per, 3))
    offs = (jnp.arange(num_graphs, dtype=jnp.int32) * per)[:, None]
    return (idx + offs).reshape(-1)


def radius_dense(pos_src, batch_src, pos_q, batch_q, r, k_slots):
    # Dense equivalent of torch_cluster.radius(..., max_num_neighbors=64).
    # lax.top_k replaces the previous full argsort (valid slots first, lowest
    # index first among valid — same slot selection, O(M*N*logK)).
    n = pos_src.shape[0]
    d2 = jnp.sum((pos_q[:, None, :] - pos_src[None, :, :]) ** 2, axis=-1)
    valid = (d2 <= r * r) & (batch_q[:, None] == batch_src[None, :])
    ar = jnp.arange(n, dtype=jnp.float32)
    score = jnp.where(valid, jnp.float32(n) - ar, -1.0 - ar)
    vals, nbr_idx = lax.top_k(score, k_slots)
    return nbr_idx.astype(jnp.int32), vals > 0.0


def sa_module(x_pad, pos, batch, *, num_graphs, ratio, r, params, k_slots):
    wx, wr, wrest, bias = params
    idx = fps_batched(pos, num_graphs, ratio)
    pos_q, batch_q = pos[idx], batch[idx]
    nbr_idx, taken = radius_dense(pos, batch, pos_q, batch_q, r, k_slots)
    nbr_t = nbr_idx.T                                       # (K, M)

    m = pos_q.shape[0]
    tm = _choose_tile(m, k_slots)
    m_pad = _round_up(m, tm)

    # TODO(synk): the x/pos gathers could move in-kernel via scalar-prefetched
    # neighbor indices to hide them behind the MLP matmuls.
    xj = x_pad[nbr_t].astype(jnp.bfloat16)                  # (K, M, Cx)
    rel = pos[nbr_t] - pos_q[None, :, :]                    # (K, M, 3)
    rel = jnp.pad(rel, ((0, 0), (0, 0), (0, SMALL - 3))).astype(jnp.bfloat16)
    amask = jnp.where(taken.T, 0.0, NEG).astype(jnp.float32)[:, :, None]
    if m_pad != m:
        xj = jnp.pad(xj, ((0, 0), (0, m_pad - m), (0, 0)))
        rel = jnp.pad(rel, ((0, 0), (0, m_pad - m), (0, 0)))
        amask = jnp.pad(amask, ((0, 0), (0, m_pad - m), (0, 0)),
                        constant_values=NEG)

    out = _run_sa(xj, rel, amask, wx, wr, wrest, bias, tm=tm,
                  num_layers=bias.shape[0], k_slots=k_slots)
    # Keep the (M, 128) lane-padded bf16 features for the next stage.
    return out[:m], pos_q, batch_q


def global_and_final(x_pad, pos, *, num_graphs, glob_params, final_params,
                     out_dim):
    wgx, wgp, wg_rest, bg = glob_params
    wf, bf = final_params
    n = x_pad.shape[0]
    p = n // num_graphs
    bp = _round_up(num_graphs, 8)
    # Lay points out (P, B_pad, C) so the per-graph max pool reduces over the
    # leading axis (VPU max chain) and the final MLP gets >=8 rows.
    x3 = x_pad.reshape(num_graphs, p, PAD).transpose(1, 0, 2)
    x3 = jnp.pad(x3, ((0, 0), (0, bp - num_graphs), (0, 0))).astype(jnp.bfloat16)
    pos3 = jnp.pad(pos, ((0, 0), (0, SMALL - 3)))
    pos3 = pos3.reshape(num_graphs, p, SMALL).transpose(1, 0, 2)
    pos3 = jnp.pad(pos3, ((0, 0), (0, bp - num_graphs), (0, 0))).astype(jnp.bfloat16)

    kernel = functools.partial(_glob_final_kernel, n_glob=bg.shape[0],
                               n_final=bf.shape[0], pts=p, bp=bp)
    out = pl.pallas_call(
        kernel,
        out_shape=jax.ShapeDtypeStruct((bp, PAD), jnp.float32),
        in_specs=[pl.BlockSpec(memory_space=pltpu.MemorySpace.VMEM)] * 8,
        out_specs=pl.BlockSpec(memory_space=pltpu.MemorySpace.VMEM),
        compiler_params=pltpu.CompilerParams(vmem_limit_bytes=VMEM_LIMIT),
    )(x3, pos3, wgx, wgp, wg_rest, bg, wf, bf)
    return out[:num_graphs, :out_dim]


def pointnet_forward(x, pos, batch, *, sa_params, glob_params, final_params,
                     num_graphs, final_dim, ratios, radii, cx0_pad):
    x_pad = jnp.pad(x, ((0, 0), (0, cx0_pad - x.shape[1]))).astype(jnp.bfloat16)
    cur = (x_pad, pos, batch)
    for i, params in enumerate(sa_params):
        k_slots = min(64, cur[1].shape[0] // num_graphs)
        cur = sa_module(*cur, num_graphs=num_graphs, ratio=ratios[i],
                        r=radii[i], params=params, k_slots=k_slots)
    x_s, pos_s, _ = cur
    return global_and_final(x_s, pos_s, num_graphs=num_graphs,
                            glob_params=glob_params,
                            final_params=final_params, out_dim=final_dim)


# ----------------------------------------------------------------------------
# Parameter init / packing
# ----------------------------------------------------------------------------
def init_mlp_params(key, specs):
    params = []
    for i in range(len(specs) - 1):
        key, kw, kb = jax.random.split(key, 3)
        w = 0.1 * jax.random.normal(kw, (specs[i], specs[i + 1]), jnp.float32)
        b = 0.01 * jax.random.normal(kb, (specs[i + 1],), jnp.float32)
        params.append((w, b))
    return key, params


def pack_split_mlp(params, *, fx, cx_pad, fold_bn):
    """Pack an MLP whose first-layer input is cat([x(fx), rel/pos(3)]): the
    layer-0 weight rows are split into an x slab (cx_pad,128) and a rel slab
    (SMALL,128); remaining layers are stacked (L-1,128,128).  The eval-mode
    BatchNorm scale is folded into every non-last layer (exact since
    ReLU(s*h) = s*ReLU(h) for s>0).  Weights are cast to bf16 (matmul
    accumulation stays f32 in-kernel); biases stay f32."""
    # TODO(synk): fold actual BN running stats / affine params when non-default.
    num_layers = len(params)

    def scale(l):
        return BN_SCALE if (fold_bn and l < num_layers - 1) else 1.0

    w0, b0 = params[0]
    assert w0.shape[0] == fx + 3
    wx = jnp.zeros((cx_pad, PAD), jnp.float32)
    wx = wx.at[:fx, :w0.shape[1]].set(w0[:fx] * scale(0))
    wr = jnp.zeros((SMALL, PAD), jnp.float32)
    wr = wr.at[:3, :w0.shape[1]].set(w0[fx:] * scale(0))
    bias = jnp.zeros((num_layers, 1, PAD), jnp.float32)
    bias = bias.at[0, 0, :w0.shape[1]].set(b0 * scale(0))
    w_rest = jnp.zeros((max(num_layers - 1, 1), PAD, PAD), jnp.float32)
    for l in range(1, num_layers):
        wl, bl = params[l]
        w_rest = w_rest.at[l - 1, :wl.shape[0], :wl.shape[1]].set(wl * scale(l))
        bias = bias.at[l, 0, :wl.shape[1]].set(bl * scale(l))
    return (wx.astype(jnp.bfloat16), wr.astype(jnp.bfloat16),
            w_rest.astype(jnp.bfloat16), bias)


def pack_plain_mlp(params, *, fold_bn):
    num_layers = len(params)
    w = jnp.zeros((num_layers, PAD, PAD), jnp.float32)
    b = jnp.zeros((num_layers, 1, PAD), jnp.float32)
    for l, (wl, bl) in enumerate(params):
        s = BN_SCALE if (fold_bn and l < num_layers - 1) else 1.0
        w = w.at[l, :wl.shape[0], :wl.shape[1]].set(wl * s)
        b = b.at[l, 0, :wl.shape[1]].set(bl * s)
    return w.astype(jnp.bfloat16), b


if __name__ == "__main__":
    num_graphs = 2
    pts_per_graph = 32
    n = num_graphs * pts_per_graph

    key = jax.random.PRNGKey(0)
    key, kx, kp = jax.random.split(key, 3)
    x = jax.random.normal(kx, (n, 1), jnp.float32)            # data.x
    pos = 4.0 * jax.random.uniform(kp, (n, 3), jnp.float32)   # data.pos
    batch = jnp.repeat(jnp.arange(num_graphs, dtype=jnp.int32), pts_per_graph)

    depth = 2
    ratios = [0.5, 0.5]                                       # sampling_ratio
    radii = [3.0, 3.0]                                        # neighbor_radius
    mlp_specs = [[1 + 3, 16, 32], [32 + 3, 32, 64]]           # mlp_specs_0 / _1
    mlp_specs_glob = [64 + 3, 64, 128]
    mlp_specs_final = [128, 64, 32]

    cx0_pad = _round_up(mlp_specs[0][0] - 3, SMALL)
    sa_params = []
    for i in range(depth):
        key, p = init_mlp_params(key, mlp_specs[i])
        fx = mlp_specs[i][0] - 3
        sa_params.append(pack_split_mlp(
            p, fx=fx, cx_pad=(cx0_pad if i == 0 else PAD), fold_bn=True))
    key, pg = init_mlp_params(key, mlp_specs_glob)
    glob_params = pack_split_mlp(pg, fx=mlp_specs_glob[0] - 3, cx_pad=PAD,
                                 fold_bn=True)
    key, pf = init_mlp_params(key, mlp_specs_final)
    final_params = pack_plain_mlp(pf, fold_bn=False)          # final MLP: norm=None

    fwd = jax.jit(functools.partial(
        pointnet_forward, num_graphs=num_graphs,
        final_dim=mlp_specs_final[-1], ratios=ratios, radii=radii,
        cx0_pad=cx0_pad))

    out = fwd(x, pos, batch, sa_params=sa_params, glob_params=glob_params,
              final_params=final_params)
    out = jax.block_until_ready(out)
    assert out.shape == (num_graphs, mlp_specs_final[-1])
    print("KERNEL_OK")
</pallas_src>

<mosaic_0001>
module attributes {stable_mosaic.version = 11 : i64} {
  func.func @_sa_conv_kernel(%arg0: i32, %arg1: memref<32x16x16xbf16, #tpu.memory_space<vmem>>, %arg2: memref<32x16x16xbf16, #tpu.memory_space<vmem>>, %arg3: memref<32x16x1xf32, #tpu.memory_space<vmem>>, %arg4: memref<16x128xbf16, #tpu.memory_space<vmem>>, %arg5: memref<16x128xbf16, #tpu.memory_space<vmem>>, %arg6: memref<1x128x128xbf16, #tpu.memory_space<vmem>>, %arg7: memref<2x1x128xf32, #tpu.memory_space<vmem>>, %arg8: memref<16x128xbf16, #tpu.memory_space<vmem>>) attributes {dimension_semantics = [#tpu.dimension_semantics<parallel>], iteration_bounds = array<i64: 2>, scalar_prefetch = 0 : i64, scratch_operands = 0 : i64, tpu.core_type = #tpu.core_type<tc>, window_params = [{transform_indices = @transform_0, window_bounds = array<i64: 32, 16, 16>}, {transform_indices = @transform_1, window_bounds = array<i64: 32, 16, 16>}, {transform_indices = @transform_2, window_bounds = array<i64: 32, 16, 1>}, {pipeline_mode = #tpu.pipeline_mode<synchronous>, transform_indices = @transform_3, window_bounds = array<i64: 16, 128>}, {pipeline_mode = #tpu.pipeline_mode<synchronous>, transform_indices = @transform_4, window_bounds = array<i64: 16, 128>}, {pipeline_mode = #tpu.pipeline_mode<synchronous>, transform_indices = @transform_5, window_bounds = array<i64: 1, 128, 128>}, {pipeline_mode = #tpu.pipeline_mode<synchronous>, transform_indices = @transform_6, window_bounds = array<i64: 2, 1, 128>}, {transform_indices = @transform_7, window_bounds = array<i64: 16, 128>}]} {
    %c0 = arith.constant 0 : index
    %c0_0 = arith.constant 0 : index
    %c0_1 = arith.constant 0 : index
    %0 = vector.load %arg1[%c0, %c0_0, %c0_1] : memref<32x16x16xbf16, #tpu.memory_space<vmem>>, vector<32x16x16xbf16>
    %1 = vector.shape_cast %0 : vector<32x16x16xbf16> to vector<512x16xbf16>
    %c0_2 = arith.constant 0 : index
    %c0_3 = arith.constant 0 : index
    %c0_4 = arith.constant 0 : index
    %2 = vector.load %arg2[%c0_2, %c0_3, %c0_4] : memref<32x16x16xbf16, #tpu.memory_space<vmem>>, vector<32x16x16xbf16>
    %3 = vector.shape_cast %2 : vector<32x16x16xbf16> to vector<512x16xbf16>
    %c0_5 = arith.constant 0 : index
    %c0_6 = arith.constant 0 : index
    %4 = vector.load %arg4[%c0_5, %c0_6] : memref<16x128xbf16, #tpu.memory_space<vmem>>, vector<16x128xbf16>
    %cst = arith.constant dense<0.000000e+00> : vector<512x128xf32>
    %5 = tpu.matmul %1, %4, %cst {dimension_numbers = #tpu.dot_dimension_numbers<[1], [0], [0], [1], [0, 0, 1, 1], [], []>} : vector<512x16xbf16>, vector<16x128xbf16>, vector<512x128xf32> -> vector<512x128xf32>
    %c0_7 = arith.constant 0 : index
    %c0_8 = arith.constant 0 : index
    %6 = vector.load %arg5[%c0_7, %c0_8] : memref<16x128xbf16, #tpu.memory_space<vmem>>, vector<16x128xbf16>
    %cst_9 = arith.constant dense<0.000000e+00> : vector<512x128xf32>
    %7 = tpu.matmul %3, %6, %cst_9 {dimension_numbers = #tpu.dot_dimension_numbers<[1], [0], [0], [1], [0, 0, 1, 1], [], []>} : vector<512x16xbf16>, vector<16x128xbf16>, vector<512x128xf32> -> vector<512x128xf32>
    %8 = arith.addf %5, %7 : vector<512x128xf32>
    %c0_10 = arith.constant 0 : index
    %c0_11 = arith.constant 0 : index
    %c0_12 = arith.constant 0 : index
    %9 = vector.load %arg7[%c0_10, %c0_11, %c0_12] : memref<2x1x128xf32, #tpu.memory_space<vmem>>, vector<1x1x128xf32>
    %10 = vector.shape_cast %9 : vector<1x1x128xf32> to vector<1x128xf32>
    %11 = vector.broadcast %10 : vector<1x128xf32> to vector<512x128xf32>
    %12 = arith.addf %8, %11 : vector<512x128xf32>
    %cst_13 = arith.constant 0.000000e+00 : f32
    %13 = vector.broadcast %cst_13 : f32 to vector<512x128xf32>
    %14 = arith.maximumf %12, %13 : vector<512x128xf32>
    %15 = arith.truncf %14 : vector<512x128xf32> to vector<512x128xbf16>
    %c0_14 = arith.constant 0 : index
    %c0_15 = arith.constant 0 : index
    %c0_16 = arith.constant 0 : index
    %16 = vector.load %arg6[%c0_14, %c0_15, %c0_16] : memref<1x128x128xbf16, #tpu.memory_space<vmem>>, vector<1x128x128xbf16>
    %17 = vector.shape_cast %16 : vector<1x128x128xbf16> to vector<128x128xbf16>
    %cst_17 = arith.constant dense<0.000000e+00> : vector<512x128xf32>
    %18 = tpu.matmul %15, %17, %cst_17 {dimension_numbers = #tpu.dot_dimension_numbers<[1], [0], [0], [1], [0, 0, 1, 1], [], []>} : vector<512x128xbf16>, vector<128x128xbf16>, vector<512x128xf32> -> vector<512x128xf32>
    %c1 = arith.constant 1 : index
    %c0_18 = arith.constant 0 : index
    %c0_19 = arith.constant 0 : index
    %19 = vector.load %arg7[%c1, %c0_18, %c0_19] : memref<2x1x128xf32, #tpu.memory_space<vmem>>, vector<1x1x128xf32>
    %20 = vector.shape_cast %19 : vector<1x1x128xf32> to vector<1x128xf32>
    %21 = vector.broadcast %20 : vector<1x128xf32> to vector<512x128xf32>
    %22 = arith.addf %18, %21 : vector<512x128xf32>
    %23 = vector.shape_cast %22 : vector<512x128xf32> to vector<32x16x128xf32>
    %c0_20 = arith.constant 0 : index
    %c0_21 = arith.constant 0 : index
    %c0_22 = arith.constant 0 : index
    %24 = vector.load %arg3[%c0_20, %c0_21, %c0_22] : memref<32x16x1xf32, #tpu.memory_space<vmem>>, vector<32x16x1xf32>
    %25 = vector.broadcast %24 : vector<32x16x1xf32> to vector<32x16x128xf32>
    %26 = arith.addf %23, %25 : vector<32x16x128xf32>
    %cst_23 = arith.constant dense<0xFF800000> : vector<16x128xf32>
    %27 = vector.multi_reduction <maximumf>, %26, %cst_23 [0] : vector<32x16x128xf32> to vector<16x128xf32>
    %28 = arith.truncf %27 : vector<16x128xf32> to vector<16x128xbf16>
    %c0_24 = arith.constant 0 : index
    %c0_25 = arith.constant 0 : index
    %29 = vector.load %arg8[%c0_24, %c0_25] : memref<16x128xbf16, #tpu.memory_space<vmem>>, vector<16x128xbf16>
    tpu.vector_store %arg8[%c0_24, %c0_25], %28 {strides = array<i32>} : memref<16x128xbf16, #tpu.memory_space<vmem>>, vector<16x128xbf16>,
    return
  }
  func.func @transform_0(%arg0: i32) -> (i32, i32, i32) {
    %c0_i32 = arith.constant 0 : i32
    %c0_i32_0 = arith.constant 0 : i32
    %c0_i32_1 = arith.constant 0 : i32
    return %c0_i32, %arg0, %c0_i32_0 : i32, i32, i32
  }
  func.func @transform_1(%arg0: i32) -> (i32, i32, i32) {
    %c0_i32 = arith.constant 0 : i32
    %c0_i32_0 = arith.constant 0 : i32
    %c0_i32_1 = arith.constant 0 : i32
    return %c0_i32, %arg0, %c0_i32_0 : i32, i32, i32
  }
  func.func @transform_2(%arg0: i32) -> (i32, i32, i32) {
    %c0_i32 = arith.constant 0 : i32
    %c0_i32_0 = arith.constant 0 : i32
    %c0_i32_1 = arith.constant 0 : i32
    return %c0_i32, %arg0, %c0_i32_0 : i32, i32, i32
  }
  func.func @transform_3(%arg0: i32) -> (i32, i32) {
    %c0_i32 = arith.constant 0 : i32
    %c0_i32_0 = arith.constant 0 : i32
    %c0_i32_1 = arith.constant 0 : i32
    return %c0_i32, %c0_i32_0 : i32, i32
  }
  func.func @transform_4(%arg0: i32) -> (i32, i32) {
    %c0_i32 = arith.constant 0 : i32
    %c0_i32_0 = arith.constant 0 : i32
    %c0_i32_1 = arith.constant 0 : i32
    return %c0_i32, %c0_i32_0 : i32, i32
  }
  func.func @transform_5(%arg0: i32) -> (i32, i32, i32) {
    %c0_i32 = arith.constant 0 : i32
    %c0_i32_0 = arith.constant 0 : i32
    %c0_i32_1 = arith.constant 0 : i32
    %c0_i32_2 = arith.constant 0 : i32
    return %c0_i32, %c0_i32_0, %c0_i32_1 : i32, i32, i32
  }
  func.func @transform_6(%arg0: i32) -> (i32, i32, i32) {
    %c0_i32 = arith.constant 0 : i32
    %c0_i32_0 = arith.constant 0 : i32
    %c0_i32_1 = arith.constant 0 : i32
    %c0_i32_2 = arith.constant 0 : i32
    return %c0_i32, %c0_i32_0, %c0_i32_1 : i32, i32, i32
  }
  func.func @transform_7(%arg0: i32) -> (i32, i32) {
    %c0_i32 = arith.constant 0 : i32
    %c0_i32_0 = arith.constant 0 : i32
    return %arg0, %c0_i32 : i32, i32
  }
}

module attributes {stable_mosaic.version = 11 : i64} {
  func.func @_sa_conv_kernel(%arg0: i32, %arg1: memref<16x16x128xbf16, #tpu.memory_space<vmem>>, %arg2: memref<16x16x16xbf16, #tpu.memory_space<vmem>>, %arg3: memref<16x16x1xf32, #tpu.memory_space<vmem>>, %arg4: memref<128x128xbf16, #tpu.memory_space<vmem>>, %arg5: memref<16x128xbf16, #tpu.memory_space<vmem>>, %arg6: memref<1x128x128xbf16, #tpu.memory_space<vmem>>, %arg7: memref<2x1x128xf32, #tpu.memory_space<vmem>>, %arg8: memref<16x128xbf16, #tpu.memory_space<vmem>>) attributes {dimension_semantics = [#tpu.dimension_semantics<parallel>], iteration_bounds = array<i64: 1>, scalar_prefetch = 0 : i64, scratch_operands = 0 : i64, tpu.core_type = #tpu.core_type<tc>, window_params = [{transform_indices = @transform_0, window_bounds = array<i64: 16, 16, 128>}, {transform_indices = @transform_1, window_bounds = array<i64: 16, 16, 16>}, {transform_indices = @transform_2, window_bounds = array<i64: 16, 16, 1>}, {pipeline_mode = #tpu.pipeline_mode<synchronous>, transform_indices = @transform_3, window_bounds = array<i64: 128, 128>}, {pipeline_mode = #tpu.pipeline_mode<synchronous>, transform_indices = @transform_4, window_bounds = array<i64: 16, 128>}, {pipeline_mode = #tpu.pipeline_mode<synchronous>, transform_indices = @transform_5, window_bounds = array<i64: 1, 128, 128>}, {pipeline_mode = #tpu.pipeline_mode<synchronous>, transform_indices = @transform_6, window_bounds = array<i64: 2, 1, 128>}, {transform_indices = @transform_7, window_bounds = array<i64: 16, 128>}]} {
    %c0 = arith.constant 0 : index
    %c0_0 = arith.constant 0 : index
    %c0_1 = arith.constant 0 : index
    %0 = vector.load %arg1[%c0, %c0_0, %c0_1] : memref<16x16x128xbf16, #tpu.memory_space<vmem>>, vector<16x16x128xbf16>
    %1 = vector.shape_cast %0 : vector<16x16x128xbf16> to vector<256x128xbf16>
    %c0_2 = arith.constant 0 : index
    %c0_3 = arith.constant 0 : index
    %c0_4 = arith.constant 0 : index
    %2 = vector.load %arg2[%c0_2, %c0_3, %c0_4] : memref<16x16x16xbf16, #tpu.memory_space<vmem>>, vector<16x16x16xbf16>
    %3 = vector.shape_cast %2 : vector<16x16x16xbf16> to vector<256x16xbf16>
    %c0_5 = arith.constant 0 : index
    %c0_6 = arith.constant 0 : index
    %4 = vector.load %arg4[%c0_5, %c0_6] : memref<128x128xbf16, #tpu.memory_space<vmem>>, vector<128x128xbf16>
    %cst = arith.constant dense<0.000000e+00> : vector<256x128xf32>
    %5 = tpu.matmul %1, %4, %cst {dimension_numbers = #tpu.dot_dimension_numbers<[1], [0], [0], [1], [0, 0, 1, 1], [], []>} : vector<256x128xbf16>, vector<128x128xbf16>, vector<256x128xf32> -> vector<256x128xf32>
    %c0_7 = arith.constant 0 : index
    %c0_8 = arith.constant 0 : index
    %6 = vector.load %arg5[%c0_7, %c0_8] : memref<16x128xbf16, #tpu.memory_space<vmem>>, vector<16x128xbf16>
    %cst_9 = arith.constant dense<0.000000e+00> : vector<256x128xf32>
    %7 = tpu.matmul %3, %6, %cst_9 {dimension_numbers = #tpu.dot_dimension_numbers<[1], [0], [0], [1], [0, 0, 1, 1], [], []>} : vector<256x16xbf16>, vector<16x128xbf16>, vector<256x128xf32> -> vector<256x128xf32>
    %8 = arith.addf %5, %7 : vector<256x128xf32>
    %c0_10 = arith.constant 0 : index
    %c0_11 = arith.constant 0 : index
    %c0_12 = arith.constant 0 : index
    %9 = vector.load %arg7[%c0_10, %c0_11, %c0_12] : memref<2x1x128xf32, #tpu.memory_space<vmem>>, vector<1x1x128xf32>
    %10 = vector.shape_cast %9 : vector<1x1x128xf32> to vector<1x128xf32>
    %11 = vector.broadcast %10 : vector<1x128xf32> to vector<256x128xf32>
    %12 = arith.addf %8, %11 : vector<256x128xf32>
    %cst_13 = arith.constant 0.000000e+00 : f32
    %13 = vector.broadcast %cst_13 : f32 to vector<256x128xf32>
    %14 = arith.maximumf %12, %13 : vector<256x128xf32>
    %15 = arith.truncf %14 : vector<256x128xf32> to vector<256x128xbf16>
    %c0_14 = arith.constant 0 : index
    %c0_15 = arith.constant 0 : index
    %c0_16 = arith.constant 0 : index
    %16 = vector.load %arg6[%c0_14, %c0_15, %c0_16] : memref<1x128x128xbf16, #tpu.memory_space<vmem>>, vector<1x128x128xbf16>
    %17 = vector.shape_cast %16 : vector<1x128x128xbf16> to vector<128x128xbf16>
    %cst_17 = arith.constant dense<0.000000e+00> : vector<256x128xf32>
    %18 = tpu.matmul %15, %17, %cst_17 {dimension_numbers = #tpu.dot_dimension_numbers<[1], [0], [0], [1], [0, 0, 1, 1], [], []>} : vector<256x128xbf16>, vector<128x128xbf16>, vector<256x128xf32> -> vector<256x128xf32>
    %c1 = arith.constant 1 : index
    %c0_18 = arith.constant 0 : index
    %c0_19 = arith.constant 0 : index
    %19 = vector.load %arg7[%c1, %c0_18, %c0_19] : memref<2x1x128xf32, #tpu.memory_space<vmem>>, vector<1x1x128xf32>
    %20 = vector.shape_cast %19 : vector<1x1x128xf32> to vector<1x128xf32>
    %21 = vector.broadcast %20 : vector<1x128xf32> to vector<256x128xf32>
    %22 = arith.addf %18, %21 : vector<256x128xf32>
    %23 = vector.shape_cast %22 : vector<256x128xf32> to vector<16x16x128xf32>
    %c0_20 = arith.constant 0 : index
    %c0_21 = arith.constant 0 : index
    %c0_22 = arith.constant 0 : index
    %24 = vector.load %arg3[%c0_20, %c0_21, %c0_22] : memref<16x16x1xf32, #tpu.memory_space<vmem>>, vector<16x16x1xf32>
    %25 = vector.broadcast %24 : vector<16x16x1xf32> to vector<16x16x128xf32>
    %26 = arith.addf %23, %25 : vector<16x16x128xf32>
    %cst_23 = arith.constant dense<0xFF800000> : vector<16x128xf32>
    %27 = vector.multi_reduction <maximumf>, %26, %cst_23 [0] : vector<16x16x128xf32> to vector<16x128xf32>
    %28 = arith.truncf %27 : vector<16x128xf32> to vector<16x128xbf16>
    %c0_24 = arith.constant 0 : index
    %c0_25 = arith.constant 0 : index
    %29 = vector.load %arg8[%c0_24, %c0_25] : memref<16x128xbf16, #tpu.memory_space<vmem>>, vector<16x128xbf16>
    tpu.vector_store %arg8[%c0_24, %c0_25], %28 {strides = array<i32>} : memref<16x128xbf16, #tpu.memory_space<vmem>>, vector<16x128xbf16>,
    return
  }
  func.func @transform_0(%arg0: i32) -> (i32, i32, i32) {
    %c0_i32 = arith.constant 0 : i32
    %c0_i32_0 = arith.constant 0 : i32
    %c0_i32_1 = arith.constant 0 : i32
    return %c0_i32, %arg0, %c0_i32_0 : i32, i32, i32
  }
  func.func @transform_1(%arg0: i32) -> (i32, i32, i32) {
    %c0_i32 = arith.constant 0 : i32
    %c0_i32_0 = arith.constant 0 : i32
    %c0_i32_1 = arith.constant 0 : i32
    return %c0_i32, %arg0, %c0_i32_0 : i32, i32, i32
  }
  func.func @transform_2(%arg0: i32) -> (i32, i32, i32) {
    %c0_i32 = arith.constant 0 : i32
    %c0_i32_0 = arith.constant 0 : i32
    %c0_i32_1 = arith.constant 0 : i32
    return %c0_i32, %arg0, %c0_i32_0 : i32, i32, i32
  }
  func.func @transform_3(%arg0: i32) -> (i32, i32) {
    %c0_i32 = arith.constant 0 : i32
    %c0_i32_0 = arith.constant 0 : i32
    %c0_i32_1 = arith.constant 0 : i32
    return %c0_i32, %c0_i32_0 : i32, i32
  }
  func.func @transform_4(%arg0: i32) -> (i32, i32) {
    %c0_i32 = arith.constant 0 : i32
    %c0_i32_0 = arith.constant 0 : i32
    %c0_i32_1 = arith.constant 0 : i32
    return %c0_i32, %c0_i32_0 : i32, i32
  }
  func.func @transform_5(%arg0: i32) -> (i32, i32, i32) {
    %c0_i32 = arith.constant 0 : i32
    %c0_i32_0 = arith.constant 0 : i32
    %c0_i32_1 = arith.constant 0 : i32
    %c0_i32_2 = arith.constant 0 : i32
    return %c0_i32, %c0_i32_0, %c0_i32_1 : i32, i32, i32
  }
  func.func @transform_6(%arg0: i32) -> (i32, i32, i32) {
    %c0_i32 = arith.constant 0 : i32
    %c0_i32_0 = arith.constant 0 : i32
    %c0_i32_1 = arith.constant 0 : i32
    %c0_i32_2 = arith.constant 0 : i32
    return %c0_i32, %c0_i32_0, %c0_i32_1 : i32, i32, i32
  }
  func.func @transform_7(%arg0: i32) -> (i32, i32) {
    %c0_i32 = arith.constant 0 : i32
    %c0_i32_0 = arith.constant 0 : i32
    return %arg0, %c0_i32 : i32, i32
  }
}

module attributes {stable_mosaic.version = 11 : i64} {
  func.func @_glob_final_kernel(%arg0: memref<8x8x128xbf16, #tpu.memory_space<vmem>>, %arg1: memref<8x8x16xbf16, #tpu.memory_space<vmem>>, %arg2: memref<128x128xbf16, #tpu.memory_space<vmem>>, %arg3: memref<16x128xbf16, #tpu.memory_space<vmem>>, %arg4: memref<1x128x128xbf16, #tpu.memory_space<vmem>>, %arg5: memref<2x1x128xf32, #tpu.memory_space<vmem>>, %arg6: memref<2x128x128xbf16, #tpu.memory_space<vmem>>, %arg7: memref<2x1x128xf32, #tpu.memory_space<vmem>>, %arg8: memref<8x128xf32, #tpu.memory_space<vmem>>) attributes {dimension_semantics = [], scalar_prefetch = 0 : i64, scratch_operands = 0 : i64, tpu.core_type = #tpu.core_type<tc>} {
    %c0 = arith.constant 0 : index
    %c0_0 = arith.constant 0 : index
    %c0_1 = arith.constant 0 : index
    %0 = vector.load %arg0[%c0, %c0_0, %c0_1] : memref<8x8x128xbf16, #tpu.memory_space<vmem>>, vector<8x8x128xbf16>
    %1 = vector.shape_cast %0 : vector<8x8x128xbf16> to vector<64x128xbf16>
    %c0_2 = arith.constant 0 : index
    %c0_3 = arith.constant 0 : index
    %c0_4 = arith.constant 0 : index
    %2 = vector.load %arg1[%c0_2, %c0_3, %c0_4] : memref<8x8x16xbf16, #tpu.memory_space<vmem>>, vector<8x8x16xbf16>
    %3 = vector.shape_cast %2 : vector<8x8x16xbf16> to vector<64x16xbf16>
    %c0_5 = arith.constant 0 : index
    %c0_6 = arith.constant 0 : index
    %4 = vector.load %arg2[%c0_5, %c0_6] : memref<128x128xbf16, #tpu.memory_space<vmem>>, vector<128x128xbf16>
    %cst = arith.constant dense<0.000000e+00> : vector<64x128xf32>
    %5 = tpu.matmul %1, %4, %cst {dimension_numbers = #tpu.dot_dimension_numbers<[1], [0], [0], [1], [0, 0, 1, 1], [], []>} : vector<64x128xbf16>, vector<128x128xbf16>, vector<64x128xf32> -> vector<64x128xf32>
    %c0_7 = arith.constant 0 : index
    %c0_8 = arith.constant 0 : index
    %6 = vector.load %arg3[%c0_7, %c0_8] : memref<16x128xbf16, #tpu.memory_space<vmem>>, vector<16x128xbf16>
    %cst_9 = arith.constant dense<0.000000e+00> : vector<64x128xf32>
    %7 = tpu.matmul %3, %6, %cst_9 {dimension_numbers = #tpu.dot_dimension_numbers<[1], [0], [0], [1], [0, 0, 1, 1], [], []>} : vector<64x16xbf16>, vector<16x128xbf16>, vector<64x128xf32> -> vector<64x128xf32>
    %8 = arith.addf %5, %7 : vector<64x128xf32>
    %c0_10 = arith.constant 0 : index
    %c0_11 = arith.constant 0 : index
    %c0_12 = arith.constant 0 : index
    %9 = vector.load %arg5[%c0_10, %c0_11, %c0_12] : memref<2x1x128xf32, #tpu.memory_space<vmem>>, vector<1x1x128xf32>
    %10 = vector.shape_cast %9 : vector<1x1x128xf32> to vector<1x128xf32>
    %11 = vector.broadcast %10 : vector<1x128xf32> to vector<64x128xf32>
    %12 = arith.addf %8, %11 : vector<64x128xf32>
    %cst_13 = arith.constant 0.000000e+00 : f32
    %13 = vector.broadcast %cst_13 : f32 to vector<64x128xf32>
    %14 = arith.maximumf %12, %13 : vector<64x128xf32>
    %15 = arith.truncf %14 : vector<64x128xf32> to vector<64x128xbf16>
    %c0_14 = arith.constant 0 : index
    %c0_15 = arith.constant 0 : index
    %c0_16 = arith.constant 0 : index
    %16 = vector.load %arg4[%c0_14, %c0_15, %c0_16] : memref<1x128x128xbf16, #tpu.memory_space<vmem>>, vector<1x128x128xbf16>
    %17 = vector.shape_cast %16 : vector<1x128x128xbf16> to vector<128x128xbf16>
    %cst_17 = arith.constant dense<0.000000e+00> : vector<64x128xf32>
    %18 = tpu.matmul %15, %17, %cst_17 {dimension_numbers = #tpu.dot_dimension_numbers<[1], [0], [0], [1], [0, 0, 1, 1], [], []>} : vector<64x128xbf16>, vector<128x128xbf16>, vector<64x128xf32> -> vector<64x128xf32>
    %c1 = arith.constant 1 : index
    %c0_18 = arith.constant 0 : index
    %c0_19 = arith.constant 0 : index
    %19 = vector.load %arg5[%c1, %c0_18, %c0_19] : memref<2x1x128xf32, #tpu.memory_space<vmem>>, vector<1x1x128xf32>
    %20 = vector.shape_cast %19 : vector<1x1x128xf32> to vector<1x128xf32>
    %21 = vector.broadcast %20 : vector<1x128xf32> to vector<64x128xf32>
    %22 = arith.addf %18, %21 : vector<64x128xf32>
    %23 = vector.shape_cast %22 : vector<64x128xf32> to vector<8x8x128xf32>
    %cst_20 = arith.constant dense<0xFF800000> : vector<8x128xf32>
    %24 = vector.multi_reduction <maximumf>, %23, %cst_20 [0] : vector<8x8x128xf32> to vector<8x128xf32>
    %25 = arith.truncf %24 : vector<8x128xf32> to vector<8x128xbf16>
    %c0_21 = arith.constant 0 : index
    %c0_22 = arith.constant 0 : index
    %c0_23 = arith.constant 0 : index
    %26 = vector.load %arg6[%c0_21, %c0_22, %c0_23] : memref<2x128x128xbf16, #tpu.memory_space<vmem>>, vector<1x128x128xbf16>
    %27 = vector.shape_cast %26 : vector<1x128x128xbf16> to vector<128x128xbf16>
    %cst_24 = arith.constant dense<0.000000e+00> : vector<8x128xf32>
    %28 = tpu.matmul %25, %27, %cst_24 {dimension_numbers = #tpu.dot_dimension_numbers<[1], [0], [0], [1], [0, 0, 1, 1], [], []>} : vector<8x128xbf16>, vector<128x128xbf16>, vector<8x128xf32> -> vector<8x128xf32>
    %c0_25 = arith.constant 0 : index
    %c0_26 = arith.constant 0 : index
    %c0_27 = arith.constant 0 : index
    %29 = vector.load %arg7[%c0_25, %c0_26, %c0_27] : memref<2x1x128xf32, #tpu.memory_space<vmem>>, vector<1x1x128xf32>
    %30 = vector.shape_cast %29 : vector<1x1x128xf32> to vector<1x128xf32>
    %31 = vector.broadcast %30 : vector<1x128xf32> to vector<8x128xf32>
    %32 = arith.addf %28, %31 : vector<8x128xf32>
    %cst_28 = arith.constant 0.000000e+00 : f32
    %33 = vector.broadcast %cst_28 : f32 to vector<8x128xf32>
    %34 = arith.maximumf %32, %33 : vector<8x128xf32>
    %35 = arith.truncf %34 : vector<8x128xf32> to vector<8x128xbf16>
    %c1_29 = arith.constant 1 : index
    %c0_30 = arith.constant 0 : index
    %c0_31 = arith.constant 0 : index
    %36 = vector.load %arg6[%c1_29, %c0_30, %c0_31] : memref<2x128x128xbf16, #tpu.memory_space<vmem>>, vector<1x128x128xbf16>
    %37 = vector.shape_cast %36 : vector<1x128x128xbf16> to vector<128x128xbf16>
    %cst_32 = arith.constant dense<0.000000e+00> : vector<8x128xf32>
    %38 = tpu.matmul %35, %37, %cst_32 {dimension_numbers = #tpu.dot_dimension_numbers<[1], [0], [0], [1], [0, 0, 1, 1], [], []>} : vector<8x128xbf16>, vector<128x128xbf16>, vector<8x128xf32> -> vector<8x128xf32>
    %c1_33 = arith.constant 1 : index
    %c0_34 = arith.constant 0 : index
    %c0_35 = arith.constant 0 : index
    %39 = vector.load %arg7[%c1_33, %c0_34, %c0_35] : memref<2x1x128xf32, #tpu.memory_space<vmem>>, vector<1x1x128xf32>
    %40 = vector.shape_cast %39 : vector<1x1x128xf32> to vector<1x128xf32>
    %41 = vector.broadcast %40 : vector<1x128xf32> to vector<8x128xf32>
    %42 = arith.addf %38, %41 : vector<8x128xf32>
    %c0_36 = arith.constant 0 : index
    %c0_37 = arith.constant 0 : index
    %43 = vector.load %arg8[%c0_36, %c0_37] : memref<8x128xf32, #tpu.memory_space<vmem>>, vector<8x128xf32>
    tpu.vector_store %arg8[%c0_36, %c0_37], %42 {strides = array<i32>} : memref<8x128xf32, #tpu.memory_space<vmem>>, vector<8x128xf32>,
    return
  }
}

</mosaic_0001>

<bundles_post_ra>
// kernel: pointnet_forward.3
= control target key start
LH: loop header
LB: loop body
LE: loop exit
PB: predicated region body
PF: predicated region fallthrough
CT: control target
= control target key end

     0   :  { %s4245_s24 = smov 0   ;;  %s4247_s25 = smov 0   ;;  %s5291_s0 = inlined_call_operand.vmem [shape: bf16[32,32,16], index: 0, kind: input, shape index: {}]   ;;  %s5292_s1 = inlined_call_operand.vmem [shape: bf16[32,32,16], index: 1, kind: input, shape index: {}]   ;;  %s5293_s2 = inlined_call_operand.vmem [shape: f32[32,32,1], index: 2, kind: input, shape index: {}]   ;;  %s5294_s3 = inlined_call_operand.vmem [shape: bf16[16,128], index: 3, kind: input, shape index: {}]   ;;  %s5295_s4 = inlined_call_operand.vmem [shape: bf16[16,128], index: 4, kind: input, shape index: {}]   ;;  %s5296_s5 = inlined_call_operand.vmem [shape: bf16[1,128,128], index: 5, kind: input, shape index: {}]   ;;  %s5297_s6 = inlined_call_operand.vmem [shape: f32[2,1,128], index: 6, kind: input, shape index: {}]   ;;  %s5298_s7 = inlined_call_operand.vmem [shape: bf16[32,128], index: 7, kind: output, shape index: {}]  }
   0x1   :  { %s4249_s26 = smov 0  }
   0x2 LB: > { %s3585_s27 = sadd.s32 4294967295, %s4202_s26   ;;  %s4262_s28 = sadd.s32 1, %s4202_s26   ;;  %s4202_s26 = sphi %s4249_s26, %s5339_s26   ;;  %s4198_s25 = sphi %s4247_s25, %s5338_s25   ;;  %s4194_s24 = sphi %s4245_s24, %s5337_s24  }
   0x3   : > { %s21_s29 = ssub.s32 %s4202_s26, %s4262_s28  ;;  %s24_s30 = sadd.s32 1, %s4198_s25 }
   0x4   : > { %p22_p0 = scmp.eq.s32.totalorder %s21_s29, 0  ;;  %p31_p1 = scmp.ne.s32.totalorder %s4198_s25, %s4194_s24 }
   0x5   : > { %p32_p2 = scmp.eq.s32.totalorder %s4202_s26, 0  ;;  %p3588_p4 = scmp.ge.s32.totalorder %s4202_s26, 2 }
   0x6   : > { %s4271_s8 = scalar_select %p22_p0, %s4198_s25, %s24_s30  }
   0x7   : > { %p4273_p3 = por %p32_p2, %p31_p1  ;;  %231 = sbr.rel (%p3588_p4) target bundleno = 88 (0x58), region = 32 }
   0xc   : > { %234 = sbr.rel (!%p4273_p3) target bundleno = 32 (0x20), region = 36  ;;  %s236_s10 = sand.u32 (%p4273_p3), 1, %s4198_s25  }
   0xd   : > { %s3749_s11 = sshll.u32 (%p4273_p3), %s4202_s26, 3  ;;  %s3589_s12 = sshll.u32 (%p4273_p3), %s236_s10, 8 }
   0xe   : > { %s4285_s15 = scalar_lea.vmem (%p4273_p3), %s5291_s0, %s3749_s11  ;;  %s4290_s16 = scalar_lea.vmem (%p4273_p3), [#allocation2], %s3589_s12 }
   0xf   : > { %v258_v0 = vld [vmem:[%s4285_s15] sm:$0xff] (%p4273_p3)   ;;  %v262_v1 = vld [vmem:[%s4285_s15 + $0x10] sm:$0xff] (%p4273_p3)  }
  0x10   : > { %v266_v2 = vld [vmem:[%s4285_s15 + $0x20] sm:$0xff] (%p4273_p3)   ;;  %259 = vst [vmem:[%s4290_s16] sm:$0xff] (%p4273_p3), %v258_v0   ;;  %263 = vst [vmem:[%s4290_s16 + $0x8] sm:$0xff] (%p4273_p3), %v262_v1   ;;  %v270_v3 = vld [vmem:[%s4285_s15 + $0x30] sm:$0xff] (%p4273_p3)  }
  0x11   : > { %267 = vst [vmem:[%s4290_s16 + $0x10] sm:$0xff] %v266_v2   ;;  %v274_v4 = vld [vmem:[%s4285_s15 + $0x40] sm:$0xff]   ;;  %v278_v5 = vld [vmem:[%s4285_s15 + $0x50] sm:$0xff]   ;;  %271 = vst [vmem:[%s4290_s16 + $0x18] sm:$0xff] %v270_v3  }
  0x12   : > { %275 = vst [vmem:[%s4290_s16 + $0x20] sm:$0xff] %v274_v4   ;;  %279 = vst [vmem:[%s4290_s16 + $0x28] sm:$0xff] %v278_v5   ;;  %v282_v6 = vld [vmem:[%s4285_s15 + $0x60] sm:$0xff]   ;;  %v286_v7 = vld [vmem:[%s4285_s15 + $0x70] sm:$0xff]  }
  0x13   : > { %v290_v8 = vld [vmem:[%s4285_s15 + $0x80] sm:$0xff]   ;;  %283 = vst [vmem:[%s4290_s16 + $0x30] sm:$0xff] %v282_v6   ;;  %287 = vst [vmem:[%s4290_s16 + $0x38] sm:$0xff] %v286_v7   ;;  %v294_v9 = vld [vmem:[%s4285_s15 + $0x90] sm:$0xff]  }
  0x14   : > { %291 = vst [vmem:[%s4290_s16 + $0x40] sm:$0xff] %v290_v8   ;;  %v298_v10 = vld [vmem:[%s4285_s15 + $0xa0] sm:$0xff]   ;;  %v302_v11 = vld [vmem:[%s4285_s15 + $0xb0] sm:$0xff]   ;;  %295 = vst [vmem:[%s4290_s16 + $0x48] sm:$0xff] %v294_v9  }
  0x15   : > { %299 = vst [vmem:[%s4290_s16 + $0x50] sm:$0xff] %v298_v10   ;;  %303 = vst [vmem:[%s4290_s16 + $0x58] sm:$0xff] %v302_v11   ;;  %v306_v12 = vld [vmem:[%s4285_s15 + $0xc0] sm:$0xff]   ;;  %v310_v13 = vld [vmem:[%s4285_s15 + $0xd0] sm:$0xff]  }
  0x16   : > { %v314_v14 = vld [vmem:[%s4285_s15 + $0xe0] sm:$0xff]   ;;  %307 = vst [vmem:[%s4290_s16 + $0x60] sm:$0xff] %v306_v12   ;;  %311 = vst [vmem:[%s4290_s16 + $0x68] sm:$0xff] %v310_v13   ;;  %v318_v15 = vld [vmem:[%s4285_s15 + $0xf0] sm:$0xff]  }
  0x17   : > { %315 = vst [vmem:[%s4290_s16 + $0x70] sm:$0xff] %v314_v14   ;;  %v322_v16 = vld [vmem:[%s4285_s15 + $0x100] sm:$0xff]   ;;  %v326_v17 = vld [vmem:[%s4285_s15 + $0x110] sm:$0xff]   ;;  %319 = vst [vmem:[%s4290_s16 + $0x78] sm:$0xff] %v318_v15  }
  0x18   : > { %323 = vst [vmem:[%s4290_s16 + $0x80] sm:$0xff] %v322_v16   ;;  %327 = vst [vmem:[%s4290_s16 + $0x88] sm:$0xff] %v326_v17   ;;  %v330_v18 = vld [vmem:[%s4285_s15 + $0x120] sm:$0xff]   ;;  %v334_v19 = vld [vmem:[%s4285_s15 + $0x130] sm:$0xff]  }
  0x19   : > { %v338_v20 = vld [vmem:[%s4285_s15 + $0x140] sm:$0xff]   ;;  %331 = vst [vmem:[%s4290_s16 + $0x90] sm:$0xff] %v330_v18   ;;  %335 = vst [vmem:[%s4290_s16 + $0x98] sm:$0xff] %v334_v19   ;;  %v342_v21 = vld [vmem:[%s4285_s15 + $0x150] sm:$0xff]  }
  0x1a   : > { %339 = vst [vmem:[%s4290_s16 + $0xa0] sm:$0xff] %v338_v20   ;;  %v346_v22 = vld [vmem:[%s4285_s15 + $0x160] sm:$0xff]   ;;  %v350_v23 = vld [vmem:[%s4285_s15 + $0x170] sm:$0xff]   ;;  %343 = vst [vmem:[%s4290_s16 + $0xa8] sm:$0xff] %v342_v21  }
  0x1b   : > { %347 = vst [vmem:[%s4290_s16 + $0xb0] sm:$0xff] %v346_v22   ;;  %351 = vst [vmem:[%s4290_s16 + $0xb8] sm:$0xff] %v350_v23   ;;  %v354_v24 = vld [vmem:[%s4285_s15 + $0x180] sm:$0xff]   ;;  %v358_v25 = vld [vmem:[%s4285_s15 + $0x190] sm:$0xff]  }
  0x1c   : > { %v362_v26 = vld [vmem:[%s4285_s15 + $0x1a0] sm:$0xff]   ;;  %355 = vst [vmem:[%s4290_s16 + $0xc0] sm:$0xff] %v354_v24   ;;  %359 = vst [vmem:[%s4290_s16 + $0xc8] sm:$0xff] %v358_v25   ;;  %v366_v27 = vld [vmem:[%s4285_s15 + $0x1b0] sm:$0xff]  }
  0x1d   : > { %363 = vst [vmem:[%s4290_s16 + $0xd0] sm:$0xff] %v362_v26   ;;  %v370_v28 = vld [vmem:[%s4285_s15 + $0x1c0] sm:$0xff]   ;;  %v374_v29 = vld [vmem:[%s4285_s15 + $0x1d0] sm:$0xff]   ;;  %367 = vst [vmem:[%s4290_s16 + $0xd8] sm:$0xff] %v366_v27  }
  0x1e   : > { %371 = vst [vmem:[%s4290_s16 + $0xe0] sm:$0xff] %v370_v28   ;;  %375 = vst [vmem:[%s4290_s16 + $0xe8] sm:$0xff] %v374_v29   ;;  %v378_v30 = vld [vmem:[%s4285_s15 + $0x1e0] sm:$0xff]   ;;  %v382_v31 = vld [vmem:[%s4285_s15 + $0x1f0] sm:$0xff]  }
  0x1f   : > { %379 = vst [vmem:[%s4290_s16 + $0xf0] sm:$0xff] %v378_v30   ;;  %383 = vst [vmem:[%s4290_s16 + $0xf8] sm:$0xff] %v382_v31  }
  0x20 PF: > { %537 = sbr.rel (!%p4273_p3) target bundleno = 52 (0x34), region = 77  ;;  %s539_s17 = sand.u32 (%p4273_p3), 1, %s4198_s25  }
  0x21   : > { %s3750_s18 = sshll.u32 (%p4273_p3), %s4202_s26, 3  ;;  %s3592_s19 = sshll.u32 (%p4273_p3), %s539_s17, 8 }
  0x22   : > { %s4360_s22 = scalar_lea.vmem (%p4273_p3), %s5292_s1, %s3750_s18  ;;  %s4365_s23 = scalar_lea.vmem (%p4273_p3), [#allocation3], %s3592_s19 }
  0x23   : > { %v561_v32 = vld [vmem:[%s4360_s22] sm:$0xff] (%p4273_p3)   ;;  %v565_v33 = vld [vmem:[%s4360_s22 + $0x10] sm:$0xff] (%p4273_p3)  }
  0x24   : > { %v569_v34 = vld [vmem:[%s4360_s22 + $0x20] sm:$0xff] (%p4273_p3)   ;;  %562 = vst [vmem:[%s4365_s23] sm:$0xff] (%p4273_p3), %v561_v32   ;;  %566 = vst [vmem:[%s4365_s23 + $0x8] sm:$0xff] (%p4273_p3), %v565_v33   ;;  %v573_v35 = vld [vmem:[%s4360_s22 + $0x30] sm:$0xff] (%p4273_p3)  }
  0x25   : > { %570 = vst [vmem:[%s4365_s23 + $0x10] sm:$0xff] %v569_v34   ;;  %v577_v36 = vld [vmem:[%s4360_s22 + $0x40] sm:$0xff]   ;;  %v581_v37 = vld [vmem:[%s4360_s22 + $0x50] sm:$0xff]   ;;  %574 = vst [vmem:[%s4365_s23 + $0x18] sm:$0xff] %v573_v35  }
  0x26   : > { %578 = vst [vmem:[%s4365_s23 + $0x20] sm:$0xff] %v577_v36   ;;  %582 = vst [vmem:[%s4365_s23 + $0x28] sm:$0xff] %v581_v37   ;;  %v585_v38 = vld [vmem:[%s4360_s22 + $0x60] sm:$0xff]   ;;  %v589_v39 = vld [vmem:[%s4360_s22 + $0x70] sm:$0xff]  }
  0x27   : > { %v593_v40 = vld [vmem:[%s4360_s22 + $0x80] sm:$0xff]   ;;  %586 = vst [vmem:[%s4365_s23 + $0x30] sm:$0xff] %v585_v38   ;;  %590 = vst [vmem:[%s4365_s23 + $0x38] sm:$0xff] %v589_v39   ;;  %v597_v41 = vld [vmem:[%s4360_s22 + $0x90] sm:$0xff]  }
  0x28   : > { %594 = vst [vmem:[%s4365_s23 + $0x40] sm:$0xff] %v593_v40   ;;  %v601_v42 = vld [vmem:[%s4360_s22 + $0xa0] sm:$0xff]   ;;  %v605_v43 = vld [vmem:[%s4360_s22 + $0xb0] sm:$0xff]   ;;  %598 = vst [vmem:[%s4365_s23 + $0x48] sm:$0xff] %v597_v41  }
  0x29   : > { %602 = vst [vmem:[%s4365_s23 + $0x50] sm:$0xff] %v601_v42   ;;  %606 = vst [vmem:[%s4365_s23 + $0x58] sm:$0xff] %v605_v43   ;;  %v609_v44 = vld [vmem:[%s4360_s22 + $0xc0] sm:$0xff]   ;;  %v613_v45 = vld [vmem:[%s4360_s22 + $0xd0] sm:$0xff]  }
  0x2a   : > { %v617_v46 = vld [vmem:[%s4360_s22 + $0xe0] sm:$0xff]   ;;  %610 = vst [vmem:[%s4365_s23 + $0x60] sm:$0xff] %v609_v44   ;;  %614 = vst [vmem:[%s4365_s23 + $0x68] sm:$0xff] %v613_v45   ;;  %v621_v47 = vld [vmem:[%s4360_s22 + $0xf0] sm:$0xff]  }
  0x2b   : > { %618 = vst [vmem:[%s4365_s23 + $0x70] sm:$0xff] %v617_v46   ;;  %v625_v48 = vld [vmem:[%s4360_s22 + $0x100] sm:$0xff]   ;;  %v629_v49 = vld [vmem:[%s4360_s22 + $0x110] sm:$0xff]   ;;  %622 = vst [vmem:[%s4365_s23 + $0x78] sm:$0xff] %v621_v47  }
  0x2c   : > { %626 = vst [vmem:[%s4365_s23 + $0x80] sm:$0xff] %v625_v48   ;;  %630 = vst [vmem:[%s4365_s23 + $0x88] sm:$0xff] %v629_v49   ;;  %v633_v50 = vld [vmem:[%s4360_s22 + $0x120] sm:$0xff]   ;;  %v637_v51 = vld [vmem:[%s4360_s22 + $0x130] sm:$0xff]  }
  0x2d   : > { %v641_v52 = vld [vmem:[%s4360_s22 + $0x140] sm:$0xff]   ;;  %634 = vst [vmem:[%s4365_s23 + $0x90] sm:$0xff] %v633_v50   ;;  %638 = vst [vmem:[%s4365_s23 + $0x98] sm:$0xff] %v637_v51   ;;  %v645_v53 = vld [vmem:[%s4360_s22 + $0x150] sm:$0xff]  }
  0x2e   : > { %642 = vst [vmem:[%s4365_s23 + $0xa0] sm:$0xff] %v641_v52   ;;  %v649_v54 = vld [vmem:[%s4360_s22 + $0x160] sm:$0xff]   ;;  %v653_v55 = vld [vmem:[%s4360_s22 + $0x170] sm:$0xff]   ;;  %646 = vst [vmem:[%s4365_s23 + $0xa8] sm:$0xff] %v645_v53  }
  0x2f   : > { %650 = vst [vmem:[%s4365_s23 + $0xb0] sm:$0xff] %v649_v54   ;;  %654 = vst [vmem:[%s4365_s23 + $0xb8] sm:$0xff] %v653_v55   ;;  %v657_v56 = vld [vmem:[%s4360_s22 + $0x180] sm:$0xff]   ;;  %v661_v57 = vld [vmem:[%s4360_s22 + $0x190] sm:$0xff]  }
  0x30   : > { %v665_v58 = vld [vmem:[%s4360_s22 + $0x1a0] sm:$0xff]   ;;  %658 = vst [vmem:[%s4365_s23 + $0xc0] sm:$0xff] %v657_v56   ;;  %662 = vst [vmem:[%s4365_s23 + $0xc8] sm:$0xff] %v661_v57   ;;  %v669_v59 = vld [vmem:[%s4360_s22 + $0x1b0] sm:$0xff]  }
  0x31   : > { %666 = vst [vmem:[%s4365_s23 + $0xd0] sm:$0xff] %v665_v58   ;;  %v673_v60 = vld [vmem:[%s4360_s22 + $0x1c0] sm:$0xff]   ;;  %v677_v61 = vld [vmem:[%s4360_s22 + $0x1d0] sm:$0xff]   ;;  %670 = vst [vmem:[%s4365_s23 + $0xd8] sm:$0xff] %v669_v59  }
  0x32   : > { %674 = vst [vmem:[%s4365_s23 + $0xe0] sm:$0xff] %v673_v60   ;;  %678 = vst [vmem:[%s4365_s23 + $0xe8] sm:$0xff] %v677_v61   ;;  %v681_v62 = vld [vmem:[%s4360_s22 + $0x1e0] sm:$0xff]   ;;  %v685_v63 = vld [vmem:[%s4360_s22 + $0x1f0] sm:$0xff]  }
  0x33   : > { %682 = vst [vmem:[%s4365_s23 + $0xf0] sm:$0xff] %v681_v62   ;;  %686 = vst [vmem:[%s4365_s23 + $0xf8] sm:$0xff] %v685_v63  }
  0x34 PF: > { %840 = sbr.rel (!%p4273_p3) target bundleno = 88 (0x58), region = 118  ;;  %s842_s29 = sand.u32 (%p4273_p3), 1, %s4198_s25  }
  0x35   : > { %s3751_s30 = sshll.u32 (%p4273_p3), %s4202_s26, 4  ;;  %s3595_s10 = sshll.u32 (%p4273_p3), %s842_s29, 9 }
  0x36   : > { %s4435_s13 = scalar_lea.vmem (%p4273_p3), %s5293_s2, %s3751_s30  ;;  %s4440_s9 = scalar_lea.vmem (%p4273_p3), [#allocation4], %s3595_s10 }
  0x37   : > { %v1002_v0 = vld [vmem:[%s4435_s13] sm:$0xff] (%p4273_p3)  ;;  %v1004_v1 = vld [vmem:[%s4435_s13 + $0x8] sm:$0xff] (%p4273_p3) }
  0x38   : > { %v1006_v2 = vld [vmem:[%s4435_s13 + $0x20] sm:$0xff] (%p4273_p3)  ;;  %1003 = vst [vmem:[%s4440_s9] sm:$0xff] (%p4273_p3), %v1002_v0  ;;  %1005 = vst [vmem:[%s4440_s9 + $0x8] sm:$0xff] (%p4273_p3), %v1004_v1  ;;  %v1008_v3 = vld [vmem:[%s4435_s13 + $0x28] sm:$0xff] (%p4273_p3) }
  0x39   : > { %1007 = vst [vmem:[%s4440_s9 + $0x10] sm:$0xff] %v1006_v2  ;;  %v1010_v4 = vld [vmem:[%s4435_s13 + $0x40] sm:$0xff]  ;;  %v1012_v5 = vld [vmem:[%s4435_s13 + $0x48] sm:$0xff]  ;;  %1009 = vst [vmem:[%s4440_s9 + $0x18] sm:$0xff] %v1008_v3 }
  0x3a   : > { %1011 = vst [vmem:[%s4440_s9 + $0x20] sm:$0xff] %v1010_v4  ;;  %1013 = vst [vmem:[%s4440_s9 + $0x28] sm:$0xff] %v1012_v5  ;;  %v1014_v6 = vld [vmem:[%s4435_s13 + $0x60] sm:$0xff]  ;;  %v1016_v7 = vld [vmem:[%s4435_s13 + $0x68] sm:$0xff] }
  0x3b   : > { %v1018_v8 = vld [vmem:[%s4435_s13 + $0x80] sm:$0xff]  ;;  %1015 = vst [vmem:[%s4440_s9 + $0x30] sm:$0xff] %v1014_v6  ;;  %1017 = vst [vmem:[%s4440_s9 + $0x38] sm:$0xff] %v1016_v7  ;;  %v1020_v9 = vld [vmem:[%s4435_s13 + $0x88] sm:$0xff] }
  0x3c   : > { %1019 = vst [vmem:[%s4440_s9 + $0x40] sm:$0xff] %v1018_v8  ;;  %v1022_v10 = vld [vmem:[%s4435_s13 + $0xa0] sm:$0xff]  ;;  %v1024_v11 = vld [vmem:[%s4435_s13 + $0xa8] sm:$0xff]  ;;  %1021 = vst [vmem:[%s4440_s9 + $0x48] sm:$0xff] %v1020_v9 }
  0x3d   : > { %1023 = vst [vmem:[%s4440_s9 + $0x50] sm:$0xff] %v1022_v10  ;;  %1025 = vst [vmem:[%s4440_s9 + $0x58] sm:$0xff] %v1024_v11  ;;  %v1026_v12 = vld [vmem:[%s4435_s13 + $0xc0] sm:$0xff]  ;;  %v1028_v13 = vld [vmem:[%s4435_s13 + $0xc8] sm:$0xff] }
  0x3e   : > { %v1030_v14 = vld [vmem:[%s4435_s13 + $0xe0] sm:$0xff]  ;;  %1027 = vst [vmem:[%s4440_s9 + $0x60] sm:$0xff] %v1026_v12  ;;  %1029 = vst [vmem:[%s4440_s9 + $0x68] sm:$0xff] %v1028_v13  ;;  %v1032_v15 = vld [vmem:[%s4435_s13 + $0xe8] sm:$0xff] }
  0x3f   : > { %1031 = vst [vmem:[%s4440_s9 + $0x70] sm:$0xff] %v1030_v14  ;;  %v1034_v16 = vld [vmem:[%s4435_s13 + $0x100] sm:$0xff]  ;;  %v1036_v17 = vld [vmem:[%s4435_s13 + $0x108] sm:$0xff]  ;;  %1033 = vst [vmem:[%s4440_s9 + $0x78] sm:$0xff] %v1032_v15 }
  0x40   : > { %1035 = vst [vmem:[%s4440_s9 + $0x80] sm:$0xff] %v1034_v16  ;;  %1037 = vst [vmem:[%s4440_s9 + $0x88] sm:$0xff] %v1036_v17  ;;  %v1038_v18 = vld [vmem:[%s4435_s13 + $0x120] sm:$0xff]  ;;  %v1040_v19 = vld [vmem:[%s4435_s13 + $0x128] sm:$0xff] }
  0x41   : > { %v1042_v20 = vld [vmem:[%s4435_s13 + $0x140] sm:$0xff]  ;;  %1039 = vst [vmem:[%s4440_s9 + $0x90] sm:$0xff] %v1038_v18  ;;  %1041 = vst [vmem:[%s4440_s9 + $0x98] sm:$0xff] %v1040_v19  ;;  %v1044_v21 = vld [vmem:[%s4435_s13 + $0x148] sm:$0xff] }
  0x42   : > { %1043 = vst [vmem:[%s4440_s9 + $0xa0] sm:$0xff] %v1042_v20  ;;  %v1046_v22 = vld [vmem:[%s4435_s13 + $0x160] sm:$0xff]  ;;  %v1048_v23 = vld [vmem:[%s4435_s13 + $0x168] sm:$0xff]  ;;  %1045 = vst [vmem:[%s4440_s9 + $0xa8] sm:$0xff] %v1044_v21 }
  0x43   : > { %1047 = vst [vmem:[%s4440_s9 + $0xb0] sm:$0xff] %v1046_v22  ;;  %1049 = vst [vmem:[%s4440_s9 + $0xb8] sm:$0xff] %v1048_v23  ;;  %v1050_v24 = vld [vmem:[%s4435_s13 + $0x180] sm:$0xff]  ;;  %v1052_v25 = vld [vmem:[%s4435_s13 + $0x188] sm:$0xff] }
  0x44   : > { %v1054_v26 = vld [vmem:[%s4435_s13 + $0x1a0] sm:$0xff]  ;;  %1051 = vst [vmem:[%s4440_s9 + $0xc0] sm:$0xff] %v1050_v24  ;;  %1053 = vst [vmem:[%s4440_s9 + $0xc8] sm:$0xff] %v1052_v25  ;;  %v1056_v27 = vld [vmem:[%s4435_s13 + $0x1a8] sm:$0xff] }
  0x45   : > { %1055 = vst [vmem:[%s4440_s9 + $0xd0] sm:$0xff] %v1054_v26  ;;  %v1058_v28 = vld [vmem:[%s4435_s13 + $0x1c0] sm:$0xff]  ;;  %v1060_v29 = vld [vmem:[%s4435_s13 + $0x1c8] sm:$0xff]  ;;  %1057 = vst [vmem:[%s4440_s9 + $0xd8] sm:$0xff] %v1056_v27 }
  0x46   : > { %1059 = vst [vmem:[%s4440_s9 + $0xe0] sm:$0xff] %v1058_v28  ;;  %1061 = vst [vmem:[%s4440_s9 + $0xe8] sm:$0xff] %v1060_v29  ;;  %v1062_v30 = vld [vmem:[%s4435_s13 + $0x1e0] sm:$0xff]  ;;  %v1064_v31 = vld [vmem:[%s4435_s13 + $0x1e8] sm:$0xff] }
  0x47   : > { %v1066_v32 = vld [vmem:[%s4435_s13 + $0x200] sm:$0xff]  ;;  %1063 = vst [vmem:[%s4440_s9 + $0xf0] sm:$0xff] %v1062_v30  ;;  %1065 = vst [vmem:[%s4440_s9 + $0xf8] sm:$0xff] %v1064_v31  ;;  %v1068_v33 = vld [vmem:[%s4435_s13 + $0x208] sm:$0xff] }
  0x48   : > { %1067 = vst [vmem:[%s4440_s9 + $0x100] sm:$0xff] %v1066_v32  ;;  %v1070_v34 = vld [vmem:[%s4435_s13 + $0x220] sm:$0xff]  ;;  %v1072_v35 = vld [vmem:[%s4435_s13 + $0x228] sm:$0xff]  ;;  %1069 = vst [vmem:[%s4440_s9 + $0x108] sm:$0xff] %v1068_v33 }
  0x49   : > { %1071 = vst [vmem:[%s4440_s9 + $0x110] sm:$0xff] %v1070_v34  ;;  %1073 = vst [vmem:[%s4440_s9 + $0x118] sm:$0xff] %v1072_v35  ;;  %v1074_v36 = vld [vmem:[%s4435_s13 + $0x240] sm:$0xff]  ;;  %v1076_v37 = vld [vmem:[%s4435_s13 + $0x248] sm:$0xff] }
  0x4a   : > { %v1078_v38 = vld [vmem:[%s4435_s13 + $0x260] sm:$0xff]  ;;  %1075 = vst [vmem:[%s4440_s9 + $0x120] sm:$0xff] %v1074_v36  ;;  %1077 = vst [vmem:[%s4440_s9 + $0x128] sm:$0xff] %v1076_v37  ;;  %v1080_v39 = vld [vmem:[%s4435_s13 + $0x268] sm:$0xff] }
  0x4b   : > { %1079 = vst [vmem:[%s4440_s9 + $0x130] sm:$0xff] %v1078_v38  ;;  %v1082_v40 = vld [vmem:[%s4435_s13 + $0x280] sm:$0xff]  ;;  %v1084_v41 = vld [vmem:[%s4435_s13 + $0x288] sm:$0xff]  ;;  %1081 = vst [vmem:[%s4440_s9 + $0x138] sm:$0xff] %v1080_v39 }
  0x4c   : > { %1083 = vst [vmem:[%s4440_s9 + $0x140] sm:$0xff] %v1082_v40  ;;  %1085 = vst [vmem:[%s4440_s9 + $0x148] sm:$0xff] %v1084_v41  ;;  %v1086_v42 = vld [vmem:[%s4435_s13 + $0x2a0] sm:$0xff]  ;;  %v1088_v43 = vld [vmem:[%s4435_s13 + $0x2a8] sm:$0xff] }
  0x4d   : > { %v1090_v44 = vld [vmem:[%s4435_s13 + $0x2c0] sm:$0xff]  ;;  %1087 = vst [vmem:[%s4440_s9 + $0x150] sm:$0xff] %v1086_v42  ;;  %1089 = vst [vmem:[%s4440_s9 + $0x158] sm:$0xff] %v1088_v43  ;;  %v1092_v45 = vld [vmem:[%s4435_s13 + $0x2c8] sm:$0xff] }
  0x4e   : > { %1091 = vst [vmem:[%s4440_s9 + $0x160] sm:$0xff] %v1090_v44  ;;  %v1094_v46 = vld [vmem:[%s4435_s13 + $0x2e0] sm:$0xff]  ;;  %v1096_v47 = vld [vmem:[%s4435_s13 + $0x2e8] sm:$0xff]  ;;  %1093 = vst [vmem:[%s4440_s9 + $0x168] sm:$0xff] %v1092_v45 }
  0x4f   : > { %1095 = vst [vmem:[%s4440_s9 + $0x170] sm:$0xff] %v1094_v46  ;;  %1097 = vst [vmem:[%s4440_s9 + $0x178] sm:$0xff] %v1096_v47  ;;  %v1098_v48 = vld [vmem:[%s4435_s13 + $0x300] sm:$0xff]  ;;  %v1100_v49 = vld [vmem:[%s4435_s13 + $0x308] sm:$0xff] }
  0x50   : > { %v1102_v50 = vld [vmem:[%s4435_s13 + $0x320] sm:$0xff]  ;;  %1099 = vst [vmem:[%s4440_s9 + $0x180] sm:$0xff] %v1098_v48  ;;  %1101 = vst [vmem:[%s4440_s9 + $0x188] sm:$0xff] %v1100_v49  ;;  %v1104_v51 = vld [vmem:[%s4435_s13 + $0x328] sm:$0xff] }
  0x51   : > { %1103 = vst [vmem:[%s4440_s9 + $0x190] sm:$0xff] %v1102_v50  ;;  %v1106_v52 = vld [vmem:[%s4435_s13 + $0x340] sm:$0xff]  ;;  %v1108_v53 = vld [vmem:[%s4435_s13 + $0x348] sm:$0xff]  ;;  %1105 = vst [vmem:[%s4440_s9 + $0x198] sm:$0xff] %v1104_v51 }
  0x52   : > { %1107 = vst [vmem:[%s4440_s9 + $0x1a0] sm:$0xff] %v1106_v52  ;;  %1109 = vst [vmem:[%s4440_s9 + $0x1a8] sm:$0xff] %v1108_v53  ;;  %v1110_v54 = vld [vmem:[%s4435_s13 + $0x360] sm:$0xff]  ;;  %v1112_v55 = vld [vmem:[%s4435_s13 + $0x368] sm:$0xff] }
  0x53   : > { %v1114_v56 = vld [vmem:[%s4435_s13 + $0x380] sm:$0xff]  ;;  %1111 = vst [vmem:[%s4440_s9 + $0x1b0] sm:$0xff] %v1110_v54  ;;  %1113 = vst [vmem:[%s4440_s9 + $0x1b8] sm:$0xff] %v1112_v55  ;;  %v1116_v57 = vld [vmem:[%s4435_s13 + $0x388] sm:$0xff] }
  0x54   : > { %1115 = vst [vmem:[%s4440_s9 + $0x1c0] sm:$0xff] %v1114_v56  ;;  %v1118_v58 = vld [vmem:[%s4435_s13 + $0x3a0] sm:$0xff]  ;;  %v1120_v59 = vld [vmem:[%s4435_s13 + $0x3a8] sm:$0xff]  ;;  %1117 = vst [vmem:[%s4440_s9 + $0x1c8] sm:$0xff] %v1116_v57 }
  0x55   : > { %1119 = vst [vmem:[%s4440_s9 + $0x1d0] sm:$0xff] %v1118_v58  ;;  %1121 = vst [vmem:[%s4440_s9 + $0x1d8] sm:$0xff] %v1120_v59  ;;  %v1122_v60 = vld [vmem:[%s4435_s13 + $0x3c0] sm:$0xff]  ;;  %v1124_v61 = vld [vmem:[%s4435_s13 + $0x3c8] sm:$0xff] }
  0x56   : > { %v1126_v62 = vld [vmem:[%s4435_s13 + $0x3e0] sm:$0xff]  ;;  %1123 = vst [vmem:[%s4440_s9 + $0x1e0] sm:$0xff] %v1122_v60  ;;  %1125 = vst [vmem:[%s4440_s9 + $0x1e8] sm:$0xff] %v1124_v61  ;;  %v1128_v63 = vld [vmem:[%s4435_s13 + $0x3e8] sm:$0xff] }
  0x57   : > { %1127 = vst [vmem:[%s4440_s9 + $0x1f0] sm:$0xff] %v1126_v62  ;;  %1129 = vst [vmem:[%s4440_s9 + $0x1f8] sm:$0xff] %v1128_v63 }
  0x58 PF: > { %p3598_p5 = scmp.ge.s32.totalorder %s4202_s26, 1  ;;  %p1134_p6 = scmp.lt.s32.totalorder %s4202_s26, 3 }
  0x5a   : > { %p1135_p7 = pnand %p3598_p5, %p1134_p6 }
  0x5c   : > { %1138 = sbr.rel (%p1135_p7) target bundleno = 704 (0x2c0), region = 156 }
  0x61   : > { %v4106_v0 = vld [vmem:[%s5295_s4] sm:$0xff]   ;;  %s1141_s16 = sand.u32 1, %s4194_s24   ;;  %vm1502_vm0 = vcmask 130048   ;;  %v4172_v41 = vld [vmem:[%s5296_s5 + $0x38] sm:$0xff]   ;;  %v4173_v44 = vld [vmem:[%s5296_s5 + $0x30] sm:$0xff]   ;;  %v4204_v46 = vmov 0  }
  0x62   : > { %s3599_s17 = sshll.u32 %s1141_s16, 8  ;;  %4077 = vmatprep.subr.bf16.mxu1 %v4106_v0  ;;  %v4109_v1 = vld [vmem:[%s5294_s3] sm:$0xff]   ;;  %3865 = vmatprep.subr.bf16.mxu0 %v4106_v0  ;;  %s3601_s10 = sshll.u32 %s1141_s16, 9  ;;  %v4174_v50 = vld [vmem:[%s5296_s5 + $0x28] sm:$0xff]  }
  0x63   : > { %4078 = vmatpush3.bf16.msra.mxu1 %v4106_v0  ;;  %s4578_s20 = scalar_lea.vmem [#allocation3], %s3599_s17  ;;  %3866 = vmatpush3.bf16.msra.mxu0 %v4106_v0  ;;  %s4595_s21 = scalar_lea.vmem [#allocation2], %s3599_s17  ;;  %v4175_v57 = vld [vmem:[%s5296_s5 + $0x20] sm:$0xff]   ;;  %v4176_v0 = vld [vmem:[%s5296_s5 + $0x18] sm:$0xff]  }
  0x64   : > { %v4107_v2 = vld [vmem:[%s4578_s20 + $0x80] sm:$0xff]   ;;  %v4108_v3 = vld [vmem:[%s4578_s20 + $0x88] sm:$0xff]   ;;  %3931 = vmatprep.subr.bf16.mxu1 %v4109_v1  ;;  %v4110_v4 = vld [vmem:[%s4578_s20 + $0x90] sm:$0xff]   ;;  %3997 = vmatprep.subr.bf16.mxu0 %v4172_v41  ;;  %s4673_s11 = scalar_lea.vmem [#allocation4], %s3601_s10  ;;  %s5263_s10 = sshll.u32 %s3585_s27, 1 }
  0x65   : > { %3899 = vmatprep.mubr.msk.bf16.mxu1 %vm1502_vm0, %v4107_v2  ;;  %v4111_v5 = vld [vmem:[%s4578_s20 + $0x98] sm:$0xff]   ;;  %v4112_v6 = vld [vmem:[%s4578_s20 + $0xa0] sm:$0xff]   ;;  %v4113_v7 = vld [vmem:[%s4578_s20 + $0xa8] sm:$0xff]   ;;  %4105 = vset.pattern.permute.xlu1 %v4204_v46  ;;  %p1198_p8 = scmp.lt.s32.totalorder %s5263_s10, 3 }
  0x66   : > { %3900 = vmatmul.mubr.msk.bf16.vlgmr.msra.gmra.mxu1 %vm1502_vm0, %v4108_v3  ;;  %v4114_v8 = vld [vmem:[%s4578_s20 + $0xb0] sm:$0xff]   ;;  %v4124_v9 = vld [vmem:[%s4578_s20] sm:$0xff]   ;;  %v4125_v10 = vld [vmem:[%s4578_s20 + $0x8] sm:$0xff]   ;;  %4104 = vset.pattern.permute.xlu0 %v4204_v46 }
  0x67   : > { %3932 = vmatpush3.bf16.msra.mxu1 %v4109_v1  ;;  %3903 = vmatprep.mubr.msk.bf16.mxu1 %vm1502_vm0, %v4110_v4  ;;  %v4128_v11 = vld [vmem:[%s4578_s20 + $0x10] sm:$0xff]   ;;  %v4115_v12 = vld [vmem:[%s4578_s20 + $0xb8] sm:$0xff]   ;;  %v4116_v13 = vld [vmem:[%s4578_s20 + $0xc0] sm:$0xff]   ;;  %s5341_s10 = smov (!%p1198_p8, %s5263_s10), 3 }
  0x68   : > { %3867 = vmatprep.mubr.msk.bf16.mxu0 %vm1502_vm0, %v4124_v9  ;;  %v4129_v14 = vld [vmem:[%s4578_s20 + $0x18] sm:$0xff]   ;;  %v4132_v15 = vld [vmem:[%s4578_s20 + $0x20] sm:$0xff]   ;;  %v4117_v16 = vld [vmem:[%s4578_s20 + $0xc8] sm:$0xff]   ;;  %s3603_s26 = sshll.u32 %s5341_s10, 2 }
  0x69   : > { %3868 = vmatmul.mubr.msk.bf16.vlgmr.msra.gmra.mxu0 %vm1502_vm0, %v4125_v10  ;;  %v4118_v17 = vld [vmem:[%s4578_s20 + $0xd0] sm:$0xff]   ;;  %v4133_v18 = vld [vmem:[%s4578_s20 + $0x28] sm:$0xff]   ;;  %v4119_v20 = vld [vmem:[%s4578_s20 + $0xd8] sm:$0xff]   ;;  %s1201_s24 = scalar_lea.vmem %s5298_s7, %s3603_s26 }
  0x6a   : > { %3871 = vmatprep.mubr.msk.bf16.mxu0 %vm1502_vm0, %v4128_v11  ;;  %v4136_v19 = vld [vmem:[%s4578_s20 + $0x30] sm:$0xff]   ;;  %v4120_v21 = vld [vmem:[%s4578_s20 + $0xe0] sm:$0xff]   ;;  %v4137_v22 = vld [vmem:[%s4578_s20 + $0x38] sm:$0xff]   ;;  %3998 = vmatpush3.bf16.msra.mxu0 %v4172_v41 }
  0x6b   : > { %v4140_v23 = vld [vmem:[%s4578_s20 + $0x40] sm:$0xff]   ;;  %v4121_v24 = vld [vmem:[%s4578_s20 + $0xe8] sm:$0xff]   ;;  %v4122_v25 = vld [vmem:[%s4578_s20 + $0xf0] sm:$0xff]   ;;  %3999 = vmatprep.subr.bf16.mxu0 %v4173_v44 }
  0x6c   : > { %v4141_v26 = vld [vmem:[%s4578_s20 + $0x48] sm:$0xff]   ;;  %v4144_v27 = vld [vmem:[%s4578_s20 + $0x50] sm:$0xff]   ;;  %v4123_v28 = vld [vmem:[%s4578_s20 + $0xf8] sm:$0xff]  }
  0x6d   : > { %v4126_v29 = vld [vmem:[%s4595_s21] sm:$0xff]   ;;  %v4145_v30 = vld [vmem:[%s4578_s20 + $0x58] sm:$0xff]   ;;  %v4127_v32 = vld [vmem:[%s4595_s21 + $0x8] sm:$0xff]  }
  0x6e   : > { %3904 = vmatmul.mubr.msk.bf16.gmra.mxu1 %vm1502_vm0, %v4111_v5  ;;  %v4148_v31 = vld [vmem:[%s4578_s20 + $0x60] sm:$0xff]   ;;  %v4130_v33 = vld [vmem:[%s4595_s21 + $0x10] sm:$0xff]   ;;  %v4149_v34 = vld [vmem:[%s4578_s20 + $0x68] sm:$0xff]   ;;  %4000 = vmatpush3.bf16.msra.mxu0 %v4173_v44 }
  0x6f   : > { %3907 = vmatprep.mubr.msk.bf16.mxu1 %vm1502_vm0, %v4112_v6  ;;  %v4152_v35 = vld [vmem:[%s4578_s20 + $0x70] sm:$0xff]   ;;  %v4131_v36 = vld [vmem:[%s4595_s21 + $0x18] sm:$0xff]   ;;  %v4134_v38 = vld [vmem:[%s4595_s21 + $0x20] sm:$0xff]   ;;  %4001 = vmatprep.subr.bf16.mxu0 %v4174_v50 }
  0x70   : > { %v4153_v37 = vld [vmem:[%s4578_s20 + $0x78] sm:$0xff]   ;;  %v4135_v39 = vld [vmem:[%s4595_s21 + $0x28] sm:$0xff]   ;;  %v4138_v40 = vld [vmem:[%s4595_s21 + $0x30] sm:$0xff]  }
  0x71   : > { %3872 = vmatmul.mubr.msk.bf16.gmra.mxu0 %vm1502_vm0, %v4129_v14  ;;  %v4139_v42 = vld [vmem:[%s4595_s21 + $0x38] sm:$0xff]   ;;  %v4142_v43 = vld [vmem:[%s4595_s21 + $0x40] sm:$0xff]   ;;  %v4143_v45 = vld [vmem:[%s4595_s21 + $0x48] sm:$0xff]  }
  0x72   : > { %3875 = vmatprep.mubr.msk.bf16.mxu0 %vm1502_vm0, %v4132_v15  ;;  %v2969_v47 = vld [vmem:[%s4673_s11 + $0x10] sm:$0xff]  ;;  %v2967_v48 = vld [vmem:[%s4673_s11] sm:$0xff]  ;;  %v2970_v51 = vld [vmem:[%s4673_s11 + $0x18] sm:$0xff]  ;;  %4002 = vmatpush3.bf16.msra.mxu0 %v4174_v50 }
  0x73   : > { %v4146_v49 = vld [vmem:[%s4595_s21 + $0x50] sm:$0xff]   ;;  %3043 = vperm.xlu1 %4105, %v2969_v47   ;;  %3033 = vperm.xlu0 %4104, %v2967_v48   ;;  %v2968_v52 = vld [vmem:[%s4673_s11 + $0x8] sm:$0xff]  ;;  %v4147_v53 = vld [vmem:[%s4595_s21 + $0x58] sm:$0xff]  }
  0x74   : > { %v2972_v54 = vld [vmem:[%s4673_s11 + $0x28] sm:$0xff]  ;;  %v2971_v55 = vld [vmem:[%s4673_s11 + $0x20] sm:$0xff]  ;;  %v2974_v58 = vld [vmem:[%s4673_s11 + $0x38] sm:$0xff]  ;;  %4003 = vmatprep.subr.bf16.mxu0 %v4175_v57 }
  0x75   : > { %v4150_v56 = vld [vmem:[%s4595_s21 + $0x60] sm:$0xff]   ;;  %v2973_v59 = vld [vmem:[%s4673_s11 + $0x30] sm:$0xff]  ;;  %v4151_v60 = vld [vmem:[%s4595_s21 + $0x68] sm:$0xff]  }
  0x76   : > { %3908 = vmatmul.mubr.msk.bf16.gmra.mxu1 %vm1502_vm0, %v4113_v7  ;;  %4004 = vmatpush3.bf16.msra.mxu0 %v4175_v57  ;;  %v2976_v61 = vld [vmem:[%s4673_s11 + $0x48] sm:$0xff]  ;;  %v2975_v62 = vld [vmem:[%s4673_s11 + $0x40] sm:$0xff]  ;;  %v4154_v63 = vld [vmem:[%s4595_s21 + $0x70] sm:$0xff]  }
  0x77   : > { %3911 = vmatprep.mubr.msk.bf16.mxu1 %vm1502_vm0, %v4114_v8  ;;  %3048 = vperm.xlu1 %4105, %v2970_v51   ;;  %v2978_v1 = vld [vmem:[%s4673_s11 + $0x58] sm:$0xff]  ;;  %v2977_v2 = vld [vmem:[%s4673_s11 + $0x50] sm:$0xff]  ;;  %v2980_v4 = vld [vmem:[%s4673_s11 + $0x68] sm:$0xff] }
  0x78   : > { %3038 = vperm.xlu0 %4104, %v2968_v52   ;;  %4005 = vmatprep.subr.bf16.mxu0 %v4176_v0  ;;  %v4155_v3 = vld [vmem:[%s4595_s21 + $0x78] sm:$0xff]   ;;  %v2979_v5 = vld [vmem:[%s4673_s11 + $0x60] sm:$0xff]  ;;  %v4177_v7 = vld [vmem:[%s5296_s5 + $0x10] sm:$0xff]  }
  0x79   : > { %3876 = vmatmul.mubr.msk.bf16.gmra.mxu0 %vm1502_vm0, %v4133_v18  ;;  %v4156_v6 = vld [vmem:[%s4595_s21 + $0x80] sm:$0xff]   ;;  %v2982_v8 = vld [vmem:[%s4673_s11 + $0x78] sm:$0xff]  ;;  %v2981_v9 = vld [vmem:[%s4673_s11 + $0x70] sm:$0xff] }
  0x7a   : > { %3879 = vmatprep.mubr.msk.bf16.mxu0 %vm1502_vm0, %v4136_v19  ;;  %4006 = vmatpush3.bf16.msra.mxu0 %v4176_v0  ;;  %v4157_v10 = vld [vmem:[%s4595_s21 + $0x88] sm:$0xff]   ;;  %v2986_v14 = vld [vmem:[%s4673_s11 + $0x98] sm:$0xff]  ;;  %v2985_v15 = vld [vmem:[%s4673_s11 + $0x90] sm:$0xff] }
  0x7b   : > { %3058 = vperm.xlu1 %4105, %v2972_v54   ;;  %4007 = vmatprep.subr.bf16.mxu0 %v4177_v7  ;;  %v2984_v11 = vld [vmem:[%s4673_s11 + $0x88] sm:$0xff]  ;;  %v2987_v18 = vld [vmem:[%s4673_s11 + $0xa0] sm:$0xff]  ;;  %v3001_v41 = vld [vmem:[%s4673_s11 + $0x110] sm:$0xff] }
  0x7c   : > { %3053 = vperm.xlu0 %4104, %v2971_v55   ;;  %v4160_v19 = vld [vmem:[%s4595_s21 + $0xa0] sm:$0xff]   ;;  %v3006_v46 = vld [vmem:[%s4673_s11 + $0x138] sm:$0xff]  ;;  %v3005_v47 = vld [vmem:[%s4673_s11 + $0x130] sm:$0xff] }
  0x7d   : > { %v3003_v44 = vld [vmem:[%s4673_s11 + $0x120] sm:$0xff]  ;;  %v4169_v48 = vld [vmem:[%s4595_s21 + $0xe8] sm:$0xff]   ;;  %v4170_v51 = vld [vmem:[%s4595_s21 + $0xf0] sm:$0xff]  }
  0x7e   : > { %3912 = vmatmul.mubr.msk.bf16.gmra.mxu1 %vm1502_vm0, %v4115_v12  ;;  %4008 = vmatpush3.bf16.msra.mxu0 %v4177_v7  ;;  %v2983_v12 = vld [vmem:[%s4673_s11 + $0x80] sm:$0xff]  ;;  %v3010_v52 = vld [vmem:[%s4673_s11 + $0x158] sm:$0xff]  ;;  %v3012_v55 = vld [vmem:[%s4673_s11 + $0x168] sm:$0xff] }
  0x7f   : > { %3915 = vmatprep.mubr.msk.bf16.mxu1 %vm1502_vm0, %v4116_v13  ;;  %3068 = vperm.xlu1 %4105, %v2974_v58   ;;  %v4158_v13 = vld [vmem:[%s4595_s21 + $0x90] sm:$0xff]   ;;  %v3007_v50 = vld [vmem:[%s4673_s11 + $0x140] sm:$0xff]  ;;  %v4171_v54 = vld [vmem:[%s4595_s21 + $0xf8] sm:$0xff]  }
  0x80   : > { %3063 = vperm.xlu0 %4104, %v2973_v59   ;;  %v3014_v57 = vld [vmem:[%s4673_s11 + $0x178] sm:$0xff]  ;;  %v3013_v58 = vld [vmem:[%s4673_s11 + $0x170] sm:$0xff]  ;;  %v3016_v59 = vld [vmem:[%s4673_s11 + $0x188] sm:$0xff] }
  0x81   : > { %3880 = vmatmul.mubr.msk.bf16.gmra.mxu0 %vm1502_vm0, %v4137_v22  ;;  %v2989_v22 = vld [vmem:[%s4673_s11 + $0xb0] sm:$0xff] }
  0x82   : > { %3883 = vmatprep.mubr.msk.bf16.mxu0 %vm1502_vm0, %v4140_v23  ;;  %v4179_v23 = vld [vmem:[%s5296_s5] sm:$0xff]   ;;  %v3021_v7 = vld [vmem:[%s4673_s11 + $0x1b0] sm:$0xff] }
  0x83   : > { %3078 = vperm.xlu1 %4105, %v2976_v61  }
  0x84   : > { %3073 = vperm.xlu0 %4104, %v2975_v62   ;;  %v3018_v62 = vld [vmem:[%s4673_s11 + $0x198] sm:$0xff] }
  0x86   : > { %3916 = vmatmul.mubr.msk.bf16.gmra.mxu1 %vm1502_vm0, %v4117_v16  ;;  %v4159_v16 = vld [vmem:[%s4595_s21 + $0x98] sm:$0xff]  }
  0x87   : > { %3919 = vmatprep.mubr.msk.bf16.mxu1 %vm1502_vm0, %v4118_v17  ;;  %3088 = vperm.xlu1 %4105, %v2978_v1   ;;  %v2988_v17 = vld [vmem:[%s4673_s11 + $0xa8] sm:$0xff] }
  0x88   : > { %3083 = vperm.xlu0 %4104, %v2977_v2   ;;  %v3020_v2 = vld [vmem:[%s4673_s11 + $0x1a8] sm:$0xff] }
  0x89   : > { %3884 = vmatmul.mubr.msk.bf16.gmra.mxu0 %vm1502_vm0, %v4141_v26  ;;  %v2991_v26 = vld [vmem:[%s4673_s11 + $0xc0] sm:$0xff] }
  0x8a   : > { %3887 = vmatprep.mubr.msk.bf16.mxu0 %vm1502_vm0, %v4144_v27  ;;  %v4162_v27 = vld [vmem:[%s4595_s21 + $0xb0] sm:$0xff]  }
  0x8b   : > { %3098 = vperm.xlu1 %4105, %v2980_v4  }
  0x8c   : > { %3093 = vperm.xlu0 %4104, %v2979_v5  }
  0x8e   : > { %3920 = vmatmul.mubr.msk.bf16.gmra.mxu1 %vm1502_vm0, %v4119_v20  ;;  %v4178_v20 = vld [vmem:[%s5296_s5 + $0x8] sm:$0xff]  }
  0x8f   : > { %3923 = vmatprep.mubr.msk.bf16.mxu1 %vm1502_vm0, %v4120_v21  ;;  %3108 = vperm.xlu1 %4105, %v2982_v8   ;;  %v2990_v21 = vld [vmem:[%s4673_s11 + $0xb8] sm:$0xff] }
  0x90   : > { %3103 = vperm.xlu0 %4104, %v2981_v9   ;;  %4009 = vmatprep.subr.bf16.mxu0 %v4178_v20 }
  0x91   : > { %3888 = vmatmul.mubr.msk.bf16.gmra.mxu0 %vm1502_vm0, %v4145_v30  ;;  %v4163_v30 = vld [vmem:[%s4595_s21 + $0xb8] sm:$0xff]  }
  0x92   : > { %3891 = vmatprep.mubr.msk.bf16.mxu0 %vm1502_vm0, %v4148_v31  ;;  %4010 = vmatpush3.bf16.msra.mxu0 %v4178_v20  ;;  %v2996_v31 = vld [vmem:[%s4673_s11 + $0xe8] sm:$0xff] }
  0x93   : > { %3118 = vperm.xlu1 %4105, %v2984_v11   ;;  %4011 = vmatprep.subr.bf16.mxu0 %v4179_v23  ;;  %v3023_v11 = vld [vmem:[%s4673_s11 + $0x1c0] sm:$0xff] }
  0x94   : > { %3113 = vperm.xlu0 %4104, %v2983_v12  }
  0x96   : > { %3924 = vmatmul.mubr.msk.bf16.gmra.mxu1 %vm1502_vm0, %v4121_v24  ;;  %v4161_v24 = vld [vmem:[%s4595_s21 + $0xa8] sm:$0xff]   ;;  %4012 = vmatpush3.bf16.msra.mxu0 %v4179_v23 }
  0x97   : > { %3927 = vmatprep.mubr.msk.bf16.mxu1 %vm1502_vm0, %v4122_v25  ;;  %3128 = vperm.xlu1 %4105, %v2986_v14   ;;  %v2992_v25 = vld [vmem:[%s4673_s11 + $0xc8] sm:$0xff] }
  0x98   : > { %3123 = vperm.xlu0 %4104, %v2985_v15   ;;  %v3026_v15 = vld [vmem:[%s4673_s11 + $0x1d8] sm:$0xff] }
  0x99   : > { %3892 = vmatmul.mubr.msk.bf16.gmra.mxu0 %vm1502_vm0, %v4149_v34  ;;  %v2998_v34 = vld [vmem:[%s4673_s11 + $0xf8] sm:$0xff] }
  0x9a   : > { %3895 = vmatprep.mubr.msk.bf16.mxu0 %vm1502_vm0, %v4152_v35  ;;  %v2997_v35 = vld [vmem:[%s4673_s11 + $0xf0] sm:$0xff] }
  0x9b   : > { %3138 = vperm.xlu1 %4105, %v2988_v17  }
  0x9c   : > { %3133 = vperm.xlu0 %4104, %v2987_v18  }
  0x9e   : > { %3928 = vmatmul.mubr.msk.bf16.gmra.mxu1 %vm1502_vm0, %v4123_v28  ;;  %v2994_v28 = vld [vmem:[%s4673_s11 + $0xd8] sm:$0xff] }
  0x9f   : > { %3933 = vmatprep.mubr.msk.bf16.mxu1 %vm1502_vm0, %v4126_v29  ;;  %3148 = vperm.xlu1 %4105, %v2990_v21   ;;  %v2993_v29 = vld [vmem:[%s4673_s11 + $0xd0] sm:$0xff]  ;;  %v3028_v21 = vld [vmem:[%s4673_s11 + $0x1e8] sm:$0xff] }
  0xa0   : > { %3143 = vperm.xlu0 %4104, %v2989_v22   ;;  %v3027_v22 = vld [vmem:[%s4673_s11 + $0x1e0] sm:$0xff] }
  0xa1   : > { %3896 = vmatmul.mubr.msk.bf16.gmra.mxu0 %vm1502_vm0, %v4153_v37  ;;  %v3000_v37 = vld [vmem:[%s4673_s11 + $0x108] sm:$0xff] }
  0xa3   : > { %3158 = vperm.xlu1 %4105, %v2992_v25  }
  0xa4   : > { %3153 = vperm.xlu0 %4104, %v2991_v26  }
  0xa6   : > { %3934 = vmatmul.mubr.msk.bf16.vlgmr.msra.gmra.mxu1 %vm1502_vm0, %v4127_v32  ;;  %v2995_v32 = vld [vmem:[%s4673_s11 + $0xe0] sm:$0xff] }
  0xa7   : > { %3937 = vmatprep.mubr.msk.bf16.mxu1 %vm1502_vm0, %v4130_v33  ;;  %3168 = vperm.xlu1 %4105, %v2994_v28   ;;  %v4164_v33 = vld [vmem:[%s4595_s21 + $0xc0] sm:$0xff]   ;;  %v3029_v28 = vld [vmem:[%s4673_s11 + $0x1f0] sm:$0xff] }
  0xa8   : > { %3163 = vperm.xlu0 %4104, %v2993_v29  }
  0xab   : > { %3178 = vperm.xlu1 %4105, %v2996_v31  }
  0xac   : > { %3173 = vperm.xlu0 %4104, %v2995_v32  }
  0xae   : > { %3938 = vmatmul.mubr.msk.bf16.gmra.mxu1 %vm1502_vm0, %v4131_v36  ;;  %v4165_v36 = vld [vmem:[%s4595_s21 + $0xc8] sm:$0xff]  }
  0xaf   : > { %3941 = vmatprep.mubr.msk.bf16.mxu1 %vm1502_vm0, %v4134_v38  ;;  %3188 = vperm.xlu1 %4105, %v2998_v34   ;;  %v2999_v38 = vld [vmem:[%s4673_s11 + $0x100] sm:$0xff] }
  0xb0   : > { %3183 = vperm.xlu0 %4104, %v2997_v35  }
  0xb3   : > { %3198 = vperm.xlu1 %4105, %v3000_v37  }
  0xb4   : > { %3193 = vperm.xlu0 %4104, %v2999_v38  }
  0xb6   : > { %3942 = vmatmul.mubr.msk.bf16.gmra.mxu1 %vm1502_vm0, %v4135_v39  ;;  %v4166_v39 = vld [vmem:[%s4595_s21 + $0xd0] sm:$0xff]  }
  0xb7   : > { %3945 = vmatprep.mubr.msk.bf16.mxu1 %vm1502_vm0, %v4138_v40  ;;  %v3002_v40 = vld [vmem:[%s4673_s11 + $0x118] sm:$0xff] }
  0xb8   : > { %3208 = vperm.xlu1 %4105, %v3002_v40   ;;  %3203 = vperm.xlu0 %4104, %v3001_v41  }
  0xbc   : > { %3213 = vperm.xlu0 %4104, %v3003_v44  }
  0xbe   : > { %3946 = vmatmul.mubr.msk.bf16.gmra.mxu1 %vm1502_vm0, %v4139_v42  ;;  %v4167_v42 = vld [vmem:[%s4595_s21 + $0xd8] sm:$0xff]  }
  0xbf   : > { %3949 = vmatprep.mubr.msk.bf16.mxu1 %vm1502_vm0, %v4142_v43  ;;  %v3004_v43 = vld [vmem:[%s4673_s11 + $0x128] sm:$0xff] }
  0xc0   : > { %3218 = vperm.xlu1 %4105, %v3004_v43   ;;  %3223 = vperm.xlu0 %4104, %v3005_v47  }
  0xc4   : > { %3228 = vperm.xlu1 %4105, %v3006_v46   ;;  %3233 = vperm.xlu0 %4104, %v3007_v50  }
  0xc6   : > { %3950 = vmatmul.mubr.msk.bf16.gmra.mxu1 %vm1502_vm0, %v4143_v45  ;;  %v4168_v45 = vld [vmem:[%s4595_s21 + $0xe0] sm:$0xff]  }
  0xc7   : > { %3953 = vmatprep.mubr.msk.bf16.mxu1 %vm1502_vm0, %v4146_v49  ;;  %v3008_v49 = vld [vmem:[%s4673_s11 + $0x148] sm:$0xff] }
  0xc8   : > { %3238 = vperm.xlu1 %4105, %v3008_v49  }
  0xcc   : > { %3248 = vperm.xlu1 %4105, %v3010_v52  }
  0xce   : > { %3954 = vmatmul.mubr.msk.bf16.gmra.mxu1 %vm1502_vm0, %v4147_v53  ;;  %v3009_v53 = vld [vmem:[%s4673_s11 + $0x150] sm:$0xff] }
  0xcf   : > { %3957 = vmatprep.mubr.msk.bf16.mxu1 %vm1502_vm0, %v4150_v56  ;;  %3243 = vperm.xlu0 %4104, %v3009_v53   ;;  %v3011_v56 = vld [vmem:[%s4673_s11 + $0x160] sm:$0xff] }
  0xd0   : > { %3258 = vperm.xlu1 %4105, %v3012_v55  }
  0xd3   : > { %3253 = vperm.xlu0 %4104, %v3011_v56  }
  0xd4   : > { %3268 = vperm.xlu1 %4105, %v3014_v57  }
  0xd6   : > { %3958 = vmatmul.mubr.msk.bf16.gmra.mxu1 %vm1502_vm0, %v4151_v60  ;;  %v3015_v60 = vld [vmem:[%s4673_s11 + $0x180] sm:$0xff] }
  0xd7   : > { %3961 = vmatprep.mubr.msk.bf16.mxu1 %vm1502_vm0, %v4154_v63  ;;  %3263 = vperm.xlu0 %4104, %v3013_v58   ;;  %v3017_v63 = vld [vmem:[%s4673_s11 + $0x190] sm:$0xff] }
  0xd8   : > { %3278 = vperm.xlu1 %4105, %v3016_v59  }
  0xdb   : > { %3273 = vperm.xlu0 %4104, %v3015_v60  }
  0xdc   : > { %3288 = vperm.xlu1 %4105, %v3018_v62  }
  0xde   : > { %3962 = vmatmul.mubr.msk.bf16.gmra.mxu1 %vm1502_vm0, %v4155_v3  ;;  %v3019_v3 = vld [vmem:[%s4673_s11 + $0x1a0] sm:$0xff] }
  0xdf   : > { %3965 = vmatprep.mubr.msk.bf16.mxu1 %vm1502_vm0, %v4156_v6  ;;  %3283 = vperm.xlu0 %4104, %v3017_v63   ;;  %v3022_v6 = vld [vmem:[%s4673_s11 + $0x1b8] sm:$0xff] }
  0xe0   : > { %3298 = vperm.xlu1 %4105, %v3020_v2  }
  0xe3   : > { %3293 = vperm.xlu0 %4104, %v3019_v3  }
  0xe4   : > { %3308 = vperm.xlu1 %4105, %v3022_v6   ;;  %v4885_v6 = vld [vmem:[%s5297_s6] ss:$0 sm:$0xff] }
  0xe6   : > { %3966 = vmatmul.mubr.msk.bf16.gmra.mxu1 %vm1502_vm0, %v4157_v10  ;;  %v3024_v10 = vld [vmem:[%s4673_s11 + $0x1c8] sm:$0xff] }
  0xe7   : > { %3969 = vmatprep.mubr.msk.bf16.mxu1 %vm1502_vm0, %v4158_v13  ;;  %3303 = vperm.xlu0 %4104, %v3021_v7  }
  0xe8   : > { %3318 = vperm.xlu1 %4105, %v3024_v10  }
  0xeb   : > { %3313 = vperm.xlu0 %4104, %v3023_v11  }
  0xec   : > { %3328 = vperm.xlu1 %4105, %v3026_v15  }
  0xee   : > { %3970 = vmatmul.mubr.msk.bf16.gmra.mxu1 %vm1502_vm0, %v4159_v16  ;;  %v3025_v16 = vld [vmem:[%s4673_s11 + $0x1d0] sm:$0xff] }
  0xef   : > { %3973 = vmatprep.mubr.msk.bf16.mxu1 %vm1502_vm0, %v4160_v19  ;;  %3323 = vperm.xlu0 %4104, %v3025_v16  }
  0xf0   : > { %3338 = vperm.xlu1 %4105, %v3028_v21  }
  0xf3   : > { %3333 = vperm.xlu0 %4104, %v3027_v22  }
  0xf6   : > { %3974 = vmatmul.mubr.msk.bf16.gmra.mxu1 %vm1502_vm0, %v4161_v24 }
  0xf7   : > { %3977 = vmatprep.mubr.msk.bf16.mxu1 %vm1502_vm0, %v4162_v27  ;;  %v3030_v27 = vld [vmem:[%s4673_s11 + $0x1f8] sm:$0xff]  ;;  %3343 = vperm.xlu0 %4104, %v3029_v28  }
  0xf8   : > { %3348 = vperm.xlu1 %4105, %v3030_v27  }
  0xfe   : > { %3978 = vmatmul.mubr.msk.bf16.gmra.mxu1 %vm1502_vm0, %v4163_v30 }
  0xff   : > { %3981 = vmatprep.mubr.msk.bf16.mxu1 %vm1502_vm0, %v4164_v33 }
 0x106   : > { %3982 = vmatmul.mubr.msk.bf16.gmra.mxu1 %vm1502_vm0, %v4165_v36 }
 0x107   : > { %3985 = vmatprep.mubr.msk.bf16.mxu1 %vm1502_vm0, %v4166_v39 }
 0x10e   : > { %3986 = vmatmul.mubr.msk.bf16.gmra.mxu1 %vm1502_vm0, %v4167_v42 }
 0x10f   : > { %3989 = vmatprep.mubr.msk.bf16.mxu1 %vm1502_vm0, %v4168_v45 }
 0x116   : > { %3990 = vmatmul.mubr.msk.bf16.gmra.mxu1 %vm1502_vm0, %v4169_v48 }
 0x117   : > { %3993 = vmatprep.mubr.msk.bf16.mxu1 %vm1502_vm0, %v4170_v51 }
 0x11e   : > { %3994 = vmatmul.mubr.msk.bf16.gmra.mxu1 %vm1502_vm0, %v4171_v54 }
 0x126   : > { %v4788_v61 = vpop.f32.mrf.mxu1 }
 0x128   : > { %v4792_v0 = vpop.f32.mrf.mxu1 }
 0x129   : > { %v3869_v14 = vpop.f32.mrf.mxu0 }
 0x12a   : > { %v4794_v1 = vpop.f32.mrf.mxu1 }
 0x12b   : > { %v1633_v18 = vpop.f32.mrf.mxu0 }
 0x12c   : > { %v4798_v4 = vpop.f32.mrf.mxu1 }
 0x12d   : > { %v3870_v20 = vpop.f32.mrf.mxu0 }
 0x12e   : > { %v4800_v5 = vpop.f32.mrf.mxu1 }
 0x12f   : > { %v1636_v24 = vpop.f32.mrf.mxu0 }
 0x130   : > { %v4804_v8 = vpop.f32.mrf.mxu1 }
 0x131   : > { %v3873_v26 = vpop.f32.mrf.mxu0 }
 0x132   : > { %v4806_v9 = vpop.f32.mrf.mxu1 }
 0x133   : > { %v1649_v30 = vpop.f32.mrf.mxu0 }
 0x134   : > { %v4810_v12 = vpop.f32.mrf.mxu1 }
 0x135   : > { %v3874_v32 = vpop.f32.mrf.mxu0 }
 0x136   : > { %v4812_v13 = vpop.f32.mrf.mxu1 }
 0x137   : > { %v1652_v34 = vpop.f32.mrf.mxu0 }
 0x138   : > { %v4816_v17 = vpop.f32.mrf.mxu1 }
 0x139   : > { %v4838_v37 = vpop.f32.mrf.mxu0 }
 0x13a   : > { %v4818_v19 = vpop.f32.mrf.mxu1 }
 0x13b   : > { %v1665_v40 = vpop.f32.mrf.mxu0 }
 0x13c   : > { %v4822_v23 = vpop.f32.mrf.mxu1 }
 0x13d   : > { %v4848_v43 = vpop.f32.mrf.mxu0 }
 0x13e   : > { %v4824_v25 = vpop.f32.mrf.mxu1 }
 0x13f   : > { %v4854_v46 = vpop.f32.mrf.mxu0 }
 0x140   : > { %v4828_v29 = vpop.f32.mrf.mxu1 }
 0x141   : > { %v4860_v49 = vpop.f32.mrf.mxu0 }
 0x142   : > { %v4830_v31 = vpop.f32.mrf.mxu1 }
 0x143   : > { %v4866_v52 = vpop.f32.mrf.mxu0 }
 0x144   : > { %v4832_v33 = vpop.f32.mrf.mxu1 }
 0x145   : > { %v4872_v55 = vpop.f32.mrf.mxu0 }
 0x146   : > { %v4834_v35 = vpop.f32.mrf.mxu1 }
 0x147   : > { %v4878_v58 = vpop.f32.mrf.mxu0 }
 0x148   : > { %v4836_v36 = vpop.f32.mrf.mxu1 }
 0x149   : > { %v4880_v62 = vpop.f32.mrf.mxu0 }
 0x14a   : > { %v4840_v38 = vpop.f32.mrf.mxu1 }
 0x14b   : > { %v4887_v11 = vpop.f32.mrf.mxu0 }
 0x14c   : > { %v4842_v39 = vpop.f32.mrf.mxu1 }
 0x14e   : > { %v4844_v41 = vpop.f32.mrf.mxu1 }
 0x150   : > { %v4846_v42 = vpop.f32.mrf.mxu1 }
 0x152   : > { %v4850_v44 = vpop.f32.mrf.mxu1 }
 0x154   : > { %v4852_v45 = vpop.f32.mrf.mxu1 }
 0x156   : > { %v4856_v47 = vpop.f32.mrf.mxu1 }
 0x158   : > { %v4858_v48 = vpop.f32.mrf.mxu1 }
 0x15a   : > { %v4862_v50 = vpop.f32.mrf.mxu1 }
 0x15c   : > { %v4864_v51 = vpop.f32.mrf.mxu1 }
 0x15d   : > { %5300 = vst [vmem:[#allocation5_spill] sm:$0xff] %v4864_v51 }
 0x15e   : > { %v4868_v53 = vpop.f32.mrf.mxu1 }
 0x15f   : > { %5301 = vst [vmem:[#allocation6_spill] sm:$0xff] %v4868_v53 }
 0x160   : > { %v4870_v54 = vpop.f32.mrf.mxu1 }
 0x161   : > { %5302 = vst [vmem:[#allocation7_spill] sm:$0xff] %v4870_v54 }
 0x162   : > { %v4874_v56 = vpop.f32.mrf.mxu1 }
 0x163   : > { %5303 = vst [vmem:[#allocation8_spill] sm:$0xff] %v4874_v56 }
 0x164   : > { %v4876_v57 = vpop.f32.mrf.mxu1 }
 0x165   : > { %5304 = vst [vmem:[#allocation9_spill] sm:$0xff] %v4876_v57 }
 0x166   : > { %v3935_v59 = vpop.f32.mrf.mxu1 }
 0x167   : > { %v2193_v2 = vadd.f32 %v3935_v59, %v3869_v14  ;;  %v4893_v59 = vpop.f32.mrf.mxu0 }
 0x168   : > { %v2184_v60 = vpop.f32.mrf.mxu1 }
 0x169   : > { %v2185_v63 = vadd.f32 %v2184_v60, %v1633_v18  ;;  %v2448_v22 = vadd.f32 %v4885_v6, %v2193_v2 }
 0x16a   : > { %v3936_v3 = vpop.f32.mrf.mxu1 }
 0x16b   : > { %v2196_v7 = vadd.f32 %v3936_v3, %v3870_v20  ;;  %v2446_v15 = vadd.f32 %v4885_v6, %v2185_v63  ;;  %v2512_v3 = vmax.f32 %v2448_v22, 0.0 }
 0x16c   : > { %v2187_v10 = vpop.f32.mrf.mxu1 }
 0x16d   : > { %v2449_v16 = vadd.f32 %v4885_v6, %v2196_v7  ;;  %v2188_v21 = vadd.f32 %v2187_v10, %v1636_v24  ;;  %v2510_v60 = vmax.f32 %v2446_v15, 0.0  ;;  %v4895_v24 = vpop.f32.mrf.mxu0 }
 0x16e   : > { %v3939_v27 = vpop.f32.mrf.mxu1 }
 0x16f   : > { %v2447_v14 = vadd.f32 %v4885_v6, %v2188_v21  ;;  %v2513_v18 = vmax.f32 %v2449_v16, 0.0  ;;  %v2209_v56 = vadd.f32 %v3939_v27, %v3873_v26 }
 0x170   : > { %v2200_v28 = vpop.f32.mrf.mxu1 }
 0x171   : > { %v2511_v57 = vmax.f32 %v2447_v14, 0.0  ;;  %v2201_v20 = vadd.f32 %v2200_v28, %v1649_v30  ;;  %v2575_v51 = vpack.c.bf16 %v2513_v18, %v2512_v3  ;;  %v2452_v21 = vadd.f32 %v4885_v6, %v2209_v56 }
 0x172   : > { %v3940_v53 = vpop.f32.mrf.mxu1 }
 0x173   : > { %v2212_v54 = vadd.f32 %v3940_v53, %v3874_v32  ;;  %v2574_v63 = vpack.c.bf16 %v2511_v57, %v2510_v60  ;;  %v2450_v2 = vadd.f32 %v4885_v6, %v2201_v20  ;;  %v4901_v32 = vpop.f32.mrf.mxu0  ;;  %v2516_v14 = vmax.f32 %v2452_v21, 0.0 }
 0x174   : > { %v2203_v7 = vpop.f32.mrf.mxu1 }
 0x175   : > { %v2453_v10 = vadd.f32 %v4885_v6, %v2212_v54  ;;  %v2204_v16 = vadd.f32 %v2203_v7, %v1652_v34  ;;  %4013 = vmatprep.mubr.bf16.mxu0 %v2574_v63  ;;  %v2514_v53 = vmax.f32 %v2450_v2, 0.0  ;;  %v1713_v20 = vpop.f32.mrf.mxu0 }
 0x176   : > { %v3943_v15 = vpop.f32.mrf.mxu1  ;;  %4014 = vmatmul.mubr.bf16.vlgmr.msra.gmra.mxu0 %v2575_v51 }
 0x177   : > { %v2451_v30 = vadd.f32 %v4885_v6, %v2204_v16  ;;  %v2517_v26 = vmax.f32 %v2453_v10, 0.0  ;;  %v2225_v18 = vadd.f32 %v3943_v15, %v4838_v37 }
 0x178   : > { %v2216_v22 = vpop.f32.mrf.mxu1 }
 0x179   : > { %v2515_v57 = vmax.f32 %v2451_v30, 0.0  ;;  %v2217_v27 = vadd.f32 %v2216_v22, %v1665_v40  ;;  %v2577_v56 = vpack.c.bf16 %v2517_v26, %v2516_v14  ;;  %v2456_v7 = vadd.f32 %v4885_v6, %v2225_v18 }
 0x17a   : > { %v3944_v28 = vpop.f32.mrf.mxu1 }
 0x17b   : > { %v2228_v34 = vadd.f32 %v3944_v28, %v4848_v43  ;;  %v2576_v54 = vpack.c.bf16 %v2515_v57, %v2514_v53  ;;  %v2454_v51 = vadd.f32 %v4885_v6, %v2217_v27  ;;  %v3890_v43 = vpop.f32.mrf.mxu0  ;;  %v2520_v30 = vmax.f32 %v2456_v7, 0.0 }
 0x17c   : > { %v2219_v60 = vpop.f32.mrf.mxu1 }
 0x17d   : > { %v2457_v3 = vadd.f32 %v4885_v6, %v2228_v34  ;;  %v2220_v63 = vadd.f32 %v2219_v60, %v4854_v46  ;;  %4017 = vmatprep.mubr.bf16.mxu0 %v2576_v54  ;;  %v2518_v16 = vmax.f32 %v2454_v51, 0.0  ;;  %v1716_v14 = vpop.f32.mrf.mxu0 }
 0x17e   : > { %v3947_v40 = vpop.f32.mrf.mxu1  ;;  %4018 = vmatmul.mubr.bf16.gmra.mxu0 %v2577_v56 }
 0x17f   : > { %v2455_v37 = vadd.f32 %v4885_v6, %v2220_v63  ;;  %v2521_v2 = vmax.f32 %v2457_v3, 0.0  ;;  %v2241_v26 = vadd.f32 %v3947_v40, %v4860_v49 }
 0x180   : > { %v2232_v10 = vpop.f32.mrf.mxu1 }
 0x181   : > { %v2519_v21 = vmax.f32 %v2455_v37, 0.0  ;;  %v2233_v15 = vadd.f32 %v2232_v10, %v4866_v52  ;;  %v2579_v27 = vpack.c.bf16 %v2521_v2, %v2520_v30  ;;  %v2460_v54 = vadd.f32 %v4885_v6, %v2241_v26 }
 0x182   : > { %v3948_v22 = vpop.f32.mrf.mxu1 }
 0x183   : > { %v2244_v46 = vadd.f32 %v3948_v22, %v4872_v55  ;;  %v2578_v53 = vpack.c.bf16 %v2519_v21, %v2518_v16  ;;  %v2458_v18 = vadd.f32 %v4885_v6, %v2233_v15  ;;  %v3893_v55 = vpop.f32.mrf.mxu0  ;;  %v2524_v7 = vmax.f32 %v2460_v54, 0.0 }
 0x184   : > { %v2235_v57 = vpop.f32.mrf.mxu1 }
 0x185   : > { %v2461_v28 = vadd.f32 %v4885_v6, %v2244_v46  ;;  %v2236_v34 = vadd.f32 %v2235_v57, %v4878_v58  ;;  %4021 = vmatprep.mubr.bf16.mxu0 %v2578_v53  ;;  %v2522_v51 = vmax.f32 %v2458_v18, 0.0  ;;  %v1729_v21 = vpop.f32.mrf.mxu0 }
 0x186   : > { %v3951_v52 = vpop.f32.mrf.mxu1  ;;  %4022 = vmatmul.mubr.bf16.gmra.mxu0 %v2579_v27 }
 0x187   : > { %v2459_v49 = vadd.f32 %v4885_v6, %v2236_v34  ;;  %v2525_v60 = vmax.f32 %v2461_v28, 0.0  ;;  %v2257_v40 = vadd.f32 %v3951_v52, %v4880_v62 }
 0x188   : > { %v2248_v56 = vpop.f32.mrf.mxu1 }
 0x189   : > { %v2523_v3 = vmax.f32 %v2459_v49, 0.0  ;;  %v2249_v63 = vadd.f32 %v2248_v56, %v4887_v11  ;;  %v2581_v16 = vpack.c.bf16 %v2525_v60, %v2524_v7  ;;  %v2464_v22 = vadd.f32 %v4885_v6, %v2257_v40 }
 0x18a   : > { %v3952_v37 = vpop.f32.mrf.mxu1 }
 0x18b   : > { %v2260_v58 = vadd.f32 %v3952_v37, %v4893_v59  ;;  %v2580_v2 = vpack.c.bf16 %v2523_v3, %v2522_v51  ;;  %v2462_v15 = vadd.f32 %v4885_v6, %v2249_v63  ;;  %v3894_v59 = vpop.f32.mrf.mxu0  ;;  %v2528_v28 = vmax.f32 %v2464_v22, 0.0 }
 0x18c   : > { %v2251_v10 = vpop.f32.mrf.mxu1 }
 0x18d   : > { %v2465_v30 = vadd.f32 %v4885_v6, %v2260_v58  ;;  %v2252_v26 = vadd.f32 %v2251_v10, %v4895_v24  ;;  %4025 = vmatprep.mubr.bf16.mxu0 %v2580_v2  ;;  %v2526_v57 = vmax.f32 %v2462_v15, 0.0  ;;  %v1732_v56 = vpop.f32.mrf.mxu0 }
 0x18e   : > { %v3955_v11 = vpop.f32.mrf.mxu1  ;;  %4026 = vmatmul.mubr.bf16.gmra.mxu0 %v2581_v16 }
 0x18f   : > { %v2463_v62 = vadd.f32 %v4885_v6, %v2252_v26  ;;  %v2529_v46 = vmax.f32 %v2465_v30, 0.0  ;;  %v2273_v34 = vadd.f32 %v3955_v11, %v4901_v32  ;;  %v3897_v58 = vpop.f32.mrf.mxu0 }
 0x190   : > { %v2264_v53 = vpop.f32.mrf.mxu1 }
 0x191   : > { %v2527_v27 = vmax.f32 %v2463_v62, 0.0  ;;  %v2265_v18 = vadd.f32 %v2264_v53, %v1713_v20  ;;  %v2583_v60 = vpack.c.bf16 %v2529_v46, %v2528_v28  ;;  %v2468_v7 = vadd.f32 %v4885_v6, %v2273_v34  ;;  %v1745_v11 = vpop.f32.mrf.mxu0 }
 0x192   : > { %v3956_v54 = vpop.f32.mrf.mxu1 }
 0x193   : > { %v2276_v52 = vadd.f32 %v3956_v54, %v3890_v43  ;;  %v2582_v49 = vpack.c.bf16 %v2527_v27, %v2526_v57  ;;  %v2466_v51 = vadd.f32 %v4885_v6, %v2265_v18  ;;  %v2532_v16 = vmax.f32 %v2468_v7, 0.0 }
 0x194   : > { %v2267_v24 = vpop.f32.mrf.mxu1 }
 0x195   : > { %v2469_v3 = vadd.f32 %v4885_v6, %v2276_v52  ;;  %v2268_v63 = vadd.f32 %v2267_v24, %v1716_v14  ;;  %4029 = vmatprep.mubr.bf16.mxu0 %v2582_v49  ;;  %v2530_v43 = vmax.f32 %v2466_v51, 0.0 }
 0x196   : > { %v3959_v40 = vpop.f32.mrf.mxu1  ;;  %4030 = vmatmul.mubr.bf16.gmra.mxu0 %v2583_v60 }
 0x197   : > { %v2467_v20 = vadd.f32 %v4885_v6, %v2268_v63  ;;  %v2533_v37 = vmax.f32 %v2469_v3, 0.0  ;;  %v2289_v15 = vadd.f32 %v3959_v40, %v3893_v55  ;;  %v3898_v55 = vpop.f32.mrf.mxu0 }
 0x198   : > { %v2280_v32 = vpop.f32.mrf.mxu1 }
 0x199   : > { %v2531_v2 = vmax.f32 %v2467_v20, 0.0  ;;  %v2281_v10 = vadd.f32 %v2280_v32, %v1729_v21  ;;  %v2585_v62 = vpack.c.bf16 %v2533_v37, %v2532_v16  ;;  %v2472_v27 = vadd.f32 %v4885_v6, %v2289_v15  ;;  %v1748_v63 = vpop.f32.mrf.mxu0 }
 0x19a   : > { %v3960_v30 = vpop.f32.mrf.mxu1 }
 0x19b   : > { %v2292_v26 = vadd.f32 %v3960_v30, %v3894_v59  ;;  %v2584_v22 = vpack.c.bf16 %v2531_v2, %v2530_v43  ;;  %v2470_v46 = vadd.f32 %v4885_v6, %v2281_v10  ;;  %v2536_v49 = vmax.f32 %v2472_v27, 0.0 }
 0x19c   : > { %v2283_v14 = vpop.f32.mrf.mxu1 }
 0x19d   : > { %v2473_v53 = vadd.f32 %v4885_v6, %v2292_v26  ;;  %v2284_v57 = vadd.f32 %v2283_v14, %v1732_v56  ;;  %4033 = vmatprep.mubr.bf16.mxu0 %v2584_v22  ;;  %v2534_v59 = vmax.f32 %v2470_v46, 0.0 }
 0x19e   : > { %v3963_v18 = vpop.f32.mrf.mxu1  ;;  %4034 = vmatmul.mubr.bf16.gmra.mxu0 %v2585_v62 }
 0x19f   : > { %v2471_v21 = vadd.f32 %v4885_v6, %v2284_v57  ;;  %v2537_v28 = vmax.f32 %v2473_v53, 0.0  ;;  %v2305_v24 = vadd.f32 %v3963_v18, %v3897_v58 }
 0x1a0   : > { %v2296_v34 = vpop.f32.mrf.mxu1 }
 0x1a1   : > { %v2535_v54 = vmax.f32 %v2471_v21, 0.0  ;;  %v2297_v52 = vadd.f32 %v2296_v34, %v1745_v11  ;;  %v2587_v7 = vpack.c.bf16 %v2537_v28, %v2536_v49  ;;  %v2476_v32 = vadd.f32 %v4885_v6, %v2305_v24 }
 0x1a2   : > { %v3964_v60 = vpop.f32.mrf.mxu1 }
 0x1a3   : > { %v2308_v51 = vadd.f32 %v3964_v60, %v3898_v55  ;;  %v2586_v3 = vpack.c.bf16 %v2535_v54, %v2534_v59  ;;  %v2474_v40 = vadd.f32 %v4885_v6, %v2297_v52  ;;  %v2540_v26 = vmax.f32 %v2476_v32, 0.0 }
 0x1a4   : > { %v2299_v56 = vpop.f32.mrf.mxu1 }
 0x1a5   : > { %v2477_v20 = vadd.f32 %v4885_v6, %v2308_v51  ;;  %v2300_v37 = vadd.f32 %v2299_v56, %v1748_v63  ;;  %4037 = vmatprep.mubr.bf16.mxu0 %v2586_v3  ;;  %v2538_v16 = vmax.f32 %v2474_v40, 0.0 }
 0x1a6   : > { %v3967_v43 = vpop.f32.mrf.mxu1  ;;  %4038 = vmatmul.mubr.bf16.gmra.mxu0 %v2587_v7 }
 0x1a7   : > { %v2475_v2 = vadd.f32 %v4885_v6, %v2300_v37  ;;  %v2541_v10 = vmax.f32 %v2477_v20, 0.0  ;;  %v2321_v22 = vadd.f32 %v3967_v43, %v4788_v61 }
 0x1a8   : > { %v2312_v58 = vpop.f32.mrf.mxu1 }
 0x1a9   : > { %v2539_v15 = vmax.f32 %v2475_v2, 0.0  ;;  %v2313_v30 = vadd.f32 %v2312_v58, %v4792_v0  ;;  %v2589_v53 = vpack.c.bf16 %v2541_v10, %v2540_v26  ;;  %v2480_v21 = vadd.f32 %v4885_v6, %v2321_v22 }
 0x1aa   : > { %v3968_v11 = vpop.f32.mrf.mxu1 }
 0x1ab   : > { %v2324_v14 = vadd.f32 %v3968_v11, %v4794_v1  ;;  %v2588_v62 = vpack.c.bf16 %v2539_v15, %v2538_v16  ;;  %v2478_v57 = vadd.f32 %v4885_v6, %v2313_v30  ;;  %v2544_v54 = vmax.f32 %v2480_v21, 0.0 }
 0x1ac   : > { %v2315_v46 = vpop.f32.mrf.mxu1 }
 0x1ad   : > { %v2481_v27 = vadd.f32 %v4885_v6, %v2324_v14  ;;  %v2316_v18 = vadd.f32 %v2315_v46, %v4798_v4  ;;  %4041 = vmatprep.mubr.bf16.mxu0 %v2588_v62  ;;  %v2542_v34 = vmax.f32 %v2478_v57, 0.0 }
 0x1ae   : > { %v3971_v28 = vpop.f32.mrf.mxu1  ;;  %4042 = vmatmul.mubr.bf16.gmra.mxu0 %v2589_v53 }
 0x1af   : > { %v2479_v0 = vadd.f32 %v4885_v6, %v2316_v18  ;;  %v2545_v61 = vmax.f32 %v2481_v27, 0.0  ;;  %v2337_v52 = vadd.f32 %v3971_v28, %v4800_v5 }
 0x1b0   : > { %v2328_v55 = vpop.f32.mrf.mxu1 }
 0x1b1   : > { %v2543_v1 = vmax.f32 %v2479_v0, 0.0  ;;  %v2329_v59 = vadd.f32 %v2328_v55, %v4804_v8  ;;  %v2591_v51 = vpack.c.bf16 %v2545_v61, %v2544_v54  ;;  %v2484_v7 = vadd.f32 %v4885_v6, %v2337_v52 }
 0x1b2   : > { %v3972_v49 = vpop.f32.mrf.mxu1 }
 0x1b3   : > { %v2340_v24 = vadd.f32 %v3972_v49, %v4806_v9  ;;  %v2590_v4 = vpack.c.bf16 %v2543_v1, %v2542_v34  ;;  %v2482_v3 = vadd.f32 %v4885_v6, %v2329_v59  ;;  %v2548_v43 = vmax.f32 %v2484_v7, 0.0 }
 0x1b4   : > { %v2331_v60 = vpop.f32.mrf.mxu1 }
 0x1b5   : > { %v2485_v63 = vadd.f32 %v4885_v6, %v2340_v24  ;;  %v2332_v56 = vadd.f32 %v2331_v60, %v4810_v12  ;;  %4045 = vmatprep.mubr.bf16.mxu0 %v2590_v4  ;;  %v2546_v37 = vmax.f32 %v2482_v3, 0.0 }
 0x1b6   : > { %v3975_v40 = vpop.f32.mrf.mxu1  ;;  %4046 = vmatmul.mubr.bf16.gmra.mxu0 %v2591_v51 }
 0x1b7   : > { %v2483_v8 = vadd.f32 %v4885_v6, %v2332_v56  ;;  %v2549_v5 = vmax.f32 %v2485_v63, 0.0  ;;  %v2353_v2 = vadd.f32 %v3975_v40, %v4812_v13 }
 0x1b8   : > { %v2344_v20 = vpop.f32.mrf.mxu1 }
 0x1b9   : > { %v2547_v9 = vmax.f32 %v2483_v8, 0.0  ;;  %v2345_v32 = vadd.f32 %v2344_v20, %v4816_v17  ;;  %v2593_v15 = vpack.c.bf16 %v2549_v5, %v2548_v43  ;;  %v2488_v11 = vadd.f32 %v4885_v6, %v2353_v2 }
 0x1ba   : > { %v3976_v10 = vpop.f32.mrf.mxu1 }
 0x1bb   : > { %v2356_v58 = vadd.f32 %v3976_v10, %v4818_v19  ;;  %v2592_v12 = vpack.c.bf16 %v2547_v9, %v2546_v37  ;;  %v2486_v30 = vadd.f32 %v4885_v6, %v2345_v32  ;;  %v2552_v57 = vmax.f32 %v2488_v11, 0.0 }
 0x1bc   : > { %v2347_v16 = vpop.f32.mrf.mxu1 }
 0x1bd   : > { %v2489_v26 = vadd.f32 %v4885_v6, %v2356_v58  ;;  %v2348_v22 = vadd.f32 %v2347_v16, %v4822_v23  ;;  %4049 = vmatprep.mubr.bf16.mxu0 %v2592_v12  ;;  %v2550_v46 = vmax.f32 %v2486_v30, 0.0 }
 0x1be   : > { %v3979_v14 = vpop.f32.mrf.mxu1  ;;  %4050 = vmatmul.mubr.bf16.gmra.mxu0 %v2593_v15 }
 0x1bf   : > { %v2487_v17 = vadd.f32 %v4885_v6, %v2348_v22  ;;  %v2553_v13 = vmax.f32 %v2489_v26, 0.0  ;;  %v2369_v27 = vadd.f32 %v3979_v14, %v4824_v25 }
 0x1c0   : > { %v2360_v62 = vpop.f32.mrf.mxu1 }
 0x1c1   : > { %v2551_v19 = vmax.f32 %v2487_v17, 0.0  ;;  %v2361_v53 = vadd.f32 %v2360_v62, %v4828_v29  ;;  %v2595_v0 = vpack.c.bf16 %v2553_v13, %v2552_v57  ;;  %v2492_v1 = vadd.f32 %v4885_v6, %v2369_v27 }
 0x1c2   : > { %v3980_v18 = vpop.f32.mrf.mxu1 }
 0x1c3   : > { %v2372_v21 = vadd.f32 %v3980_v18, %v4830_v31  ;;  %v2594_v23 = vpack.c.bf16 %v2551_v19, %v2550_v46  ;;  %v2490_v61 = vadd.f32 %v4885_v6, %v2361_v53  ;;  %v2556_v24 = vmax.f32 %v2492_v1, 0.0 }
 0x1c4   : > { %v2363_v28 = vpop.f32.mrf.mxu1 }
 0x1c5   : > { %v2493_v55 = vadd.f32 %v4885_v6, %v2372_v21  ;;  %v2364_v34 = vadd.f32 %v2363_v28, %v4832_v33  ;;  %4053 = vmatprep.mubr.bf16.mxu0 %v2594_v23  ;;  %v2554_v52 = vmax.f32 %v2490_v61, 0.0  ;;  %v5305_v21 = vld [vmem:[#allocation5_spill] sm:$0xff] }
 0x1c6   : > { %v3983_v59 = vpop.f32.mrf.mxu1  ;;  %4054 = vmatmul.mubr.bf16.gmra.mxu0 %v2595_v0 }
 0x1c7   : > { %v2491_v29 = vadd.f32 %v4885_v6, %v2364_v34  ;;  %v2557_v25 = vmax.f32 %v2493_v55, 0.0  ;;  %v2385_v4 = vadd.f32 %v3983_v59, %v4834_v35  ;;  %v5306_v34 = vld [vmem:[#allocation7_spill] sm:$0xff] }
 0x1c8   : > { %v2376_v54 = vpop.f32.mrf.mxu1 }
 0x1c9   : > { %v2555_v31 = vmax.f32 %v2491_v29, 0.0  ;;  %v2377_v49 = vadd.f32 %v2376_v54, %v4836_v36  ;;  %v2597_v63 = vpack.c.bf16 %v2557_v25, %v2556_v24  ;;  %v2496_v8 = vadd.f32 %v4885_v6, %v2385_v4  ;;  %v5307_v29 = vld [vmem:[#allocation6_spill] sm:$0xff] }
 0x1ca   : > { %v3984_v60 = vpop.f32.mrf.mxu1 }
 0x1cb   : > { %v2388_v51 = vadd.f32 %v3984_v60, %v4840_v38  ;;  %v2596_v33 = vpack.c.bf16 %v2555_v31, %v2554_v52  ;;  %v2494_v56 = vadd.f32 %v4885_v6, %v2377_v49  ;;  %v2560_v32 = vmax.f32 %v2496_v8, 0.0  ;;  %v5308_v52 = vld [vmem:[#allocation8_spill] sm:$0xff] }
 0x1cc   : > { %v2379_v3 = vpop.f32.mrf.mxu1 }
 0x1cd   : > { %v2497_v7 = vadd.f32 %v4885_v6, %v2388_v51  ;;  %v2380_v40 = vadd.f32 %v2379_v3, %v4842_v39  ;;  %4057 = vmatprep.mubr.bf16.mxu0 %v2596_v33  ;;  %v2558_v37 = vmax.f32 %v2494_v56, 0.0  ;;  %v5309_v33 = vld [vmem:[#allocation9_spill] sm:$0xff] }
 0x1ce   : > { %v3987_v5 = vpop.f32.mrf.mxu1  ;;  %4058 = vmatmul.mubr.bf16.gmra.mxu0 %v2597_v63 }
 0x1cf   : > { %v2495_v36 = vadd.f32 %v4885_v6, %v2380_v40  ;;  %v2561_v35 = vmax.f32 %v2497_v7, 0.0  ;;  %v2401_v43 = vadd.f32 %v3987_v5, %v4844_v41 }
 0x1d0   : > { %v2392_v20 = vpop.f32.mrf.mxu1 }
 0x1d1   : > { %v2559_v38 = vmax.f32 %v2495_v36, 0.0  ;;  %v2393_v9 = vadd.f32 %v2392_v20, %v4846_v42  ;;  %v2599_v12 = vpack.c.bf16 %v2561_v35, %v2560_v32  ;;  %v2500_v26 = vadd.f32 %v4885_v6, %v2401_v43  ;;  %v3034_v20 = vpop.permute.xlu0 %3033 }
 0x1d2   : > { %v3988_v2 = vpop.f32.mrf.mxu1 }
 0x1d3   : > { %v2404_v10 = vadd.f32 %v3988_v2, %v4850_v44  ;;  %v2598_v39 = vpack.c.bf16 %v2559_v38, %v2558_v37  ;;  %v2498_v16 = vadd.f32 %v4885_v6, %v2393_v9  ;;  %v2564_v13 = vmax.f32 %v2500_v26, 0.0  ;;  %v3044_v37 = vpop.permute.xlu1 %3043 }
 0x1d4   : > { %v2395_v58 = vpop.f32.mrf.mxu1 }
 0x1d5   : > { %v2501_v15 = vadd.f32 %v4885_v6, %v2404_v10  ;;  %v2396_v30 = vadd.f32 %v2395_v58, %v4852_v45  ;;  %4061 = vmatprep.mubr.bf16.mxu0 %v2598_v39  ;;  %v2562_v14 = vmax.f32 %v2498_v16, 0.0  ;;  %v3039_v38 = vpop.permute.xlu0 %3038 }
 0x1d6   : > { %v3991_v22 = vpop.f32.mrf.mxu1  ;;  %4062 = vmatmul.mubr.bf16.gmra.mxu0 %v2599_v12 }
 0x1d7   : > { %v2499_v42 = vadd.f32 %v4885_v6, %v2396_v30  ;;  %v2565_v41 = vmax.f32 %v2501_v15, 0.0  ;;  %v2417_v62 = vadd.f32 %v3991_v22, %v4856_v47  ;;  %v3049_v9 = vpop.permute.xlu1 %3048 }
 0x1d8   : > { %v2408_v11 = vpop.f32.mrf.mxu1 }
 0x1d9   : > { %v2563_v44 = vmax.f32 %v2499_v42, 0.0  ;;  %v2409_v17 = vadd.f32 %v2408_v11, %v4858_v48  ;;  %v2601_v57 = vpack.c.bf16 %v2565_v41, %v2564_v13  ;;  %v2504_v28 = vadd.f32 %v4885_v6, %v2417_v62  ;;  %v3054_v32 = vpop.permute.xlu0 %3053 }
 0x1da   : > { %v3992_v46 = vpop.f32.mrf.mxu1 }
 0x1db   : > { %v2420_v19 = vadd.f32 %v3992_v46, %v4862_v50  ;;  %v2600_v45 = vpack.c.bf16 %v2563_v44, %v2562_v14  ;;  %v2502_v27 = vadd.f32 %v4885_v6, %v2409_v17  ;;  %v2568_v59 = vmax.f32 %v2504_v28, 0.0  ;;  %v3059_v43 = vpop.permute.xlu1 %3058  ;;  %v5030_v46 = vld [vmem:[%s5297_s6 + $0x1] ss:$0 sm:$0xff] }
 0x1dc   : > { %v2411_v53 = vpop.f32.mrf.mxu1 }
 0x1dd   : > { %v2505_v18 = vadd.f32 %v4885_v6, %v2420_v19  ;;  %v2412_v23 = vadd.f32 %v2411_v53, %v5305_v21  ;;  %4065 = vmatprep.mubr.bf16.mxu0 %v2600_v45  ;;  %v2566_v55 = vmax.f32 %v2502_v27, 0.0  ;;  %v3064_v2 = vpop.permute.xlu0 %3063 }
 0x1de   : > { %v3995_v0 = vpop.f32.mrf.mxu1  ;;  %4066 = vmatmul.mubr.bf16.gmra.mxu0 %v2601_v57 }
 0x1df   : > { %v2503_v48 = vadd.f32 %v4885_v6, %v2412_v23  ;;  %v2569_v47 = vmax.f32 %v2505_v18, 0.0  ;;  %v2433_v25 = vadd.f32 %v3995_v0, %v5307_v29  ;;  %v3069_v10 = vpop.permute.xlu1 %3068 }
 0x1e0   : > { %v2424_v61 = vpop.f32.mrf.mxu1 }
 0x1e1   : > { %v2567_v50 = vmax.f32 %v2503_v48, 0.0  ;;  %v2425_v1 = vadd.f32 %v2424_v61, %v5306_v34  ;;  %v2603_v4 = vpack.c.bf16 %v2569_v47, %v2568_v59  ;;  %v2508_v63 = vadd.f32 %v4885_v6, %v2433_v25  ;;  %v3074_v39 = vpop.permute.xlu0 %3073 }
 0x1e2   : > { %v3996_v54 = vpop.f32.mrf.mxu1 }
 0x1e3   : > { %v2436_v31 = vadd.f32 %v3996_v54, %v5308_v52  ;;  %v2602_v49 = vpack.c.bf16 %v2567_v50, %v2566_v55  ;;  %v2506_v60 = vadd.f32 %v4885_v6, %v2425_v1  ;;  %v2572_v5 = vmax.f32 %v2508_v63, 0.0  ;;  %v5003_v58 = vpop.permute.xlu1 %3078 }
 0x1e4   : > { %v2427_v24 = vpop.f32.mrf.mxu1 }
 0x1e5   : > { %v2509_v51 = vadd.f32 %v4885_v6, %v2436_v31  ;;  %v2428_v3 = vadd.f32 %v2427_v24, %v5309_v33  ;;  %4069 = vmatprep.mubr.bf16.mxu0 %v2602_v49  ;;  %v2570_v40 = vmax.f32 %v2506_v60, 0.0 }
 0x1e6   : > { %4070 = vmatmul.mubr.bf16.gmra.mxu0 %v2603_v4 }
 0x1e7   : > { %v2507_v56 = vadd.f32 %v4885_v6, %v2428_v3  ;;  %v2573_v7 = vmax.f32 %v2509_v51, 0.0  ;;  %v3084_v6 = vpop.permute.xlu0 %3083  ;;  %v3089_v12 = vpop.permute.xlu1 %3088 }
 0x1e9   : > { %v2571_v8 = vmax.f32 %v2507_v56, 0.0  ;;  %v2605_v35 = vpack.c.bf16 %v2573_v7, %v2572_v5 }
 0x1eb   : > { %v2604_v36 = vpack.c.bf16 %v2571_v8, %v2570_v40  ;;  %v5005_v16 = vpop.permute.xlu0 %3093  ;;  %v5007_v15 = vpop.permute.xlu1 %3098 }
 0x1ed   : > { %4073 = vmatprep.mubr.bf16.mxu0 %v2604_v36 }
 0x1ee   : > { %4074 = vmatmul.mubr.bf16.gmra.mxu0 %v2605_v35 }
 0x1ef   : > { %v5009_v30 = vpop.permute.xlu0 %3103  ;;  %v5011_v26 = vpop.permute.xlu1 %3108 }
 0x1f3   : > { %v5013_v22 = vpop.permute.xlu0 %3113  ;;  %v5015_v42 = vpop.permute.xlu1 %3118 }
 0x1f7   : > { %v5017_v41 = vpop.permute.xlu0 %3123  ;;  %v5019_v11 = vpop.permute.xlu1 %3128 }
 0x1fb   : > { %v5021_v14 = vpop.permute.xlu0 %3133  ;;  %v5023_v44 = vpop.permute.xlu1 %3138 }
 0x1ff   : > { %v5025_v13 = vpop.permute.xlu0 %3143  ;;  %v5032_v45 = vpop.permute.xlu1 %3148 }
 0x203   : > { %v5035_v27 = vpop.permute.xlu0 %3153  ;;  %v5041_v55 = vpop.permute.xlu1 %3158 }
 0x207   : > { %v5045_v54 = vpop.permute.xlu0 %3163  ;;  %v5049_v56 = vpop.permute.xlu1 %3168 }
 0x20b   : > { %v5052_v36 = vpop.permute.xlu0 %3173 }
 0x236   : > { %v4015_v17 = vpop.f32.mrf.mxu0 }
 0x237   : > { %v2721_v57 = vadd.f32 %v4015_v17, %v5030_v46 }
 0x238   : > { %v2712_v62 = vpop.f32.mrf.mxu0 }
 0x239   : > { %v2713_v18 = vadd.f32 %v5030_v46, %v2712_v62  ;;  %v3353_v0 = vadd.f32 %v3044_v37, %v2721_v57 }
 0x23a   : > { %v4016_v19 = vpop.f32.mrf.mxu0 }
 0x23b   : > { %v2724_v48 = vadd.f32 %v4016_v19, %v5030_v46  ;;  %v3351_v50 = vadd.f32 %v3034_v20, %v2713_v18 }
 0x23c   : > { %v2715_v53 = vpop.f32.mrf.mxu0 }
 0x23d   : > { %v2716_v1 = vadd.f32 %v5030_v46, %v2715_v53  ;;  %v3354_v31 = vadd.f32 %v3049_v9, %v2724_v48  ;;  %v5060_v53 = vpop.permute.xlu0 %3183 }
 0x23e   : > { %v4019_v21 = vpop.f32.mrf.mxu0 }
 0x23f   : > { %v2737_v23 = vadd.f32 %v4019_v21, %v5030_v46  ;;  %v3352_v51 = vadd.f32 %v3039_v38, %v2716_v1 }
 0x240   : > { %v2728_v28 = vpop.f32.mrf.mxu0 }
 0x241   : > { %v3357_v47 = vadd.f32 %v3064_v2, %v2737_v23  ;;  %v2729_v61 = vadd.f32 %v5030_v46, %v2728_v28 }
 0x242   : > { %v4020_v34 = vpop.f32.mrf.mxu0 }
 0x243   : > { %v3416_v59 = vmax.f32 %v3353_v0, %v3357_v47  ;;  %v3355_v29 = vadd.f32 %v3054_v32, %v2729_v61  ;;  %v2740_v25 = vadd.f32 %v4020_v34, %v5030_v46  ;;  %v5070_v34 = vpop.permute.xlu0 %3193 }
 0x244   : > { %v2731_v52 = vpop.f32.mrf.mxu0 }
 0x245   : > { %v3415_v49 = vmax.f32 %v3351_v50, %v3355_v29  ;;  %v3358_v24 = vadd.f32 %v3069_v10, %v2740_v25  ;;  %v2732_v4 = vadd.f32 %v5030_v46, %v2731_v52  ;;  %v5056_v10 = vpop.permute.xlu1 %3178 }
 0x246   : > { %v4023_v60 = vpop.f32.mrf.mxu0 }
 0x247   : > { %v3447_v33 = vmax.f32 %v3354_v31, %v3358_v24  ;;  %v3356_v3 = vadd.f32 %v3059_v43, %v2732_v4  ;;  %v2753_v63 = vadd.f32 %v4023_v60, %v5030_v46 }
 0x248   : > { %v2744_v7 = vpop.f32.mrf.mxu0 }
 0x249   : > { %v3446_v40 = vmax.f32 %v3352_v51, %v3356_v3  ;;  %v3361_v8 = vadd.f32 %v3084_v6, %v2753_v63  ;;  %v2745_v5 = vadd.f32 %v5030_v46, %v2744_v7  ;;  %v5066_v48 = vpop.permute.xlu1 %3188  ;;  %v5082_v51 = vpop.permute.xlu0 %3203 }
 0x24a   : > { %v4024_v35 = vpop.f32.mrf.mxu0 }
 0x24b   : > { %v3418_v20 = vmax.f32 %v3416_v59, %v3361_v8  ;;  %v3359_v37 = vadd.f32 %v3074_v39, %v2745_v5  ;;  %v2756_v9 = vadd.f32 %v4024_v35, %v5030_v46 }
 0x24c   : > { %v2747_v32 = vpop.f32.mrf.mxu0 }
 0x24d   : > { %v3417_v38 = vmax.f32 %v3415_v49, %v3359_v37  ;;  %v3362_v2 = vadd.f32 %v3089_v12, %v2756_v9  ;;  %v2748_v43 = vadd.f32 %v5030_v46, %v2747_v32  ;;  %v5076_v49 = vpop.permute.xlu1 %3198 }
 0x24e   : > { %v4027_v17 = vpop.f32.mrf.mxu0 }
 0x24f   : > { %v3449_v62 = vmax.f32 %v3447_v33, %v3362_v2  ;;  %v3360_v6 = vadd.f32 %v5003_v58, %v2748_v43  ;;  %v2769_v19 = vadd.f32 %v4027_v17, %v5030_v46 }
 0x250   : > { %v2760_v57 = vpop.f32.mrf.mxu0 }
 0x251   : > { %v3448_v18 = vmax.f32 %v3446_v40, %v3360_v6  ;;  %v3365_v39 = vadd.f32 %v5009_v30, %v2769_v19  ;;  %v2761_v21 = vadd.f32 %v5030_v46, %v2760_v57  ;;  %v5092_v5 = vpop.permute.xlu1 %3208 }
 0x252   : > { %v4028_v23 = vpop.f32.mrf.mxu0 }
 0x253   : > { %v3420_v12 = vmax.f32 %v3418_v20, %v3365_v39  ;;  %v3363_v28 = vadd.f32 %v5005_v16, %v2761_v21  ;;  %v2772_v0 = vadd.f32 %v4028_v23, %v5030_v46 }
 0x254   : > { %v2763_v47 = vpop.f32.mrf.mxu0 }
 0x255   : > { %v3419_v58 = vmax.f32 %v3417_v38, %v3363_v28  ;;  %v3366_v61 = vadd.f32 %v5011_v26, %v2772_v0  ;;  %v2764_v50 = vadd.f32 %v5030_v46, %v2763_v47  ;;  %v5110_v17 = vpop.permute.xlu1 %3218 }
 0x256   : > { %v4031_v1 = vpop.f32.mrf.mxu0 }
 0x257   : > { %v3451_v30 = vmax.f32 %v3449_v62, %v3366_v61  ;;  %v3364_v59 = vadd.f32 %v5007_v15, %v2764_v50  ;;  %v2785_v29 = vadd.f32 %v4031_v1, %v5030_v46 }
 0x258   : > { %v2776_v25 = vpop.f32.mrf.mxu0 }
 0x259   : > { %v3450_v16 = vmax.f32 %v3448_v18, %v3364_v59  ;;  %v3369_v52 = vadd.f32 %v5017_v41, %v2785_v29  ;;  %v2777_v31 = vadd.f32 %v5030_v46, %v2776_v25  ;;  %v5119_v18 = vpop.permute.xlu1 %3228 }
 0x25a   : > { %v4032_v24 = vpop.f32.mrf.mxu0 }
 0x25b   : > { %v5078_v26 = vmax.f32 %v3420_v12, %v3369_v52  ;;  %v3367_v4 = vadd.f32 %v5013_v22, %v2777_v31  ;;  %v2788_v60 = vadd.f32 %v4032_v24, %v5030_v46 }
 0x25c   : > { %v2779_v15 = vpop.f32.mrf.mxu0 }
 0x25d   : > { %v5084_v33 = vmax.f32 %v3419_v58, %v3367_v4  ;;  %v3370_v3 = vadd.f32 %v5019_v11, %v2788_v60  ;;  %v2780_v41 = vadd.f32 %v5030_v46, %v2779_v15  ;;  %v5100_v11 = vpop.permute.xlu0 %3213  ;;  %v5123_v28 = vpop.permute.xlu1 %3238 }
 0x25e   : > { %v4035_v63 = vpop.f32.mrf.mxu0  ;;  %5310 = vst [vmem:[#allocation5_spill] sm:$0xff] %v5123_v28 }
 0x25f   : > { %v5088_v7 = vmax.f32 %v3451_v30, %v3370_v3  ;;  %v3368_v40 = vadd.f32 %v5015_v42, %v2780_v41  ;;  %v2801_v8 = vadd.f32 %v4035_v63, %v5030_v46 }
 0x260   : > { %v2792_v22 = vpop.f32.mrf.mxu0 }
 0x261   : > { %v5094_v35 = vmax.f32 %v3450_v16, %v3368_v40  ;;  %v5097_v20 = vadd.f32 %v5025_v13, %v2801_v8  ;;  %v2793_v37 = vadd.f32 %v5030_v46, %v2792_v22  ;;  %v5115_v6 = vpop.permute.xlu0 %3223  ;;  %v5127_v61 = vpop.permute.xlu1 %3248 }
 0x262   : > { %v4036_v9 = vpop.f32.mrf.mxu0 }
 0x263   : > { %v5105_v42 = vadd.f32 %v5021_v14, %v2793_v37  ;;  %v2804_v57 = vadd.f32 %v4036_v9, %v5030_v46 }
 0x264   : > { %v2795_v38 = vpop.f32.mrf.mxu0 }
 0x265   : > { %v2796_v43 = vadd.f32 %v5030_v46, %v2795_v38  ;;  %v5121_v21 = vpop.permute.xlu0 %3233  ;;  %v5131_v29 = vpop.permute.xlu1 %3258 }
 0x266   : > { %v4039_v13 = vpop.f32.mrf.mxu0  ;;  %5312 = vst [vmem:[#allocation6_spill] sm:$0xff] %v5131_v29 }
 0x267   : > { %v5113_v62 = vadd.f32 %v5023_v44, %v2796_v43  ;;  %v2817_v32 = vadd.f32 %v4039_v13, %v5030_v46 }
 0x268   : > { %v2808_v19 = vpop.f32.mrf.mxu0 }
 0x269   : > { %v5125_v47 = vpop.permute.xlu0 %3243  ;;  %v5135_v24 = vpop.permute.xlu1 %3268  ;;  %v3377_v13 = vadd.f32 %v5045_v54, %v2817_v32 }
 0x26a   : > { %v4040_v14 = vpop.f32.mrf.mxu0  ;;  %5313 = vst [vmem:[#allocation8_spill] sm:$0xff] %v5135_v24 }
 0x26c   : > { %v2811_v39 = vpop.f32.mrf.mxu0 }
 0x26d   : > { %v5129_v1 = vpop.permute.xlu0 %3253  ;;  %v5139_v41 = vpop.permute.xlu1 %3278 }
 0x26e   : > { %v4043_v23 = vpop.f32.mrf.mxu0  ;;  %5311 = vst [vmem:[#allocation7_spill] sm:$0xff] %v5129_v1  ;;  %5315 = vst [vmem:[#allocation10_spill] sm:$0xff] %v5139_v41  ;;  %v2809_v41 = vadd.f32 %v5030_v46, %v2808_v19 }
 0x26f   : > { %v2833_v9 = vadd.f32 %v4043_v23, %v5030_v46 }
 0x270   : > { %v2824_v12 = vpop.f32.mrf.mxu0  ;;  %v3375_v19 = vadd.f32 %v5035_v27, %v2809_v41 }
 0x271   : > { %v5133_v16 = vpop.permute.xlu0 %3263  ;;  %v5149_v37 = vpop.permute.xlu1 %3288  ;;  %v3381_v54 = vadd.f32 %v5060_v53, %v2833_v9 }
 0x272   : > { %v4044_v0 = vpop.f32.mrf.mxu0  ;;  %5317 = vst [vmem:[#allocation12_spill] sm:$0xff] %v5149_v37  ;;  %v2820_v37 = vadd.f32 %v4040_v14, %v5030_v46 }
 0x274   : > { %v2827_v44 = vpop.f32.mrf.mxu0  ;;  %v3378_v23 = vadd.f32 %v5049_v56, %v2820_v37 }
 0x275   : > { %v5137_v60 = vpop.permute.xlu0 %3273 }
 0x276   : > { %v4047_v58 = vpop.f32.mrf.mxu0  ;;  %5314 = vst [vmem:[#allocation9_spill] sm:$0xff] %v5137_v60  ;;  %v5162_v60 = vpop.permute.xlu1 %3298 }
 0x277   : > { %5320 = vst [vmem:[#allocation15_spill] sm:$0xff] %v5162_v60  ;;  %v2836_v60 = vadd.f32 %v4044_v0, %v5030_v46 }
 0x278   : > { %v2840_v50 = vpop.f32.mrf.mxu0 }
 0x279   : > { %v5143_v40 = vpop.permute.xlu0 %3283  ;;  %v2841_v27 = vadd.f32 %v5030_v46, %v2840_v50  ;;  %v3382_v53 = vadd.f32 %v5066_v48, %v2836_v60 }
 0x27a   : > { %v4048_v30 = vpop.f32.mrf.mxu0  ;;  %5316 = vst [vmem:[#allocation11_spill] sm:$0xff] %v5143_v40  ;;  %v3374_v40 = vadd.f32 %v5032_v45, %v2804_v57  ;;  %v2828_v45 = vadd.f32 %v5030_v46, %v2827_v44  ;;  %v2849_v57 = vadd.f32 %v4047_v58, %v5030_v46  ;;  %v5185_v32 = vpop.permute.xlu1 %3308  ;;  %v5323_v44 = vmax.f32 %v5084_v33, %v5105_v42 }
 0x27b   : > { %v2852_v58 = vadd.f32 %v4048_v30, %v5030_v46 }
 0x27c   : > { %v2843_v59 = vpop.f32.mrf.mxu0  ;;  %v3455_v14 = vmax.f32 %v5088_v7, %v3374_v40  ;;  %v3425_v7 = vmax.f32 %v5323_v44, %v3375_v19  ;;  %v3380_v50 = vadd.f32 %v5056_v10, %v2828_v45  ;;  %v3385_v40 = vadd.f32 %v5082_v51, %v2849_v57 }
 0x27d   : > { %v5153_v43 = vpop.permute.xlu0 %3293  ;;  %v2844_v56 = vadd.f32 %v5030_v46, %v2843_v59  ;;  %v3383_v10 = vadd.f32 %v5070_v34, %v2841_v27  ;;  %v3386_v51 = vadd.f32 %v5092_v5, %v2852_v58 }
 0x27e   : > { %v4051_v25 = vpop.f32.mrf.mxu0  ;;  %5318 = vst [vmem:[#allocation13_spill] sm:$0xff] %v5153_v43  ;;  %v2812_v43 = vadd.f32 %v5030_v46, %v2811_v39  ;;  %v3457_v37 = vmax.f32 %v3455_v14, %v3378_v23  ;;  %v5215_v19 = vpop.permute.xlu1 %3318 }
 0x27f   : > { %v3384_v60 = vadd.f32 %v5076_v49, %v2844_v56 }
 0x280   : > { %v2856_v52 = vpop.f32.mrf.mxu0 }
 0x281   : > { %v5170_v28 = vpop.permute.xlu0 %3303  ;;  %v2857_v33 = vadd.f32 %v5030_v46, %v2856_v52 }
 0x282   : > { %v4052_v31 = vpop.f32.mrf.mxu0  ;;  %5321 = vst [vmem:[#allocation16_spill] sm:$0xff] %v5170_v28  ;;  %v3376_v28 = vadd.f32 %v5041_v55, %v2812_v43 }
 0x283   : > { %v2868_v42 = vadd.f32 %v4052_v31, %v5030_v46 }
 0x284   : > { %v2859_v4 = vpop.f32.mrf.mxu0 }
 0x285   : > { %v2860_v30 = vadd.f32 %v5030_v46, %v2859_v4  ;;  %v3459_v4 = vmax.f32 %v3457_v37, %v3382_v53  ;;  %v3390_v34 = vadd.f32 %v5119_v18, %v2868_v42 }
 0x286   : > { %v4055_v15 = vpop.f32.mrf.mxu0 }
 0x287   : > { %v3388_v5 = vadd.f32 %v5110_v17, %v2860_v30  ;;  %v3461_v14 = vmax.f32 %v3459_v4, %v3386_v51 }
 0x288   : > { %v2872_v3 = vpop.f32.mrf.mxu0 }
 0x289   : > { %v2873_v52 = vadd.f32 %v5030_v46, %v2872_v3  ;;  %v5332_v4 = vld [vmem:[#allocation16_spill] sm:$0xff] }
 0x28a   : > { %v5141_v63 = vpop.f32.mrf.mxu0 }
 0x28b   : > { %v3391_v18 = vadd.f32 %v5121_v21, %v2873_v52 }
 0x28c   : > { %v5145_v8 = vpop.f32.mrf.mxu0 }
 0x28d   : > { %v2876_v17 = vadd.f32 %v5030_v46, %v5145_v8 }
 0x28e   : > { %v5147_v22 = vpop.f32.mrf.mxu0 }
 0x28f   : > { %v2897_v3 = vadd.f32 %v5147_v22, %v5030_v46 }
 0x290   : > { %v5151_v38 = vpop.f32.mrf.mxu0 }
 0x291   : > { %v2889_v45 = vadd.f32 %v5030_v46, %v5151_v38  ;;  %v3397_v21 = vadd.f32 %v5133_v16, %v2897_v3  ;;  %v5330_v16 = vld [vmem:[#allocation9_spill] sm:$0xff] }
 0x292   : > { %v5156_v2 = vpop.f32.mrf.mxu0 }
 0x294   : > { %v5160_v29 = vpop.f32.mrf.mxu0 }
 0x295   : > { %5319 = vst [vmem:[#allocation14_spill] sm:$0xff] %v5160_v29  ;;  %v2825_v29 = vadd.f32 %v5030_v46, %v2824_v12  ;;  %v5322_v12 = vmax.f32 %v5078_v26, %v5097_v20  ;;  %v5201_v26 = vpop.permute.xlu0 %3313  ;;  %v2865_v20 = vadd.f32 %v4051_v25, %v5030_v46  ;;  %v2881_v25 = vadd.f32 %v4055_v15, %v5030_v46 }
 0x296   : > { %v5165_v24 = vpop.f32.mrf.mxu0  ;;  %v2884_v15 = vadd.f32 %v5141_v63, %v5030_v46  ;;  %v2900_v63 = vadd.f32 %v5156_v2, %v5030_v46  ;;  %v3329_v2 = vpop.permute.xlu1 %3328 }
 0x297   : > { %v3426_v0 = vmax.f32 %v5322_v12, %v3377_v13  ;;  %v3379_v55 = vadd.f32 %v5052_v36, %v2825_v29  ;;  %v5324_v36 = vmax.f32 %v5094_v35, %v5113_v62  ;;  %v3389_v35 = vadd.f32 %v5115_v6, %v2865_v20 }
 0x298   : > { %v2904_v1 = vpop.f32.mrf.mxu0  ;;  %v3387_v62 = vadd.f32 %v5100_v11, %v2857_v33  ;;  %v3393_v11 = vadd.f32 %v5125_v47, %v2881_v25  ;;  %v2913_v22 = vadd.f32 %v5165_v24, %v5030_v46  ;;  %v3463_v12 = vmax.f32 %v3461_v14, %v3390_v34  ;;  %v5328_v33 = vld [vmem:[#allocation8_spill] sm:$0xff] }
 0x299   : > { %v3456_v48 = vmax.f32 %v5324_v36, %v3376_v28  ;;  %v3428_v29 = vmax.f32 %v3426_v0, %v3381_v54  ;;  %v3427_v43 = vmax.f32 %v3425_v7, %v3379_v55  ;;  %v3324_v57 = vpop.permute.xlu0 %3323  ;;  %v2905_v54 = vadd.f32 %v5030_v46, %v2904_v1  ;;  %v5325_v7 = vld [vmem:[#allocation7_spill] sm:$0xff] }
 0x29a   : > { %v5179_v39 = vpop.f32.mrf.mxu0  ;;  %v3394_v47 = vadd.f32 %v5127_v61, %v2884_v15  ;;  %v3395_v58 = vadd.f32 %v5325_v7, %v2889_v45  ;;  %v3398_v42 = vadd.f32 %v5328_v33, %v2900_v63  ;;  %v5329_v61 = vld [vmem:[#allocation11_spill] sm:$0xff]  ;;  %v3339_v3 = vpop.permute.xlu1 %3338  ;;  %v5334_v45 = vld [vmem:[#allocation12_spill] sm:$0xff] }
 0x29b   : > { %v3458_v9 = vmax.f32 %v3456_v48, %v3380_v50  ;;  %v3430_v13 = vmax.f32 %v3428_v29, %v3385_v40  ;;  %v3429_v28 = vmax.f32 %v3427_v43, %v3383_v10  ;;  %v5327_v40 = vld [vmem:[#allocation5_spill] sm:$0xff]  ;;  %v3401_v30 = vadd.f32 %v5329_v61, %v2913_v22 }
 0x29c   : > { %v5195_v41 = vpop.f32.mrf.mxu0  ;;  %v5326_v8 = vld [vmem:[#allocation14_spill] sm:$0xff]  ;;  %v3392_v20 = vadd.f32 %v5327_v40, %v2876_v17  ;;  %v3399_v37 = vadd.f32 %v5330_v16, %v2905_v54  ;;  %v2916_v48 = vadd.f32 %v5179_v39, %v5030_v46 }
 0x29d   : > { %v3460_v6 = vmax.f32 %v3458_v9, %v3384_v60  ;;  %v3432_v38 = vmax.f32 %v3430_v13, %v3389_v35  ;;  %v3431_v27 = vmax.f32 %v3429_v28, %v3387_v62  ;;  %v2892_v56 = vadd.f32 %v5030_v46, %v5326_v8  ;;  %v3334_v36 = vpop.permute.xlu0 %3333  ;;  %v5333_v13 = vld [vmem:[#allocation13_spill] sm:$0xff] }
 0x29e   : > { %v4067_v59 = vpop.f32.mrf.mxu0  ;;  %v2908_v29 = vadd.f32 %v5030_v46, %v5195_v41  ;;  %v3465_v60 = vmax.f32 %v3463_v12, %v3394_v47  ;;  %v3402_v14 = vadd.f32 %v5334_v45, %v2916_v48 }
 0x29f   : > { %v3462_v0 = vmax.f32 %v3460_v6, %v3388_v5  ;;  %v3434_v55 = vmax.f32 %v3432_v38, %v3393_v11  ;;  %v3433_v53 = vmax.f32 %v3431_v27, %v3391_v18  ;;  %v2929_v24 = vadd.f32 %v4067_v59, %v5030_v46  ;;  %v5335_v6 = vld [vmem:[#allocation10_spill] sm:$0xff] }
 0x2a0   : > { %v2920_v31 = vpop.f32.mrf.mxu0  ;;  %v3467_v5 = vmax.f32 %v3465_v60, %v3398_v42  ;;  %v3400_v11 = vadd.f32 %v5335_v6, %v2908_v29 }
 0x2a1   : > { %v2921_v1 = vadd.f32 %v5030_v46, %v2920_v31  ;;  %v3436_v25 = vmax.f32 %v3434_v55, %v3397_v21  ;;  %v3435_v52 = vmax.f32 %v3433_v53, %v3395_v58  ;;  %v5331_v31 = vld [vmem:[#allocation6_spill] sm:$0xff]  ;;  %v3405_v9 = vadd.f32 %v5332_v4, %v2929_v24  ;;  %v3344_v38 = vpop.permute.xlu0 %3343 }
 0x2a2   : > { %v4068_v49 = vpop.f32.mrf.mxu0  ;;  %v3396_v43 = vadd.f32 %v5331_v31, %v2892_v56  ;;  %v3464_v34 = vmax.f32 %v3462_v0, %v3392_v20  ;;  %v3469_v7 = vmax.f32 %v3467_v5, %v3402_v14 }
 0x2a3   : > { %v3403_v35 = vadd.f32 %v5333_v13, %v2921_v1  ;;  %v2932_v39 = vadd.f32 %v4068_v49, %v5030_v46  ;;  %v3438_v28 = vmax.f32 %v3436_v25, %v3401_v30  ;;  %v3437_v15 = vmax.f32 %v3435_v52, %v3399_v37 }
 0x2a4   : > { %v2923_v23 = vpop.f32.mrf.mxu0  ;;  %v3466_v49 = vmax.f32 %v3464_v34, %v3396_v43 }
 0x2a5   : > { %v2924_v62 = vadd.f32 %v5030_v46, %v2923_v23  ;;  %v3440_v27 = vmax.f32 %v3438_v28, %v3405_v9  ;;  %v3439_v12 = vmax.f32 %v3437_v15, %v3403_v35  ;;  %v3406_v0 = vadd.f32 %v5185_v32, %v2932_v39 }
 0x2a6   : > { %v4071_v44 = vpop.f32.mrf.mxu0  ;;  %v3468_v58 = vmax.f32 %v3466_v49, %v3400_v11 }
 0x2a7   : > { %v2945_v59 = vadd.f32 %v4071_v44, %v5030_v46  ;;  %v3471_v40 = vmax.f32 %v3469_v7, %v3406_v0 }
 0x2a8   : > { %v2936_v50 = vpop.f32.mrf.mxu0 }
 0x2a9   : > { %v2937_v10 = vadd.f32 %v5030_v46, %v2936_v50  ;;  %v3409_v18 = vadd.f32 %v3324_v57, %v2945_v59  ;;  %v5336_v57 = vld [vmem:[#allocation15_spill] sm:$0xff]  ;;  %v3349_v50 = vpop.permute.xlu1 %3348 }
 0x2aa   : > { %v4072_v51 = vpop.f32.mrf.mxu0  ;;  %v3404_v44 = vadd.f32 %v5336_v57, %v2924_v62 }
 0x2ab   : > { %v3407_v17 = vadd.f32 %v5201_v26, %v2937_v10  ;;  %v2948_v23 = vadd.f32 %v4072_v51, %v5030_v46  ;;  %v3442_v8 = vmax.f32 %v3440_v27, %v3409_v18 }
 0x2ac   : > { %v2939_v41 = vpop.f32.mrf.mxu0  ;;  %v3470_v20 = vmax.f32 %v3468_v58, %v3404_v44 }
 0x2ad   : > { %v2940_v22 = vadd.f32 %v5030_v46, %v2939_v41  ;;  %v3441_v56 = vmax.f32 %v3439_v12, %v3407_v17  ;;  %v3410_v53 = vadd.f32 %v3329_v2, %v2948_v23 }
 0x2ae   : > { %v4075_v63 = vpop.f32.mrf.mxu0 }
 0x2af   : > { %v2961_v54 = vadd.f32 %v4075_v63, %v5030_v46  ;;  %v3408_v24 = vadd.f32 %v5215_v19, %v2940_v22  ;;  %v3473_v37 = vmax.f32 %v3471_v40, %v3410_v53 }
 0x2b0   : > { %v2952_v26 = vpop.f32.mrf.mxu0 }
 0x2b1   : > { %v3413_v47 = vadd.f32 %v3344_v38, %v2961_v54  ;;  %v2953_v21 = vadd.f32 %v5030_v46, %v2952_v26  ;;  %v3472_v48 = vmax.f32 %v3470_v20, %v3408_v24 }
 0x2b2   : > { %v4076_v55 = vpop.f32.mrf.mxu0 }
 0x2b3   : > { %v3411_v1 = vadd.f32 %v3334_v36, %v2953_v21  ;;  %v2964_v32 = vadd.f32 %v4076_v55, %v5030_v46  ;;  %v3444_v42 = vmax.f32 %v3442_v8, %v3413_v47 }
 0x2b4   : > { %v2955_v33 = vpop.f32.mrf.mxu0 }
 0x2b5   : > { %v3443_v61 = vmax.f32 %v3441_v56, %v3411_v1  ;;  %v3414_v30 = vadd.f32 %v3349_v50, %v2964_v32  ;;  %v2956_v16 = vadd.f32 %v5030_v46, %v2955_v33 }
 0x2b7   : > { %v3445_v29 = vmax.f32 %v3443_v61, %v3444_v42  ;;  %v3412_v2 = vadd.f32 %v3339_v3, %v2956_v16  ;;  %v3475_v59 = vmax.f32 %v3473_v37, %v3414_v30 }
 0x2b9   : > { %v3474_v19 = vmax.f32 %v3472_v48, %v3412_v2 }
 0x2bb   : > { %v3476_v36 = vmax.f32 %v3474_v19, %v3475_v59 }
 0x2bd   : > { %v3757_v10 = vpack.c.bf16 %v3476_v36, %v3445_v29 }
 0x2bf   : > { %3758 = vst [vmem:[%s1201_s24] sm:$0xff] %v3757_v10  }
 0x2c0 PF: > { %p14_p9 = scmp.ge.s32.totalorder %s4262_s28, 4   ;;  %s5337_s24 = smov %s4198_s25 }
 0x2c1   : > { %s5338_s25 = smov %s4271_s8  ;;  %s5339_s26 = smov %s4262_s28 }
 0x2c2   :  { %16 = sbr.rel (!%p14_p9) target bundleno = 2 (0x2), region = 220 }

// kernel: pointnet_forward.5
= control target key start
LH: loop header
LB: loop body
LE: loop exit
PB: predicated region body
PF: predicated region fallthrough
CT: control target
= control target key end

     0   :  { %vm90_vm0 = vcmask 130048   ;;  %v963_v25 = vmov 0.0   ;;  %vm964_vm1 = vmmov 0   ;;  %s1170_s2 = inlined_call_operand.vmem [shape: bf16[128,128], index: 2, kind: input, shape index: {}]   ;;  %s1171_s3 = inlined_call_operand.vmem [shape: bf16[16,128], index: 3, kind: input, shape index: {}]   ;;  %s1172_s1 = inlined_call_operand.vmem [shape: bf16[8,8,16], index: 1, kind: input, shape index: {}]   ;;  %s1173_s0 = inlined_call_operand.vmem [shape: bf16[8,8,128], index: 0, kind: input, shape index: {}]   ;;  %s1174_s4 = inlined_call_operand.vmem [shape: bf16[1,128,128], index: 4, kind: input, shape index: {}]   ;;  %s1175_s6 = inlined_call_operand.vmem [shape: bf16[2,128,128], index: 6, kind: input, shape index: {}]   ;;  %s1176_s5 = inlined_call_operand.vmem [shape: f32[2,1,128], index: 5, kind: input, shape index: {}]   ;;  %s1177_s7 = inlined_call_operand.vmem [shape: f32[2,1,128], index: 7, kind: input, shape index: {}]   ;;  %s1178_s8 = inlined_call_operand.vmem [shape: f32[8,128], index: 8, kind: output, shape index: {}]  }
   0x1   :  { %v922_v0 = vld [vmem:[%s1170_s2 + $0x38] sm:$0xff]   ;;  %v923_v1 = vld [vmem:[%s1170_s2 + $0x30] sm:$0xff]   ;;  %v924_v2 = vld [vmem:[%s1170_s2 + $0x28] sm:$0xff]  }
   0x2   :  { %832 = vmatprep.subr.bf16.mxu1 %v922_v0  ;;  %v928_v3 = vld [vmem:[%s1171_s3] sm:$0xff]   ;;  %v931_v6 = vld [vmem:[%s1172_s1 + $0x8] sm:$0xff]   ;;  %v926_v8 = vld [vmem:[%s1170_s2 + $0x18] sm:$0xff]  }
   0x3   :  { %833 = vmatpush3.bf16.msra.mxu1 %v922_v0  ;;  %v925_v4 = vld [vmem:[%s1170_s2 + $0x20] sm:$0xff]   ;;  %822 = vmatprep.subr.bf16.mxu0 %v928_v3  ;;  %v935_v9 = vld [vmem:[%s1172_s1 + $0x10] sm:$0xff]   ;;  %v936_v11 = vld [vmem:[%s1172_s1 + $0x18] sm:$0xff]  }
   0x4   :  { %834 = vmatprep.subr.bf16.mxu1 %v923_v1  ;;  %v930_v5 = vld [vmem:[%s1172_s1] sm:$0xff]   ;;  %823 = vmatpush3.bf16.msra.mxu0 %v928_v3  ;;  %v927_v10 = vld [vmem:[%s1170_s2 + $0x10] sm:$0xff]   ;;  %v939_v12 = vld [vmem:[%s1174_s4 + $0x38] sm:$0xff]  }
   0x5   :  { %824 = vmatprep.mubr.msk.bf16.mxu0 %vm90_vm0, %v930_v5  ;;  %v933_v7 = vld [vmem:[%s1173_s0] sm:$0xff]   ;;  %v940_v13 = vld [vmem:[%s1174_s4 + $0x30] sm:$0xff]   ;;  %v929_v14 = vld [vmem:[%s1170_s2 + $0x8] sm:$0xff]   ;;  %856 = vmatprep.subr.bf16.mxu0 %v939_v12 }
   0x6   :  { %848 = vmatprep.mubr.bf16.mxu1 %v933_v7  ;;  %v941_v15 = vld [vmem:[%s1174_s4 + $0x28] sm:$0xff]   ;;  %v932_v16 = vld [vmem:[%s1170_s2] sm:$0xff]   ;;  %v937_v18 = vld [vmem:[%s1173_s0 + $0x10] sm:$0xff]  }
   0x7   :  { %835 = vmatpush3.bf16.msra.mxu1 %v923_v1  ;;  %825 = vmatmul.mubr.msk.bf16.vlgmr.msra.gmra.mxu0 %vm90_vm0, %v931_v6  ;;  %v934_v17 = vld [vmem:[%s1173_s0 + $0x8] sm:$0xff]   ;;  %v938_v19 = vld [vmem:[%s1173_s0 + $0x18] sm:$0xff]   ;;  %v942_v20 = vld [vmem:[%s1174_s4 + $0x20] sm:$0xff]  }
   0x8   :  { %836 = vmatprep.subr.bf16.mxu1 %v924_v2  ;;  %828 = vmatprep.mubr.msk.bf16.mxu0 %vm90_vm0, %v935_v9  ;;  %v943_v21 = vld [vmem:[%s1174_s4 + $0x18] sm:$0xff]   ;;  %v944_v22 = vld [vmem:[%s1174_s4 + $0x10] sm:$0xff]   ;;  %v945_v23 = vld [vmem:[%s1174_s4 + $0x8] sm:$0xff]  }
   0x9   :  { %857 = vmatpush3.bf16.msra.mxu0 %v939_v12  ;;  %v946_v24 = vld [vmem:[%s1174_s4] sm:$0xff]   ;;  %v947_v26 = vld [vmem:[%s1175_s6 + $0x38] sm:$0xff]   ;;  %v948_v27 = vld [vmem:[%s1175_s6 + $0x30] sm:$0xff]  }
   0xa   :  { %858 = vmatprep.subr.bf16.mxu0 %v940_v13  ;;  %v729_v38 = vld [vmem:[%s1176_s5] ss:$0 sm:$0xff]  ;;  %v949_v9 = vld [vmem:[%s1175_s6 + $0x28] sm:$0xff]   ;;  %v952_v12 = vld [vmem:[%s1175_s6 + $0x10] sm:$0xff]  }
   0xb   :  { %837 = vmatpush3.bf16.msra.mxu1 %v924_v2 }
   0xc   :  { %838 = vmatprep.subr.bf16.mxu1 %v925_v4 }
   0xd   :  { %859 = vmatpush3.bf16.msra.mxu0 %v940_v13  ;;  %v953_v13 = vld [vmem:[%s1175_s6 + $0x8] sm:$0xff]  }
   0xe   :  { %860 = vmatprep.subr.bf16.mxu0 %v941_v15 }
   0xf   :  { %839 = vmatpush3.bf16.msra.mxu1 %v925_v4  ;;  %829 = vmatmul.mubr.msk.bf16.gmra.mxu0 %vm90_vm0, %v936_v11  ;;  %v951_v11 = vld [vmem:[%s1175_s6 + $0x18] sm:$0xff]  }
  0x10   :  { %840 = vmatprep.subr.bf16.mxu1 %v926_v8 }
  0x11   :  { %861 = vmatpush3.bf16.msra.mxu0 %v941_v15  ;;  %v955_v15 = vld [vmem:[%s1175_s6 + $0x78] sm:$0xff]  }
  0x12   :  { %862 = vmatprep.subr.bf16.mxu0 %v942_v20 }
  0x13   :  { %841 = vmatpush3.bf16.msra.mxu1 %v926_v8 }
  0x14   :  { %842 = vmatprep.subr.bf16.mxu1 %v927_v10 }
  0x15   :  { %863 = vmatpush3.bf16.msra.mxu0 %v942_v20  ;;  %v960_v20 = vld [vmem:[%s1175_s6 + $0x50] sm:$0xff]  }
  0x16   :  { %864 = vmatprep.subr.bf16.mxu0 %v943_v21 }
  0x17   :  { %843 = vmatpush3.bf16.msra.mxu1 %v927_v10  ;;  %v950_v10 = vld [vmem:[%s1175_s6 + $0x20] sm:$0xff]  }
  0x18   :  { %844 = vmatprep.subr.bf16.mxu1 %v929_v14 }
  0x19   :  { %865 = vmatpush3.bf16.msra.mxu0 %v943_v21 }
  0x1a   :  { %866 = vmatprep.subr.bf16.mxu0 %v944_v22 }
  0x1b   :  { %845 = vmatpush3.bf16.msra.mxu1 %v929_v14  ;;  %v954_v14 = vld [vmem:[%s1175_s6] sm:$0xff]  }
  0x1c   :  { %846 = vmatprep.subr.bf16.mxu1 %v932_v16 }
  0x1d   :  { %867 = vmatpush3.bf16.msra.mxu0 %v944_v22 }
  0x1e   :  { %868 = vmatprep.subr.bf16.mxu0 %v945_v23 }
  0x1f   :  { %847 = vmatpush3.bf16.msra.mxu1 %v932_v16  ;;  %v956_v16 = vld [vmem:[%s1175_s6 + $0x70] sm:$0xff]  }
  0x20   :  { %880 = vmatprep.subr.bf16.mxu1 %v963_v25 }
  0x21   :  { %869 = vmatpush3.bf16.msra.mxu0 %v945_v23 }
  0x22   :  { %849 = vmatmul.mubr.bf16.vlgmr.msra.gmra.mxu1 %v934_v17  ;;  %870 = vmatprep.subr.bf16.mxu0 %v946_v24  ;;  %v957_v17 = vld [vmem:[%s1175_s6 + $0x68] sm:$0xff]  }
  0x23   :  { %852 = vmatprep.mubr.bf16.mxu1 %v937_v18  ;;  %881 = vmatpush3.bf16.msra.mxu1 %v947_v26  ;;  %v958_v18 = vld [vmem:[%s1175_s6 + $0x60] sm:$0xff]  }
  0x24   :  { %882 = vmatprep.subr.bf16.mxu1 %v963_v25 }
  0x25   :  { %871 = vmatpush3.bf16.msra.mxu0 %v946_v24 }
  0x26   :  { %900 = vmatprep.subr.bf16.mxu0 %v963_v25 }
  0x27   :  { %883 = vmatpush3.bf16.msra.mxu1 %v948_v27 }
  0x28   :  { %884 = vmatprep.subr.bf16.mxu1 %v963_v25 }
  0x2a   :  { %853 = vmatmul.mubr.bf16.gmra.mxu1 %v938_v19  ;;  %v959_v19 = vld [vmem:[%s1175_s6 + $0x58] sm:$0xff]  }
  0x2b   :  { %885 = vmatpush3.bf16.msra.mxu1 %v949_v9  ;;  %896 = vmatprep.mubr.msk.bf16.mxu1 %vm964_vm1, %v963_v25 }
  0x2c   :  { %886 = vmatprep.subr.bf16.mxu1 %v963_v25 }
  0x2f   :  { %887 = vmatpush3.bf16.msra.mxu1 %v950_v10 }
  0x30   :  { %888 = vmatprep.subr.bf16.mxu1 %v963_v25 }
  0x33   :  { %889 = vmatpush3.bf16.msra.mxu1 %v951_v11 }
  0x34   :  { %890 = vmatprep.subr.bf16.mxu1 %v963_v25 }
  0x37   :  { %891 = vmatpush3.bf16.msra.mxu1 %v952_v12 }
  0x38   :  { %892 = vmatprep.subr.bf16.mxu1 %v963_v25 }
  0x3b   :  { %893 = vmatpush3.bf16.msra.mxu1 %v953_v13 }
  0x3c   :  { %894 = vmatprep.subr.bf16.mxu1 %v963_v25 }
  0x3f   :  { %895 = vmatpush3.bf16.msra.mxu1 %v954_v14 }
  0xc7   :  { %v826_v28 = vpop.f32.mrf.mxu0 }
  0xc9   :  { %v137_v29 = vpop.f32.mrf.mxu0 }
  0xcb   :  { %v827_v30 = vpop.f32.mrf.mxu0 }
  0xcd   :  { %v140_v31 = vpop.f32.mrf.mxu0 }
  0xcf   :  { %v830_v33 = vpop.f32.mrf.mxu0 }
  0xd1   :  { %v153_v40 = vpop.f32.mrf.mxu0 }
  0xd3   :  { %v831_v49 = vpop.f32.mrf.mxu0 }
  0xd5   :  { %v156_v60 = vpop.f32.mrf.mxu0 }
  0xe2   :  { %v850_v32 = vpop.f32.mrf.mxu1 }
  0xe3   :  { %v283_v36 = vadd.f32 %v850_v32, %v826_v28  ;;  %v731_v28 = vld [vmem:[%s1176_s5 + $0x1] ss:$0 sm:$0xff] }
  0xe4   :  { %v274_v34 = vpop.f32.mrf.mxu1 }
  0xe5   :  { %v275_v35 = vadd.f32 %v274_v34, %v137_v29  ;;  %v314_v45 = vadd.f32 %v729_v38, %v283_v36 }
  0xe6   :  { %v851_v37 = vpop.f32.mrf.mxu1 }
  0xe7   :  { %v286_v39 = vadd.f32 %v851_v37, %v827_v30  ;;  %v312_v42 = vadd.f32 %v729_v38, %v275_v35  ;;  %v322_v54 = vmax.f32 %v314_v45, 0.0 }
  0xe8   :  { %v277_v41 = vpop.f32.mrf.mxu1 }
  0xe9   :  { %v315_v43 = vadd.f32 %v729_v38, %v286_v39  ;;  %v278_v44 = vadd.f32 %v277_v41, %v140_v31  ;;  %v320_v51 = vmax.f32 %v312_v42, 0.0 }
  0xea   :  { %v854_v46 = vpop.f32.mrf.mxu1 }
  0xeb   :  { %v313_v47 = vadd.f32 %v729_v38, %v278_v44  ;;  %v323_v48 = vmax.f32 %v315_v43, 0.0  ;;  %v299_v55 = vadd.f32 %v854_v46, %v830_v33 }
  0xec   :  { %v290_v50 = vpop.f32.mrf.mxu1 }
  0xed   :  { %v321_v52 = vmax.f32 %v313_v47, 0.0  ;;  %v291_v53 = vadd.f32 %v290_v50, %v153_v40  ;;  %v329_v59 = vpack.c.bf16 %v323_v48, %v322_v54  ;;  %v318_v1 = vadd.f32 %v729_v38, %v299_v55  ;;  %v961_v47 = vld [vmem:[%s1175_s6 + $0x48] sm:$0xff]   ;;  %v962_v48 = vld [vmem:[%s1175_s6 + $0x40] sm:$0xff]  }
  0xee   :  { %v855_v56 = vpop.f32.mrf.mxu1 }
  0xef   :  { %v302_v57 = vadd.f32 %v855_v56, %v831_v49  ;;  %v328_v58 = vpack.c.bf16 %v321_v52, %v320_v51  ;;  %v316_v62 = vadd.f32 %v729_v38, %v291_v53  ;;  %v326_v6 = vmax.f32 %v318_v1, 0.0  ;;  %v740_v49 = vld [vmem:[%s1177_s7] ss:$0 sm:$0xff] }
  0xf0   :  { %v293_v61 = vpop.f32.mrf.mxu1 }
  0xf1   :  { %v319_v63 = vadd.f32 %v729_v38, %v302_v57  ;;  %v294_v0 = vadd.f32 %v293_v61, %v156_v60  ;;  %872 = vmatprep.mubr.bf16.mxu0 %v328_v58  ;;  %v324_v4 = vmax.f32 %v316_v62, 0.0 }
  0xf2   :  { %873 = vmatmul.mubr.bf16.vlgmr.msra.gmra.mxu0 %v329_v59 }
  0xf3   :  { %v317_v2 = vadd.f32 %v729_v38, %v294_v0  ;;  %v327_v3 = vmax.f32 %v319_v63, 0.0  ;;  %901 = vmatpush3.bf16.msra.mxu0 %v955_v15 }
  0xf4   :  { %902 = vmatprep.subr.bf16.mxu0 %v963_v25 }
  0xf5   :  { %v325_v5 = vmax.f32 %v317_v2, 0.0  ;;  %v331_v8 = vpack.c.bf16 %v327_v3, %v326_v6 }
  0xf7   :  { %v330_v7 = vpack.c.bf16 %v325_v5, %v324_v4  ;;  %903 = vmatpush3.bf16.msra.mxu0 %v956_v16 }
  0xf8   :  { %904 = vmatprep.subr.bf16.mxu0 %v963_v25 }
  0xf9   :  { %876 = vmatprep.mubr.bf16.mxu0 %v330_v7 }
  0xfa   :  { %877 = vmatmul.mubr.bf16.gmra.mxu0 %v331_v8 }
  0xfb   :  { %916 = vmatprep.mubr.msk.bf16.mxu0 %vm964_vm1, %v963_v25  ;;  %905 = vmatpush3.bf16.msra.mxu0 %v957_v17 }
  0xfc   :  { %906 = vmatprep.subr.bf16.mxu0 %v963_v25 }
  0xff   :  { %907 = vmatpush3.bf16.msra.mxu0 %v958_v18 }
 0x100   :  { %908 = vmatprep.subr.bf16.mxu0 %v963_v25 }
 0x103   :  { %909 = vmatpush3.bf16.msra.mxu0 %v959_v19 }
 0x104   :  { %910 = vmatprep.subr.bf16.mxu0 %v963_v25 }
 0x107   :  { %911 = vmatpush3.bf16.msra.mxu0 %v960_v20 }
 0x108   :  { %912 = vmatprep.subr.bf16.mxu0 %v963_v25 }
 0x10b   :  { %913 = vmatpush3.bf16.msra.mxu0 %v961_v47 }
 0x10c   :  { %914 = vmatprep.subr.bf16.mxu0 %v963_v25  ;;  %v766_v25 = vld [vmem:[%s1177_s7 + $0x1] ss:$0 sm:$0xff] }
 0x10f   :  { %915 = vmatpush3.bf16.msra.mxu0 %v962_v48 }
 0x1b2   :  { %v874_v21 = vpop.f32.mrf.mxu0 }
 0x1b3   :  { %v447_v34 = vadd.f32 %v874_v21, %v731_v28 }
 0x1b4   :  { %v438_v22 = vpop.f32.mrf.mxu0 }
 0x1b5   :  { %v439_v36 = vadd.f32 %v731_v28, %v438_v22 }
 0x1b6   :  { %v875_v23 = vpop.f32.mrf.mxu0 }
 0x1b7   :  { %v450_v30 = vadd.f32 %v875_v23, %v731_v28 }
 0x1b8   :  { %v441_v24 = vpop.f32.mrf.mxu0 }
 0x1b9   :  { %v442_v37 = vadd.f32 %v731_v28, %v441_v24 }
 0x1ba   :  { %v878_v26 = vpop.f32.mrf.mxu0 }
 0x1bb   :  { %v463_v31 = vadd.f32 %v878_v26, %v731_v28 }
 0x1bc   :  { %v454_v27 = vpop.f32.mrf.mxu0 }
 0x1bd   :  { %v455_v32 = vadd.f32 %v731_v28, %v454_v27  ;;  %v471_v40 = vmax.f32 %v447_v34, %v463_v31 }
 0x1be   :  { %v879_v29 = vpop.f32.mrf.mxu0 }
 0x1bf   :  { %v466_v33 = vadd.f32 %v879_v29, %v731_v28  ;;  %v469_v41 = vmax.f32 %v439_v36, %v455_v32 }
 0x1c0   :  { %v457_v35 = vpop.f32.mrf.mxu0 }
 0x1c1   :  { %v472_v38 = vmax.f32 %v450_v30, %v466_v33  ;;  %v458_v39 = vadd.f32 %v731_v28, %v457_v35 }
 0x1c3   :  { %v470_v42 = vmax.f32 %v442_v37, %v458_v39  ;;  %v474_v43 = vmax.f32 %v471_v40, %v472_v38 }
 0x1c5   :  { %v473_v44 = vmax.f32 %v469_v41, %v470_v42 }
 0x1c7   :  { %v475_v45 = vmax.f32 %v473_v44, %v474_v43 }
 0x1c9   :  { %v476_v46 = vpack.c.bf16 %v475_v45, %v475_v45 }
 0x1cb   :  { %897 = vmatmul.mubr.bf16.vlgmr.msra.gmra.mxu1 %v476_v46 }
 0x28b   :  { %v582_v50 = vpop.f32.mrf.mxu1 }
 0x28c   :  { %v583_v51 = vadd.f32 %v740_v49, %v582_v50 }
 0x28d   :  { %v898_v52 = vpop.f32.mrf.mxu1 }
 0x28e   :  { %v588_v53 = vmax.f32 %v583_v51, 0.0 }
 0x28f   :  { %v585_v54 = vpop.f32.mrf.mxu1 }
 0x290   :  { %v589_v55 = vpack.c.bf16 %v588_v53, %v588_v53 }
 0x291   :  { %v899_v56 = vpop.f32.mrf.mxu1 }
 0x292   :  { %917 = vmatmul.mubr.bf16.vlgmr.msra.gmra.mxu0 %v589_v55 }
 0x352   :  { %v697_v57 = vpop.f32.mrf.mxu0 }
 0x353   :  { %v698_v58 = vadd.f32 %v766_v25, %v697_v57 }
 0x354   :  { %v918_v59 = vpop.f32.mrf.mxu0 }
 0x355   :  { %703 = vst [vmem:[%s1178_s8] sm:$0xff] %v698_v58 }
 0x356   :  { %v700_v60 = vpop.f32.mrf.mxu0 }
 0x358   :  { %v919_v61 = vpop.f32.mrf.mxu0 }

// kernel: pointnet_forward.4
= control target key start
LH: loop header
LB: loop body
LE: loop exit
PB: predicated region body
PF: predicated region fallthrough
CT: control target
= control target key end

     0   :  { %vm195_vm0 = vcmask 130048   ;;  %v1624_v49 = vmov 0   ;;  %s2112_s4 = inlined_call_operand.vmem [shape: bf16[16,128], index: 4, kind: input, shape index: {}]   ;;  %s2113_s1 = inlined_call_operand.vmem [shape: bf16[16,16,16], index: 1, kind: input, shape index: {}]   ;;  %s2114_s3 = inlined_call_operand.vmem [shape: bf16[128,128], index: 3, kind: input, shape index: {}]   ;;  %s2115_s0 = inlined_call_operand.vmem [shape: bf16[16,16,128], index: 0, kind: input, shape index: {}]   ;;  %s2116_s5 = inlined_call_operand.vmem [shape: bf16[1,128,128], index: 5, kind: input, shape index: {}]   ;;  %s2117_s2 = inlined_call_operand.vmem [shape: f32[16,16,1], index: 2, kind: input, shape index: {}]   ;;  %s2118_s6 = inlined_call_operand.vmem [shape: f32[2,1,128], index: 6, kind: input, shape index: {}]   ;;  %s2119_s7 = inlined_call_operand.vmem [shape: bf16[16,128], index: 7, kind: output, shape index: {}]  }
   0x1   :  { %v1575_v0 = vld [vmem:[%s2112_s4] sm:$0xff]   ;;  %v1577_v2 = vld [vmem:[%s2113_s1 + $0x48] sm:$0xff]   ;;  %v1578_v3 = vld [vmem:[%s2114_s3 + $0x38] sm:$0xff]   ;;  %1574 = vset.pattern.permute.xlu1 %v1624_v49  ;;  %1573 = vset.pattern.permute.xlu0 %v1624_v49 }
   0x2   :  { %v1576_v1 = vld [vmem:[%s2113_s1 + $0x40] sm:$0xff]   ;;  %1570 = vmatprep.subr.bf16.mxu1 %v1575_v0  ;;  %1440 = vmatprep.subr.bf16.mxu0 %v1575_v0  ;;  %v1579_v4 = vld [vmem:[%s2114_s3 + $0x30] sm:$0xff]   ;;  %v1582_v6 = vld [vmem:[%s2114_s3 + $0x28] sm:$0xff]  }
   0x3   :  { %1571 = vmatpush3.bf16.msra.mxu1 %v1575_v0  ;;  %1458 = vmatprep.mubr.msk.bf16.mxu1 %vm195_vm0, %v1576_v1  ;;  %v1580_v5 = vld [vmem:[%s2113_s1 + $0x50] sm:$0xff]   ;;  %v1581_v7 = vld [vmem:[%s2113_s1 + $0x58] sm:$0xff]   ;;  %v1584_v8 = vld [vmem:[%s2113_s1 + $0x60] sm:$0xff]  }
   0x4   :  { %1441 = vmatpush3.bf16.msra.mxu0 %v1575_v0  ;;  %1474 = vmatprep.subr.bf16.mxu1 %v1578_v3  ;;  %v1583_v9 = vld [vmem:[%s2114_s3 + $0x20] sm:$0xff]   ;;  %v1586_v10 = vld [vmem:[%s2114_s3 + $0x18] sm:$0xff]   ;;  %v1592_v12 = vld [vmem:[%s2113_s1 + $0x8] sm:$0xff]  }
   0x5   :  { %v1591_v11 = vld [vmem:[%s2113_s1] sm:$0xff]   ;;  %v1585_v13 = vld [vmem:[%s2113_s1 + $0x68] sm:$0xff]   ;;  %v1588_v14 = vld [vmem:[%s2113_s1 + $0x70] sm:$0xff]  }
   0x6   :  { %1459 = vmatmul.mubr.msk.bf16.vlgmr.msra.gmra.mxu1 %vm195_vm0, %v1577_v2  ;;  %1442 = vmatprep.mubr.msk.bf16.mxu0 %vm195_vm0, %v1591_v11  ;;  %v1587_v15 = vld [vmem:[%s2114_s3 + $0x10] sm:$0xff]   ;;  %v1597_v17 = vld [vmem:[%s2113_s1 + $0x18] sm:$0xff]   ;;  %v1590_v18 = vld [vmem:[%s2114_s3 + $0x8] sm:$0xff]  }
   0x7   :  { %1475 = vmatpush3.bf16.msra.mxu1 %v1578_v3  ;;  %1462 = vmatprep.mubr.msk.bf16.mxu1 %vm195_vm0, %v1580_v5  ;;  %v1596_v16 = vld [vmem:[%s2113_s1 + $0x10] sm:$0xff]   ;;  %v1600_v19 = vld [vmem:[%s2113_s1 + $0x20] sm:$0xff]   ;;  %v1589_v20 = vld [vmem:[%s2113_s1 + $0x78] sm:$0xff]  }
   0x8   :  { %1476 = vmatprep.subr.bf16.mxu1 %v1579_v4  ;;  %1443 = vmatmul.mubr.msk.bf16.vlgmr.msra.gmra.mxu0 %vm195_vm0, %v1592_v12  ;;  %v1594_v21 = vld [vmem:[%s2115_s0] sm:$0xff]   ;;  %v1601_v23 = vld [vmem:[%s2113_s1 + $0x28] sm:$0xff]   ;;  %v1604_v24 = vld [vmem:[%s2113_s1 + $0x30] sm:$0xff]  }
   0x9   :  { %1446 = vmatprep.mubr.msk.bf16.mxu0 %vm195_vm0, %v1596_v16  ;;  %v1593_v22 = vld [vmem:[%s2114_s3] sm:$0xff]   ;;  %v1595_v25 = vld [vmem:[%s2115_s0 + $0x8] sm:$0xff]   ;;  %v1598_v26 = vld [vmem:[%s2115_s0 + $0x10] sm:$0xff]  }
   0xa   :  { %v1605_v27 = vld [vmem:[%s2113_s1 + $0x38] sm:$0xff]   ;;  %v1602_v29 = vld [vmem:[%s2115_s0 + $0x20] sm:$0xff]   ;;  %v1603_v30 = vld [vmem:[%s2115_s0 + $0x28] sm:$0xff]  }
   0xb   :  { %1477 = vmatpush3.bf16.msra.mxu1 %v1579_v4  ;;  %v1599_v28 = vld [vmem:[%s2115_s0 + $0x18] sm:$0xff]   ;;  %v1606_v31 = vld [vmem:[%s2115_s0 + $0x30] sm:$0xff]   ;;  %v1608_v33 = vld [vmem:[%s2115_s0 + $0x40] sm:$0xff]  }
   0xc   :  { %1478 = vmatprep.subr.bf16.mxu1 %v1582_v6  ;;  %v1607_v32 = vld [vmem:[%s2115_s0 + $0x38] sm:$0xff]   ;;  %v1609_v34 = vld [vmem:[%s2115_s0 + $0x48] sm:$0xff]   ;;  %v1610_v35 = vld [vmem:[%s2115_s0 + $0x50] sm:$0xff]  }
   0xd   :  { %v1611_v36 = vld [vmem:[%s2115_s0 + $0x58] sm:$0xff]   ;;  %v1612_v37 = vld [vmem:[%s2115_s0 + $0x60] sm:$0xff]   ;;  %v1613_v38 = vld [vmem:[%s2115_s0 + $0x68] sm:$0xff]  }
   0xe   :  { %1463 = vmatmul.mubr.msk.bf16.gmra.mxu1 %vm195_vm0, %v1581_v7  ;;  %v1614_v39 = vld [vmem:[%s2115_s0 + $0x70] sm:$0xff]   ;;  %v1616_v40 = vld [vmem:[%s2116_s5 + $0x38] sm:$0xff]   ;;  %v1618_v43 = vld [vmem:[%s2116_s5 + $0x28] sm:$0xff]  }
   0xf   :  { %1479 = vmatpush3.bf16.msra.mxu1 %v1582_v6  ;;  %1466 = vmatprep.mubr.msk.bf16.mxu1 %vm195_vm0, %v1584_v8  ;;  %v1617_v41 = vld [vmem:[%s2116_s5 + $0x30] sm:$0xff]   ;;  %v1615_v42 = vld [vmem:[%s2115_s0 + $0x78] sm:$0xff]   ;;  %v1619_v44 = vld [vmem:[%s2116_s5 + $0x20] sm:$0xff]  }
  0x10   :  { %1480 = vmatprep.subr.bf16.mxu1 %v1583_v9  ;;  %1447 = vmatmul.mubr.msk.bf16.gmra.mxu0 %vm195_vm0, %v1597_v17  ;;  %v1620_v45 = vld [vmem:[%s2116_s5 + $0x18] sm:$0xff]   ;;  %v1621_v46 = vld [vmem:[%s2116_s5 + $0x10] sm:$0xff]   ;;  %v1622_v47 = vld [vmem:[%s2116_s5 + $0x8] sm:$0xff]  }
  0x11   :  { %1450 = vmatprep.mubr.msk.bf16.mxu0 %vm195_vm0, %v1600_v19  ;;  %1522 = vmatprep.subr.bf16.mxu0 %v1616_v40  ;;  %v1623_v48 = vld [vmem:[%s2116_s5] sm:$0xff]   ;;  %v1032_v50 = vld [vmem:[%s2117_s2 + $0x10] sm:$0xff]  ;;  %v1033_v52 = vld [vmem:[%s2117_s2 + $0x18] sm:$0xff] }
  0x12   :  { %1523 = vmatpush3.bf16.msra.mxu0 %v1616_v40  ;;  %v1030_v51 = vld [vmem:[%s2117_s2] sm:$0xff]  ;;  %1074 = vperm.xlu1 %1574, %v1032_v50   ;;  %v1031_v53 = vld [vmem:[%s2117_s2 + $0x8] sm:$0xff]  ;;  %v1037_v56 = vld [vmem:[%s2117_s2 + $0x38] sm:$0xff] }
  0x13   :  { %1481 = vmatpush3.bf16.msra.mxu1 %v1583_v9  ;;  %1524 = vmatprep.subr.bf16.mxu0 %v1617_v41  ;;  %v1035_v54 = vld [vmem:[%s2117_s2 + $0x28] sm:$0xff]  ;;  %v1034_v55 = vld [vmem:[%s2117_s2 + $0x20] sm:$0xff]  ;;  %v1036_v57 = vld [vmem:[%s2117_s2 + $0x30] sm:$0xff] }
  0x14   :  { %1482 = vmatprep.subr.bf16.mxu1 %v1586_v10  ;;  %1064 = vperm.xlu0 %1573, %v1030_v51   ;;  %v1039_v58 = vld [vmem:[%s2117_s2 + $0x48] sm:$0xff]  ;;  %v1038_v59 = vld [vmem:[%s2117_s2 + $0x40] sm:$0xff]  ;;  %v1041_v60 = vld [vmem:[%s2117_s2 + $0x58] sm:$0xff] }
  0x15   :  { %v1040_v61 = vld [vmem:[%s2117_s2 + $0x50] sm:$0xff]  ;;  %v1043_v62 = vld [vmem:[%s2117_s2 + $0x68] sm:$0xff]  ;;  %v1042_v63 = vld [vmem:[%s2117_s2 + $0x60] sm:$0xff] }
  0x16   :  { %1467 = vmatmul.mubr.msk.bf16.gmra.mxu1 %vm195_vm0, %v1585_v13  ;;  %1525 = vmatpush3.bf16.msra.mxu0 %v1617_v41  ;;  %v1045_v0 = vld [vmem:[%s2117_s2 + $0x78] sm:$0xff]  ;;  %v1044_v1 = vld [vmem:[%s2117_s2 + $0x70] sm:$0xff]  ;;  %v1047_v2 = vld [vmem:[%s2117_s2 + $0x88] sm:$0xff] }
  0x17   :  { %1483 = vmatpush3.bf16.msra.mxu1 %v1586_v10  ;;  %1470 = vmatprep.mubr.msk.bf16.mxu1 %vm195_vm0, %v1588_v14  ;;  %v1046_v3 = vld [vmem:[%s2117_s2 + $0x80] sm:$0xff]  ;;  %v1049_v4 = vld [vmem:[%s2117_s2 + $0x98] sm:$0xff]  ;;  %v1048_v5 = vld [vmem:[%s2117_s2 + $0x90] sm:$0xff] }
  0x18   :  { %1484 = vmatprep.subr.bf16.mxu1 %v1587_v15  ;;  %1451 = vmatmul.mubr.msk.bf16.gmra.mxu0 %vm195_vm0, %v1601_v23  ;;  %v1051_v6 = vld [vmem:[%s2117_s2 + $0xa8] sm:$0xff]  ;;  %v1050_v7 = vld [vmem:[%s2117_s2 + $0xa0] sm:$0xff]  ;;  %v1053_v8 = vld [vmem:[%s2117_s2 + $0xb8] sm:$0xff] }
  0x19   :  { %1454 = vmatprep.mubr.msk.bf16.mxu0 %vm195_vm0, %v1604_v24  ;;  %1526 = vmatprep.subr.bf16.mxu0 %v1618_v43  ;;  %v1052_v9 = vld [vmem:[%s2117_s2 + $0xb0] sm:$0xff]  ;;  %v1055_v10 = vld [vmem:[%s2117_s2 + $0xc8] sm:$0xff]  ;;  %v1054_v11 = vld [vmem:[%s2117_s2 + $0xc0] sm:$0xff] }
  0x1a   :  { %1527 = vmatpush3.bf16.msra.mxu0 %v1618_v43  ;;  %1079 = vperm.xlu1 %1574, %v1033_v52   ;;  %v1057_v12 = vld [vmem:[%s2117_s2 + $0xd8] sm:$0xff]  ;;  %v1056_v13 = vld [vmem:[%s2117_s2 + $0xd0] sm:$0xff]  ;;  %v1059_v14 = vld [vmem:[%s2117_s2 + $0xe8] sm:$0xff] }
  0x1b   :  { %1485 = vmatpush3.bf16.msra.mxu1 %v1587_v15  ;;  %1528 = vmatprep.subr.bf16.mxu0 %v1619_v44  ;;  %v1058_v15 = vld [vmem:[%s2117_s2 + $0xe0] sm:$0xff]  ;;  %v1061_v16 = vld [vmem:[%s2117_s2 + $0xf8] sm:$0xff]  ;;  %v1060_v17 = vld [vmem:[%s2117_s2 + $0xf0] sm:$0xff] }
  0x1c   :  { %1486 = vmatprep.subr.bf16.mxu1 %v1590_v18  ;;  %1069 = vperm.xlu0 %1573, %v1031_v53  }
  0x1e   :  { %1471 = vmatmul.mubr.msk.bf16.gmra.mxu1 %vm195_vm0, %v1589_v20  ;;  %1529 = vmatpush3.bf16.msra.mxu0 %v1619_v44 }
  0x1f   :  { %1487 = vmatpush3.bf16.msra.mxu1 %v1590_v18  ;;  %1490 = vmatprep.mubr.bf16.mxu1 %v1594_v21 }
  0x20   :  { %1488 = vmatprep.subr.bf16.mxu1 %v1593_v22  ;;  %1455 = vmatmul.mubr.msk.bf16.gmra.mxu0 %vm195_vm0, %v1605_v27 }
  0x21   :  { %1530 = vmatprep.subr.bf16.mxu0 %v1620_v45  ;;  %1089 = vperm.xlu1 %1574, %v1035_v54  }
  0x22   :  { %1531 = vmatpush3.bf16.msra.mxu0 %v1620_v45  ;;  %1084 = vperm.xlu0 %1573, %v1034_v55  }
  0x23   :  { %1489 = vmatpush3.bf16.msra.mxu1 %v1593_v22  ;;  %1532 = vmatprep.subr.bf16.mxu0 %v1621_v46 }
  0x25   :  { %1099 = vperm.xlu1 %1574, %v1037_v56  }
  0x26   :  { %1491 = vmatmul.mubr.bf16.vlgmr.msra.gmra.mxu1 %v1595_v25  ;;  %1533 = vmatpush3.bf16.msra.mxu0 %v1621_v46 }
  0x27   :  { %1494 = vmatprep.mubr.bf16.mxu1 %v1598_v26  ;;  %1534 = vmatprep.subr.bf16.mxu0 %v1622_v47 }
  0x28   :  { %1094 = vperm.xlu0 %1573, %v1036_v57  }
  0x29   :  { %1109 = vperm.xlu1 %1574, %v1039_v58  }
  0x2a   :  { %1535 = vmatpush3.bf16.msra.mxu0 %v1622_v47 }
  0x2b   :  { %1536 = vmatprep.subr.bf16.mxu0 %v1623_v48 }
  0x2c   :  { %1104 = vperm.xlu0 %1573, %v1038_v59  }
  0x2d   :  { %1119 = vperm.xlu1 %1574, %v1041_v60  }
  0x2e   :  { %1495 = vmatmul.mubr.bf16.gmra.mxu1 %v1599_v28  ;;  %1537 = vmatpush3.bf16.msra.mxu0 %v1623_v48  ;;  %v1959_v48 = vld [vmem:[%s2118_s6] ss:$0 sm:$0xff] }
  0x2f   :  { %1498 = vmatprep.mubr.bf16.mxu1 %v1602_v29 }
  0x30   :  { %1114 = vperm.xlu0 %1573, %v1040_v61  }
  0x31   :  { %1129 = vperm.xlu1 %1574, %v1043_v62  }
  0x34   :  { %1124 = vperm.xlu0 %1573, %v1042_v63  }
  0x35   :  { %1139 = vperm.xlu1 %1574, %v1045_v0  }
  0x36   :  { %1499 = vmatmul.mubr.bf16.gmra.mxu1 %v1603_v30 }
  0x37   :  { %1502 = vmatprep.mubr.bf16.mxu1 %v1606_v31 }
  0x38   :  { %1134 = vperm.xlu0 %1573, %v1044_v1  }
  0x39   :  { %1149 = vperm.xlu1 %1574, %v1047_v2  }
  0x3c   :  { %1144 = vperm.xlu0 %1573, %v1046_v3  }
  0x3d   :  { %1159 = vperm.xlu1 %1574, %v1049_v4  }
  0x3e   :  { %1503 = vmatmul.mubr.bf16.gmra.mxu1 %v1607_v32 }
  0x3f   :  { %1506 = vmatprep.mubr.bf16.mxu1 %v1608_v33 }
  0x40   :  { %1154 = vperm.xlu0 %1573, %v1048_v5  }
  0x41   :  { %1169 = vperm.xlu1 %1574, %v1051_v6  }
  0x44   :  { %1164 = vperm.xlu0 %1573, %v1050_v7  }
  0x45   :  { %1179 = vperm.xlu1 %1574, %v1053_v8  }
  0x46   :  { %1507 = vmatmul.mubr.bf16.gmra.mxu1 %v1609_v34 }
  0x47   :  { %1510 = vmatprep.mubr.bf16.mxu1 %v1610_v35 }
  0x48   :  { %1174 = vperm.xlu0 %1573, %v1052_v9  }
  0x49   :  { %1189 = vperm.xlu1 %1574, %v1055_v10  }
  0x4c   :  { %1184 = vperm.xlu0 %1573, %v1054_v11  }
  0x4d   :  { %1199 = vperm.xlu1 %1574, %v1057_v12  }
  0x4e   :  { %1511 = vmatmul.mubr.bf16.gmra.mxu1 %v1611_v36 }
  0x4f   :  { %1514 = vmatprep.mubr.bf16.mxu1 %v1612_v37 }
  0x50   :  { %1194 = vperm.xlu0 %1573, %v1056_v13  }
  0x51   :  { %1209 = vperm.xlu1 %1574, %v1059_v14  }
  0x54   :  { %1204 = vperm.xlu0 %1573, %v1058_v15  }
  0x55   :  { %1219 = vperm.xlu1 %1574, %v1061_v16  }
  0x56   :  { %1515 = vmatmul.mubr.bf16.gmra.mxu1 %v1613_v38 }
  0x57   :  { %1518 = vmatprep.mubr.bf16.mxu1 %v1614_v39 }
  0x58   :  { %1214 = vperm.xlu0 %1573, %v1060_v17  }
  0x5e   :  { %1519 = vmatmul.mubr.bf16.gmra.mxu1 %v1615_v42 }
  0xc6   :  { %v1924_v18 = vpop.f32.mrf.mxu1 }
  0xc8   :  { %v1926_v19 = vpop.f32.mrf.mxu1  ;;  %v1444_v25 = vpop.f32.mrf.mxu0 }
  0xca   :  { %v1928_v20 = vpop.f32.mrf.mxu1  ;;  %v278_v27 = vpop.f32.mrf.mxu0 }
  0xcc   :  { %v1930_v21 = vpop.f32.mrf.mxu1  ;;  %v1445_v29 = vpop.f32.mrf.mxu0 }
  0xce   :  { %v1932_v22 = vpop.f32.mrf.mxu1  ;;  %v281_v31 = vpop.f32.mrf.mxu0 }
  0xd0   :  { %v1934_v23 = vpop.f32.mrf.mxu1  ;;  %v1448_v33 = vpop.f32.mrf.mxu0 }
  0xd2   :  { %v1936_v24 = vpop.f32.mrf.mxu1  ;;  %v294_v35 = vpop.f32.mrf.mxu0 }
  0xd4   :  { %v1938_v26 = vpop.f32.mrf.mxu1  ;;  %v1449_v38 = vpop.f32.mrf.mxu0 }
  0xd6   :  { %v1940_v28 = vpop.f32.mrf.mxu1  ;;  %v297_v41 = vpop.f32.mrf.mxu0 }
  0xd8   :  { %v1942_v30 = vpop.f32.mrf.mxu1  ;;  %v1452_v44 = vpop.f32.mrf.mxu0 }
  0xda   :  { %v1944_v32 = vpop.f32.mrf.mxu1  ;;  %v310_v51 = vpop.f32.mrf.mxu0 }
  0xdc   :  { %v1946_v34 = vpop.f32.mrf.mxu1  ;;  %v1453_v60 = vpop.f32.mrf.mxu0 }
  0xde   :  { %v1948_v36 = vpop.f32.mrf.mxu1  ;;  %v313_v7 = vpop.f32.mrf.mxu0 }
  0xe0   :  { %v1950_v37 = vpop.f32.mrf.mxu1  ;;  %v1456_v16 = vpop.f32.mrf.mxu0 }
  0xe2   :  { %v1952_v39 = vpop.f32.mrf.mxu1 }
  0xe4   :  { %v1954_v40 = vpop.f32.mrf.mxu1 }
  0xe6   :  { %v1492_v42 = vpop.f32.mrf.mxu1 }
  0xe7   :  { %v592_v46 = vadd.f32 %v1492_v42, %v1444_v25  ;;  %v326_v42 = vpop.f32.mrf.mxu0 }
  0xe8   :  { %v583_v43 = vpop.f32.mrf.mxu1 }
  0xe9   :  { %v584_v45 = vadd.f32 %v583_v43, %v278_v27  ;;  %v719_v55 = vadd.f32 %v1959_v48, %v592_v46 }
  0xea   :  { %v1493_v47 = vpop.f32.mrf.mxu1 }
  0xeb   :  { %v595_v49 = vadd.f32 %v1493_v47, %v1445_v29  ;;  %v717_v52 = vadd.f32 %v1959_v48, %v584_v45  ;;  %v751_v0 = vmax.f32 %v719_v55, 0.0 }
  0xec   :  { %v586_v50 = vpop.f32.mrf.mxu1 }
  0xed   :  { %v720_v53 = vadd.f32 %v1959_v48, %v595_v49  ;;  %v587_v54 = vadd.f32 %v586_v50, %v281_v31  ;;  %v749_v61 = vmax.f32 %v717_v52, 0.0 }
  0xee   :  { %v1496_v56 = vpop.f32.mrf.mxu1 }
  0xef   :  { %v718_v57 = vadd.f32 %v1959_v48, %v587_v54  ;;  %v752_v58 = vmax.f32 %v720_v53, 0.0  ;;  %v608_v1 = vadd.f32 %v1496_v56, %v1448_v33 }
  0xf0   :  { %v599_v59 = vpop.f32.mrf.mxu1 }
  0xf1   :  { %v750_v62 = vmax.f32 %v718_v57, 0.0  ;;  %v600_v63 = vadd.f32 %v599_v59, %v294_v35  ;;  %v782_v5 = vpack.c.bf16 %v752_v58, %v751_v0  ;;  %v723_v11 = vadd.f32 %v1959_v48, %v608_v1 }
  0xf2   :  { %v1497_v2 = vpop.f32.mrf.mxu1 }
  0xf3   :  { %v611_v3 = vadd.f32 %v1497_v2, %v1449_v38  ;;  %v781_v4 = vpack.c.bf16 %v750_v62, %v749_v61  ;;  %v721_v8 = vadd.f32 %v1959_v48, %v600_v63  ;;  %v755_v29 = vmax.f32 %v723_v11, 0.0 }
  0xf4   :  { %v602_v6 = vpop.f32.mrf.mxu1 }
  0xf5   :  { %v724_v9 = vadd.f32 %v1959_v48, %v611_v3  ;;  %v603_v10 = vadd.f32 %v602_v6, %v297_v41  ;;  %1538 = vmatprep.mubr.bf16.mxu0 %v781_v4  ;;  %v753_v17 = vmax.f32 %v721_v8, 0.0 }
  0xf6   :  { %v1500_v12 = vpop.f32.mrf.mxu1  ;;  %1539 = vmatmul.mubr.bf16.vlgmr.msra.gmra.mxu0 %v782_v5 }
  0xf7   :  { %v722_v13 = vadd.f32 %v1959_v48, %v603_v10  ;;  %v756_v14 = vmax.f32 %v724_v9, 0.0  ;;  %v624_v31 = vadd.f32 %v1500_v12, %v1452_v44  ;;  %v1457_v44 = vpop.f32.mrf.mxu0 }
  0xf8   :  { %v615_v15 = vpop.f32.mrf.mxu1 }
  0xf9   :  { %v754_v25 = vmax.f32 %v722_v13, 0.0  ;;  %v616_v27 = vadd.f32 %v615_v15, %v310_v51  ;;  %v784_v43 = vpack.c.bf16 %v756_v14, %v755_v29  ;;  %v727_v49 = vadd.f32 %v1959_v48, %v624_v31  ;;  %v329_v62 = vpop.f32.mrf.mxu0 }
  0xfa   :  { %v1501_v33 = vpop.f32.mrf.mxu1 }
  0xfb   :  { %v627_v35 = vadd.f32 %v1501_v33, %v1453_v60  ;;  %v783_v38 = vpack.c.bf16 %v754_v25, %v753_v17  ;;  %v725_v45 = vadd.f32 %v1959_v48, %v616_v27  ;;  %v759_v57 = vmax.f32 %v727_v49, 0.0 }
  0xfc   :  { %v618_v41 = vpop.f32.mrf.mxu1 }
  0xfd   :  { %v728_v46 = vadd.f32 %v1959_v48, %v627_v35  ;;  %v619_v47 = vadd.f32 %v618_v41, %v313_v7  ;;  %1542 = vmatprep.mubr.bf16.mxu0 %v783_v38  ;;  %v757_v54 = vmax.f32 %v725_v45, 0.0 }
  0xfe   :  { %v1504_v50 = vpop.f32.mrf.mxu1  ;;  %1543 = vmatmul.mubr.bf16.gmra.mxu0 %v784_v43 }
  0xff   :  { %v726_v51 = vadd.f32 %v1959_v48, %v619_v47  ;;  %v760_v52 = vmax.f32 %v728_v46, 0.0  ;;  %v640_v58 = vadd.f32 %v1504_v50, %v1456_v16 }
 0x100   :  { %v631_v53 = vpop.f32.mrf.mxu1 }
 0x101   :  { %v758_v55 = vmax.f32 %v726_v51, 0.0  ;;  %v632_v56 = vadd.f32 %v631_v53, %v326_v42  ;;  %v786_v0 = vpack.c.bf16 %v760_v52, %v759_v57  ;;  %v731_v4 = vadd.f32 %v1959_v48, %v640_v58 }
 0x102   :  { %v1505_v59 = vpop.f32.mrf.mxu1 }
 0x103   :  { %v643_v60 = vadd.f32 %v1505_v59, %v1457_v44  ;;  %v785_v61 = vpack.c.bf16 %v758_v55, %v757_v54  ;;  %v729_v1 = vadd.f32 %v1959_v48, %v632_v56  ;;  %v763_v13 = vmax.f32 %v731_v4, 0.0 }
 0x104   :  { %v634_v63 = vpop.f32.mrf.mxu1 }
 0x105   :  { %v732_v2 = vadd.f32 %v1959_v48, %v643_v60  ;;  %v635_v3 = vadd.f32 %v634_v63, %v329_v62  ;;  %1546 = vmatprep.mubr.bf16.mxu0 %v785_v61  ;;  %v761_v10 = vmax.f32 %v729_v1, 0.0 }
 0x106   :  { %v1508_v5 = vpop.f32.mrf.mxu1  ;;  %1547 = vmatmul.mubr.bf16.gmra.mxu0 %v786_v0 }
 0x107   :  { %v730_v6 = vadd.f32 %v1959_v48, %v635_v3  ;;  %v656_v7 = vadd.f32 %v1508_v5, %v1924_v18  ;;  %v764_v8 = vmax.f32 %v732_v2, 0.0 }
 0x108   :  { %v647_v9 = vpop.f32.mrf.mxu1 }
 0x109   :  { %v762_v11 = vmax.f32 %v730_v6, 0.0  ;;  %v648_v12 = vadd.f32 %v647_v9, %v1926_v19  ;;  %v735_v15 = vadd.f32 %v1959_v48, %v656_v7  ;;  %v788_v27 = vpack.c.bf16 %v764_v8, %v763_v13 }
 0x10a   :  { %v1509_v14 = vpop.f32.mrf.mxu1 }
 0x10b   :  { %v659_v16 = vadd.f32 %v1509_v14, %v1928_v20  ;;  %v787_v17 = vpack.c.bf16 %v762_v11, %v761_v10  ;;  %v733_v29 = vadd.f32 %v1959_v48, %v648_v12  ;;  %v767_v35 = vmax.f32 %v735_v15, 0.0 }
 0x10c   :  { %v650_v25 = vpop.f32.mrf.mxu1 }
 0x10d   :  { %v736_v31 = vadd.f32 %v1959_v48, %v659_v16  ;;  %v651_v18 = vadd.f32 %v650_v25, %v1930_v21  ;;  %1550 = vmatprep.mubr.bf16.mxu0 %v787_v17  ;;  %v765_v20 = vmax.f32 %v733_v29, 0.0 }
 0x10e   :  { %v1512_v33 = vpop.f32.mrf.mxu1  ;;  %1551 = vmatmul.mubr.bf16.gmra.mxu0 %v788_v27 }
 0x10f   :  { %v768_v19 = vmax.f32 %v736_v31, 0.0  ;;  %v734_v38 = vadd.f32 %v1959_v48, %v651_v18  ;;  %v672_v42 = vadd.f32 %v1512_v33, %v1932_v22  ;;  %v2011_v33 = vpop.permute.xlu0 %1064 }
 0x110   :  { %v663_v41 = vpop.f32.mrf.mxu1 }
 0x111   :  { %v766_v43 = vmax.f32 %v734_v38, 0.0  ;;  %v664_v45 = vadd.f32 %v663_v41, %v1934_v23  ;;  %v790_v46 = vpack.c.bf16 %v768_v19, %v767_v35  ;;  %v739_v49 = vadd.f32 %v1959_v48, %v672_v42 }
 0x112   :  { %v1513_v47 = vpop.f32.mrf.mxu1 }
 0x113   :  { %v675_v21 = vadd.f32 %v1513_v47, %v1936_v24  ;;  %v789_v50 = vpack.c.bf16 %v766_v43, %v765_v20  ;;  %v737_v52 = vadd.f32 %v1959_v48, %v664_v45  ;;  %v771_v54 = vmax.f32 %v739_v49, 0.0  ;;  %v2015_v19 = vpop.permute.xlu0 %1069 }
 0x114   :  { %v666_v51 = vpop.f32.mrf.mxu1 }
 0x115   :  { %v740_v44 = vadd.f32 %v1959_v48, %v675_v21  ;;  %v667_v53 = vadd.f32 %v666_v51, %v1938_v26  ;;  %1554 = vmatprep.mubr.bf16.mxu0 %v789_v50  ;;  %v769_v58 = vmax.f32 %v737_v52, 0.0 }
 0x116   :  { %v1516_v22 = vpop.f32.mrf.mxu1  ;;  %1555 = vmatmul.mubr.bf16.gmra.mxu0 %v790_v46 }
 0x117   :  { %v772_v55 = vmax.f32 %v740_v44, 0.0  ;;  %v738_v23 = vadd.f32 %v1959_v48, %v667_v53  ;;  %v688_v56 = vadd.f32 %v1516_v22, %v1940_v28  ;;  %v1085_v38 = vpop.permute.xlu0 %1084 }
 0x118   :  { %v679_v57 = vpop.f32.mrf.mxu1 }
 0x119   :  { %v770_v24 = vmax.f32 %v738_v23, 0.0  ;;  %v680_v59 = vadd.f32 %v679_v57, %v1942_v30  ;;  %v792_v60 = vpack.c.bf16 %v772_v55, %v771_v54  ;;  %v743_v62 = vadd.f32 %v1959_v48, %v688_v56 }
 0x11a   :  { %v1517_v61 = vpop.f32.mrf.mxu1 }
 0x11b   :  { %v691_v26 = vadd.f32 %v1517_v61, %v1944_v32  ;;  %v791_v63 = vpack.c.bf16 %v770_v24, %v769_v58  ;;  %v741_v1 = vadd.f32 %v1959_v48, %v680_v59  ;;  %v775_v4 = vmax.f32 %v743_v62, 0.0  ;;  %v1095_v41 = vpop.permute.xlu0 %1094 }
 0x11c   :  { %v682_v0 = vpop.f32.mrf.mxu1 }
 0x11d   :  { %v744_v2 = vadd.f32 %v1959_v48, %v691_v26  ;;  %v683_v3 = vadd.f32 %v682_v0, %v1946_v34  ;;  %1558 = vmatprep.mubr.bf16.mxu0 %v791_v63  ;;  %v773_v8 = vmax.f32 %v741_v1, 0.0 }
 0x11e   :  { %v1520_v28 = vpop.f32.mrf.mxu1  ;;  %1559 = vmatmul.mubr.bf16.gmra.mxu0 %v792_v60 }
 0x11f   :  { %v776_v5 = vmax.f32 %v744_v2, 0.0  ;;  %v742_v30 = vadd.f32 %v1959_v48, %v683_v3  ;;  %v704_v6 = vadd.f32 %v1520_v28, %v1948_v36 }
 0x120   :  { %v695_v7 = vpop.f32.mrf.mxu1 }
 0x121   :  { %v774_v32 = vmax.f32 %v742_v30, 0.0  ;;  %v696_v9 = vadd.f32 %v695_v7, %v1950_v37  ;;  %v794_v10 = vpack.c.bf16 %v776_v5, %v775_v4  ;;  %v747_v12 = vadd.f32 %v1959_v48, %v704_v6  ;;  %v2050_v7 = vld [vmem:[%s2118_s6 + $0x1] ss:$0 sm:$0xff] }
 0x122   :  { %v1521_v11 = vpop.f32.mrf.mxu1 }
 0x123   :  { %v707_v34 = vadd.f32 %v1521_v11, %v1952_v39  ;;  %v793_v13 = vpack.c.bf16 %v774_v32, %v773_v8  ;;  %v745_v15 = vadd.f32 %v1959_v48, %v696_v9  ;;  %v779_v36 = vmax.f32 %v747_v12, 0.0  ;;  %v2009_v39 = vpop.permute.xlu1 %1074 }
 0x124   :  { %v698_v14 = vpop.f32.mrf.mxu1 }
 0x125   :  { %v748_v16 = vadd.f32 %v1959_v48, %v707_v34  ;;  %v699_v17 = vadd.f32 %v698_v14, %v1954_v40  ;;  %1562 = vmatprep.mubr.bf16.mxu0 %v793_v13  ;;  %v777_v27 = vmax.f32 %v745_v15, 0.0 }
 0x126   :  { %1563 = vmatmul.mubr.bf16.gmra.mxu0 %v794_v10 }
 0x127   :  { %v780_v25 = vmax.f32 %v748_v16, 0.0  ;;  %v746_v37 = vadd.f32 %v1959_v48, %v699_v17  ;;  %v2013_v35 = vpop.permute.xlu1 %1079  ;;  %v2019_v48 = vpop.permute.xlu0 %1104 }
 0x129   :  { %v778_v29 = vmax.f32 %v746_v37, 0.0  ;;  %v796_v31 = vpack.c.bf16 %v780_v25, %v779_v36 }
 0x12b   :  { %v795_v18 = vpack.c.bf16 %v778_v29, %v777_v27  ;;  %v1090_v40 = vpop.permute.xlu1 %1089  ;;  %v1115_v46 = vpop.permute.xlu0 %1114 }
 0x12d   :  { %1566 = vmatprep.mubr.bf16.mxu0 %v795_v18 }
 0x12e   :  { %1567 = vmatmul.mubr.bf16.gmra.mxu0 %v796_v31 }
 0x12f   :  { %v1100_v42 = vpop.permute.xlu1 %1099  ;;  %v2025_v51 = vpop.permute.xlu0 %1124 }
 0x133   :  { %v2017_v20 = vpop.permute.xlu1 %1109  ;;  %v2029_v54 = vpop.permute.xlu0 %1134 }
 0x137   :  { %v2021_v45 = vpop.permute.xlu1 %1119  ;;  %v2033_v58 = vpop.permute.xlu0 %1144 }
 0x13b   :  { %v2023_v50 = vpop.permute.xlu1 %1129  ;;  %v2037_v62 = vpop.permute.xlu0 %1154 }
 0x13f   :  { %v2027_v22 = vpop.permute.xlu1 %1139  ;;  %v2041_v2 = vpop.permute.xlu0 %1164 }
 0x143   :  { %v2031_v57 = vpop.permute.xlu1 %1149  ;;  %v2045_v30 = vpop.permute.xlu0 %1174 }
 0x147   :  { %v2035_v61 = vpop.permute.xlu1 %1159  ;;  %v2061_v16 = vpop.permute.xlu0 %1184 }
 0x14b   :  { %v2039_v1 = vpop.permute.xlu1 %1169 }
 0x14f   :  { %v2043_v5 = vpop.permute.xlu1 %1179 }
 0x153   :  { %v2057_v13 = vpop.permute.xlu1 %1189 }
 0x1b6   :  { %v1540_v43 = vpop.f32.mrf.mxu0 }
 0x1b7   :  { %v912_v9 = vadd.f32 %v1540_v43, %v2050_v7 }
 0x1b8   :  { %v903_v47 = vpop.f32.mrf.mxu0 }
 0x1b9   :  { %v904_v14 = vadd.f32 %v2050_v7, %v903_v47  ;;  %v1224_v18 = vadd.f32 %v2009_v39, %v912_v9  ;;  %v1200_v39 = vpop.permute.xlu1 %1199 }
 0x1ba   :  { %v1541_v49 = vpop.f32.mrf.mxu0 }
 0x1bb   :  { %v915_v17 = vadd.f32 %v1541_v49, %v2050_v7 }
 0x1bc   :  { %v906_v21 = vpop.f32.mrf.mxu0 }
 0x1bd   :  { %v907_v36 = vadd.f32 %v2050_v7, %v906_v21  ;;  %v1225_v21 = vadd.f32 %v2013_v35, %v915_v17 }
 0x1be   :  { %v1544_v52 = vpop.f32.mrf.mxu0 }
 0x1bf   :  { %v928_v8 = vadd.f32 %v1544_v52, %v2050_v7 }
 0x1c0   :  { %v919_v44 = vpop.f32.mrf.mxu0 }
 0x1c1   :  { %v920_v10 = vadd.f32 %v2050_v7, %v919_v44  ;;  %v1228_v25 = vadd.f32 %v1095_v41, %v928_v8 }
 0x1c2   :  { %v1545_v53 = vpop.f32.mrf.mxu0 }
 0x1c3   :  { %v931_v11 = vadd.f32 %v1545_v53, %v2050_v7  ;;  %v1226_v43 = vadd.f32 %v1085_v38, %v920_v10  ;;  %v1222_v53 = vadd.f32 %v2011_v33, %v904_v14 }
 0x1c4   :  { %v922_v55 = vpop.f32.mrf.mxu0 }
 0x1c5   :  { %v923_v12 = vadd.f32 %v2050_v7, %v922_v55  ;;  %v1229_v47 = vadd.f32 %v1100_v42, %v931_v11 }
 0x1c6   :  { %v1548_v23 = vpop.f32.mrf.mxu0 }
 0x1c7   :  { %v944_v15 = vadd.f32 %v1548_v23, %v2050_v7  ;;  %v1227_v52 = vadd.f32 %v1090_v40, %v923_v12  ;;  %v1223_v23 = vadd.f32 %v2015_v19, %v907_v36 }
 0x1c8   :  { %v935_v56 = vpop.f32.mrf.mxu0 }
 0x1c9   :  { %v936_v37 = vadd.f32 %v2050_v7, %v935_v56  ;;  %v1232_v55 = vadd.f32 %v1115_v46, %v944_v15  ;;  %v1255_v56 = vmax.f32 %v1224_v18, %v1228_v25  ;;  %v1195_v46 = vpop.permute.xlu0 %1194  ;;  %v1269_v8 = vmax.f32 %v1223_v23, %v1227_v52  ;;  %v1210_v25 = vpop.permute.xlu1 %1209 }
 0x1ca   :  { %v1549_v24 = vpop.f32.mrf.mxu0 }
 0x1cb   :  { %v947_v29 = vadd.f32 %v1549_v24, %v2050_v7  ;;  %v1230_v24 = vadd.f32 %v2019_v48, %v936_v37  ;;  %v1257_v9 = vmax.f32 %v1255_v56, %v1232_v55 }
 0x1cc   :  { %v938_v59 = vpop.f32.mrf.mxu0 }
 0x1cd   :  { %v939_v31 = vadd.f32 %v2050_v7, %v938_v59  ;;  %v1233_v38 = vadd.f32 %v2021_v45, %v947_v29 }
 0x1ce   :  { %v1552_v60 = vpop.f32.mrf.mxu0 }
 0x1cf   :  { %v960_v49 = vadd.f32 %v1552_v60, %v2050_v7  ;;  %v1231_v40 = vadd.f32 %v2017_v20, %v939_v31  ;;  %v1254_v60 = vmax.f32 %v1222_v53, %v1226_v43  ;;  %v1205_v31 = vpop.permute.xlu0 %1204 }
 0x1d0   :  { %v951_v26 = vpop.f32.mrf.mxu0 }
 0x1d1   :  { %v952_v41 = vadd.f32 %v2050_v7, %v951_v26  ;;  %v1270_v26 = vmax.f32 %v1225_v21, %v1229_v47  ;;  %v1236_v48 = vadd.f32 %v2029_v54, %v960_v49  ;;  %v1256_v11 = vmax.f32 %v1254_v60, %v1230_v24 }
 0x1d2   :  { %v1553_v63 = vpop.f32.mrf.mxu0  ;;  %v1271_v15 = vmax.f32 %v1269_v8, %v1231_v40 }
 0x1d3   :  { %v963_v33 = vadd.f32 %v1553_v63, %v2050_v7  ;;  %v1234_v10 = vadd.f32 %v2025_v51, %v952_v41  ;;  %v1272_v14 = vmax.f32 %v1270_v26, %v1233_v38  ;;  %v1220_v38 = vpop.permute.xlu1 %1219 }
 0x1d4   :  { %v954_v0 = vpop.f32.mrf.mxu0 }
 0x1d5   :  { %v955_v42 = vadd.f32 %v2050_v7, %v954_v0  ;;  %v1258_v37 = vmax.f32 %v1256_v11, %v1234_v10 }
 0x1d6   :  { %v1556_v3 = vpop.f32.mrf.mxu0 }
 0x1d7   :  { %v976_v45 = vadd.f32 %v1556_v3, %v2050_v7  ;;  %v1235_v17 = vadd.f32 %v2023_v50, %v955_v42 }
 0x1d8   :  { %v967_v28 = vpop.f32.mrf.mxu0 }
 0x1d9   :  { %v968_v35 = vadd.f32 %v2050_v7, %v967_v28  ;;  %v1237_v28 = vadd.f32 %v2027_v22, %v963_v33  ;;  %v1273_v43 = vmax.f32 %v1271_v15, %v1235_v17  ;;  %v1215_v33 = vpop.permute.xlu0 %1214 }
 0x1da   :  { %v1557_v4 = vpop.f32.mrf.mxu0 }
 0x1db   :  { %v979_v20 = vadd.f32 %v1557_v4, %v2050_v7  ;;  %v1238_v54 = vadd.f32 %v2033_v58, %v968_v35  ;;  %v1274_v18 = vmax.f32 %v1272_v14, %v1237_v28 }
 0x1dc   :  { %v970_v6 = vpop.f32.mrf.mxu0 }
 0x1dd   :  { %v971_v63 = vadd.f32 %v2050_v7, %v970_v6  ;;  %v1259_v6 = vmax.f32 %v1257_v9, %v1236_v48  ;;  %v1241_v22 = vadd.f32 %v2035_v61, %v979_v20 }
 0x1de   :  { %v1560_v32 = vpop.f32.mrf.mxu0 }
 0x1df   :  { %v992_v51 = vadd.f32 %v1560_v32, %v2050_v7  ;;  %v1239_v50 = vadd.f32 %v2031_v57, %v971_v63  ;;  %v1276_v21 = vmax.f32 %v1274_v18, %v1241_v22 }
 0x1e0   :  { %v983_v34 = vpop.f32.mrf.mxu0 }
 0x1e1   :  { %v984_v0 = vadd.f32 %v2050_v7, %v983_v34  ;;  %v1240_v34 = vadd.f32 %v2037_v62, %v976_v45  ;;  %v1244_v62 = vadd.f32 %v2045_v30, %v992_v51  ;;  %v1275_v23 = vmax.f32 %v1273_v43, %v1239_v50 }
 0x1e2   :  { %v1561_v27 = vpop.f32.mrf.mxu0 }
 0x1e3   :  { %v995_v3 = vadd.f32 %v1561_v27, %v2050_v7  ;;  %v1242_v58 = vadd.f32 %v2041_v2, %v984_v0  ;;  %v1261_v57 = vmax.f32 %v1259_v6, %v1240_v34 }
 0x1e4   :  { %v986_v44 = vpop.f32.mrf.mxu0 }
 0x1e5   :  { %v987_v36 = vadd.f32 %v2050_v7, %v986_v44  ;;  %v1260_v44 = vmax.f32 %v1258_v37, %v1238_v54  ;;  %v1245_v53 = vadd.f32 %v2043_v5, %v995_v3  ;;  %v1263_v42 = vmax.f32 %v1261_v57, %v1244_v62 }
 0x1e6   :  { %v1564_v59 = vpop.f32.mrf.mxu0 }
 0x1e7   :  { %v1008_v32 = vadd.f32 %v1564_v59, %v2050_v7  ;;  %v1243_v61 = vadd.f32 %v2039_v1, %v987_v36  ;;  %v1262_v56 = vmax.f32 %v1260_v44, %v1242_v58  ;;  %v1278_v60 = vmax.f32 %v1276_v21, %v1245_v53 }
 0x1e8   :  { %v999_v19 = vpop.f32.mrf.mxu0 }
 0x1e9   :  { %v1000_v29 = vadd.f32 %v2050_v7, %v999_v19  ;;  %v1248_v24 = vadd.f32 %v1195_v46, %v1008_v32 }
 0x1ea   :  { %v1565_v12 = vpop.f32.mrf.mxu0 }
 0x1eb   :  { %v1011_v47 = vadd.f32 %v1565_v12, %v2050_v7  ;;  %v1246_v2 = vadd.f32 %v2061_v16, %v1000_v29  ;;  %v1277_v16 = vmax.f32 %v1275_v23, %v1243_v61  ;;  %v1265_v48 = vmax.f32 %v1263_v42, %v1248_v24 }
 0x1ec   :  { %v1002_v4 = vpop.f32.mrf.mxu0 }
 0x1ed   :  { %v1003_v52 = vadd.f32 %v2050_v7, %v1002_v4  ;;  %v1249_v40 = vadd.f32 %v1200_v39, %v1011_v47  ;;  %v1264_v8 = vmax.f32 %v1262_v56, %v1246_v2 }
 0x1ee   :  { %v1568_v27 = vpop.f32.mrf.mxu0 }
 0x1ef   :  { %v1024_v49 = vadd.f32 %v1568_v27, %v2050_v7  ;;  %v1247_v30 = vadd.f32 %v2057_v13, %v1003_v52  ;;  %v1280_v46 = vmax.f32 %v1278_v60, %v1249_v40 }
 0x1f0   :  { %v1015_v55 = vpop.f32.mrf.mxu0 }
 0x1f1   :  { %v1016_v41 = vadd.f32 %v2050_v7, %v1015_v55  ;;  %v1252_v35 = vadd.f32 %v1215_v33, %v1024_v49  ;;  %v1279_v10 = vmax.f32 %v1277_v16, %v1247_v30 }
 0x1f2   :  { %v1569_v59 = vpop.f32.mrf.mxu0 }
 0x1f3   :  { %v1250_v5 = vadd.f32 %v1205_v31, %v1016_v41  ;;  %v1027_v1 = vadd.f32 %v1569_v59, %v2050_v7  ;;  %v1267_v11 = vmax.f32 %v1265_v48, %v1252_v35 }
 0x1f4   :  { %v1018_v26 = vpop.f32.mrf.mxu0 }
 0x1f5   :  { %v1253_v19 = vadd.f32 %v1220_v38, %v1027_v1  ;;  %v1019_v9 = vadd.f32 %v2050_v7, %v1018_v26  ;;  %v1266_v45 = vmax.f32 %v1264_v8, %v1250_v5 }
 0x1f7   :  { %v1251_v39 = vadd.f32 %v1210_v25, %v1019_v9  ;;  %v1282_v13 = vmax.f32 %v1280_v46, %v1253_v19  ;;  %v1268_v63 = vmax.f32 %v1266_v45, %v1267_v11 }
 0x1f9   :  { %v1281_v20 = vmax.f32 %v1279_v10, %v1251_v39 }
 0x1fb   :  { %v1283_v0 = vmax.f32 %v1281_v20, %v1282_v13 }
 0x1fd   :  { %v1373_v12 = vpack.c.bf16 %v1283_v0, %v1268_v63 }
 0x1ff   :  { %1374 = vst [vmem:[%s2119_s7] sm:$0xff] %v1373_v12  }

</bundles_post_ra>
